<compile_context>
chip_gen: v7x
topology: tpu7x:2x2x1
jax: 0.10.0
libtpu: 0.0.40
codegen_flags: <defaults>
</compile_context>

<pallas_src>
import functools

import jax
import jax.numpy as jnp
from jax.experimental import pallas as pl
from jax.experimental.pallas import tpu as pltpu


# ------------------------------- fused kernel --------------------------------

def _inv_res_kernel(x_ref, w1_ref, b1_ref, wdw_ref, b2_ref, w3_ref, b3_ref,
                    alphas_ref, o_ref, hid_ref, res_ref, *,
                    H, W, inp, hidden, oup, th, stride, expand, use_res):
    """One (batch n, row-band rb) tile of the full InvertedResidual block.

    x_ref   : (1, inp, H, W)        raw NCHW input image for batch n (resident in VMEM)
    w1_ref  : (inp, hidden, 1)      expand weights, BN1 scale folded in
    b1_ref  : (hidden, 1)           BN1 shift
    wdw_ref : (9, hidden, 1)        depthwise 3x3 weights, BN2 scale folded in
    b2_ref  : (hidden, 1)           BN2 shift
    w3_ref  : (oup, hidden) bf16    projection weights, BN3 scale folded in
    b3_ref  : (oup, 1)              BN3 shift
    alphas  : (2,) in SMEM          [prelu1, prelu2]
    o_ref   : (1, oup, th*W)        channel-major output band, pixels flattened on lanes
    hid_ref : (hidden, hrows*W + 2) expanded activation band (flat, 1 guard lane each side)
    res_ref : (inp, th*W)           residual rows (copy of the input band), used if use_res
    """
    rb = pl.program_id(1)                       # row-band index
    hrows = (th - 1) * stride + 3               # hidden rows needed by this band (with halo)
    L = th * W                                  # lanes per output band (full-width rows)
    hstart = rb * (th * stride) - 1             # first needed hidden/input row (may be -1)

    alpha1 = alphas_ref[0]
    alpha2 = alphas_ref[1]

    # hid[:, 1 + r*W + c] = expanded activation at (row hstart + r, col c).
    # Only the two guard lanes strictly need the zero init; full zero is trivially cheap.
    hid_ref[...] = jnp.zeros_like(hid_ref)

    # ---- stage 1: 1x1 expand conv + BN + PReLU (VPU broadcast-FMAs, K = inp) ----
    for i in range(hrows):                      # static, unrolled
        row = hstart + i
        row_c = jnp.clip(row, 0, H - 1)
        # Halo rows outside the image must be exact zeros (the depthwise zero padding
        # sits *after* the expand conv).  Rows read are clamped & finite, so a
        # multiplicative mask is exact.
        valid = jnp.logical_and(row >= 0, row < H).astype(jnp.float32)
        dst = slice(1 + i * W, 1 + (i + 1) * W)
        if expand:
            acc = jnp.zeros((hidden, W), jnp.float32)
            for c in range(inp):
                xr = x_ref[0, c, pl.ds(row_c, 1), :]             # (1, W)
                acc = acc + w1_ref[c] * xr                       # (hidden,1)*(1,W)
                if use_res and 1 <= i <= th:                     # this band's output rows
                    res_ref[c:c + 1, (i - 1) * W:i * W] = xr
            y = acc + b1_ref[...]
            y = jnp.where(y >= 0, y, alpha1 * y)                 # PReLU (shared alpha)
            hid_ref[:, dst] = y * valid
        else:
            # expand_ratio == 1: no expand conv, hidden == inp
            for c in range(inp):
                xr = x_ref[0, c, pl.ds(row_c, 1), :]
                if use_res and 1 <= i <= th:
                    res_ref[c:c + 1, (i - 1) * W:i * W] = xr
                hid_ref[c:c + 1, dst] = xr * valid

    # ---- stages 2+3: 3x3 depthwise + BN + PReLU, then 1x1 project + BN (+ residual) ----
    if stride == 1:
        col = jax.lax.broadcasted_iota(jnp.int32, (1, L), 1) % W
        is_left = col == 0
        is_right = col == W - 1
        acc = jnp.zeros((hidden, L), jnp.float32)
        for ki in range(3):
            for kj in range(3):
                # static, 128-lane-dense slice of the flattened hidden band
                tap = hid_ref[:, ki * W + kj: ki * W + kj + L]   # (hidden, L)
                contrib = tap * wdw_ref[ki * 3 + kj]             # per-channel weight (hidden,1)
                if kj == 0:                                      # zero-padded left column
                    contrib = jnp.where(is_left, 0.0, contrib)
                elif kj == 2:                                    # zero-padded right column
                    contrib = jnp.where(is_right, 0.0, contrib)
                acc = acc + contrib
        y2 = acc + b2_ref[...]
        y2 = jnp.where(y2 >= 0, y2, alpha2 * y2)
        out = jnp.dot(w3_ref[...], y2.astype(jnp.bfloat16),      # MXU: bf16 x bf16 -> f32
                      preferred_element_type=jnp.float32)        # (oup, L)
        out = out + b3_ref[...]
        if use_res:
            out = out + res_ref[...]
        o_ref[0] = out.astype(o_ref.dtype)                       # one dense store
    else:
        # stride == 2: compute full-width rows at the strided row positions; the wrapper
        # drops the odd columns of this small projected tensor.
        # TODO(synk): decimate columns in-kernel (even/odd lane split) to avoid the 2x
        # column overcompute and the wrapper-side slice.
        colw = jax.lax.broadcasted_iota(jnp.int32, (1, W), 1)
        is_left = colw == 0
        is_right = colw == W - 1
        for j in range(th):
            accr = jnp.zeros((hidden, W), jnp.float32)
            for ki in range(3):
                for kj in range(3):
                    s = (2 * j + ki) * W + kj
                    contrib = hid_ref[:, s:s + W] * wdw_ref[ki * 3 + kj]
                    if kj == 0:
                        contrib = jnp.where(is_left, 0.0, contrib)
                    elif kj == 2:
                        contrib = jnp.where(is_right, 0.0, contrib)
                    accr = accr + contrib
            y2 = accr + b2_ref[...]
            y2 = jnp.where(y2 >= 0, y2, alpha2 * y2)
            outr = jnp.dot(w3_ref[...], y2.astype(jnp.bfloat16),
                           preferred_element_type=jnp.float32)
            outr = outr + b3_ref[...]
            o_ref[0, :, j * W:(j + 1) * W] = outr.astype(o_ref.dtype)


# --------------------------- module forward (wrapper) ------------------------

def inverted_residual_forward(x_nchw, params, *, inp, oup, stride, expand_ratio):
    N, cin, H, W = x_nchw.shape
    assert cin == inp and stride in (1, 2)
    if stride == 2:
        assert H % 2 == 0, "TODO(synk): odd H with stride 2 needs an extra boundary band"
    hidden = int(round(inp * expand_ratio))
    expand = expand_ratio != 1
    use_res = (stride == 1) and (inp == oup)
    Ho = (H + 2 - 3) // stride + 1

    # Row-band height: smallest divisor of Ho whose output band is a multiple of 128
    # lanes (dense HBM stores, enough grid steps for pipelining / megacore).  For large
    # images, raise the lane target towards 512-2048 to amortize per-step overhead.
    th = Ho
    for cand in range(1, Ho + 1):
        if Ho % cand == 0 and (cand * W) % 128 == 0:
            th = cand
            break
    nb = Ho // th
    hrows = (th - 1) * stride + 3

    x = x_nchw.astype(jnp.float32)

    # Fold the (inference-mode) BatchNorm scales into the conv weights.
    if expand:
        w1f = (params["w1"] * params["bn1_scale"][None, :])[:, :, None].astype(jnp.float32)
        b1 = params["bn1_shift"].reshape(hidden, 1).astype(jnp.float32)
        a1 = params["prelu1"].reshape(()).astype(jnp.float32)
    else:
        w1f = jnp.zeros((inp, hidden, 1), jnp.float32)   # unused
        b1 = jnp.zeros((hidden, 1), jnp.float32)         # unused
        a1 = jnp.zeros((), jnp.float32)                  # unused
    wdw = (params["w_dw"] * params["bn2_scale"]).reshape(9, hidden)[:, :, None].astype(jnp.float32)
    b2 = params["bn2_shift"].reshape(hidden, 1).astype(jnp.float32)
    w3t = (params["w3"] * params["bn3_scale"][None, :]).T.astype(jnp.bfloat16)   # (oup, hidden)
    b3 = params["bn3_shift"].reshape(oup, 1).astype(jnp.float32)
    alphas = jnp.stack([a1, params["prelu2"].reshape(()).astype(jnp.float32)])   # (2,) -> SMEM

    kernel = functools.partial(
        _inv_res_kernel, H=H, W=W, inp=inp, hidden=hidden, oup=oup,
        th=th, stride=stride, expand=expand, use_res=use_res)

    out_flat = pl.pallas_call(
        kernel,
        out_shape=jax.ShapeDtypeStruct((N, oup, Ho * W), jnp.float32),
        grid=(N, nb),
        in_specs=[
            pl.BlockSpec((1, inp, H, W), lambda n, rb: (n, 0, 0, 0)),   # resident per n
            pl.BlockSpec((inp, hidden, 1), lambda n, rb: (0, 0, 0)),
            pl.BlockSpec((hidden, 1), lambda n, rb: (0, 0)),
            pl.BlockSpec((9, hidden, 1), lambda n, rb: (0, 0, 0)),
            pl.BlockSpec((hidden, 1), lambda n, rb: (0, 0)),
            pl.BlockSpec((oup, hidden), lambda n, rb: (0, 0)),
            pl.BlockSpec((oup, 1), lambda n, rb: (0, 0)),
            pl.BlockSpec(memory_space=pltpu.MemorySpace.SMEM),          # PReLU alphas
        ],
        out_specs=pl.BlockSpec((1, oup, th * W), lambda n, rb: (n, 0, rb)),
        scratch_shapes=[
            pltpu.VMEM((hidden, hrows * W + 2), jnp.float32),   # expanded-activation band
            pltpu.VMEM((inp, th * W), jnp.float32),             # residual rows
        ],
        compiler_params=pltpu.CompilerParams(
            dimension_semantics=("parallel", "parallel"),
            vmem_limit_bytes=32 * 1024 * 1024),
    )(x, w1f, b1, wdw, b2, w3t, b3, alphas)

    out = out_flat.reshape(N, oup, Ho, W)       # free reshape: already NCHW-ordered
    if stride == 2:
        out = out[:, :, :, ::2]                 # drop odd columns of the small output
    return out


# ------------------------------- params init ---------------------------------

def init_params(key, inp, oup, expand_ratio, eps=1e-5):
    hidden = int(round(inp * expand_ratio))
    ks = jax.random.split(key, 16)

    def bn(kg, kb, km, kv, c):
        gamma = 1.0 + 0.1 * jax.random.normal(kg, (c,), jnp.float32)
        beta = 0.1 * jax.random.normal(kb, (c,), jnp.float32)
        mean = 0.1 * jax.random.normal(km, (c,), jnp.float32)
        var = 1.0 + 0.5 * jax.random.uniform(kv, (c,), jnp.float32)
        scale = gamma * jax.lax.rsqrt(var + eps)
        shift = beta - mean * scale
        return scale, shift

    p = {}
    if expand_ratio != 1:
        p["w1"] = 0.1 * jax.random.normal(ks[0], (inp, hidden), jnp.float32)
        p["bn1_scale"], p["bn1_shift"] = bn(ks[1], ks[2], ks[3], ks[4], hidden)
        p["prelu1"] = jnp.full((1,), 0.25, jnp.float32)      # nn.PReLU() default
    p["w_dw"] = 0.1 * jax.random.normal(ks[5], (3, 3, hidden), jnp.float32)
    p["bn2_scale"], p["bn2_shift"] = bn(ks[6], ks[7], ks[8], ks[9], hidden)
    p["prelu2"] = jnp.full((1,), 0.25, jnp.float32)
    p["w3"] = 0.1 * jax.random.normal(ks[10], (hidden, oup), jnp.float32)
    p["bn3_scale"], p["bn3_shift"] = bn(ks[11], ks[12], ks[13], ks[14], oup)
    return p


# ----------------------------- pure-JAX reference ----------------------------

def reference_forward(x_nchw, params, *, inp, oup, stride, expand_ratio):
    hidden = int(round(inp * expand_ratio))
    x = jnp.transpose(x_nchw, (0, 2, 3, 1)).astype(jnp.float32)
    h = x
    if expand_ratio != 1:
        h = jnp.einsum("nhwc,cd->nhwd", h, params["w1"])
        h = h * params["bn1_scale"] + params["bn1_shift"]
        h = jnp.where(h >= 0, h, params["prelu1"] * h)
    w_dw = params["w_dw"].reshape(3, 3, 1, hidden)
    dn = jax.lax.conv_dimension_numbers(h.shape, w_dw.shape, ("NHWC", "HWIO", "NHWC"))
    h = jax.lax.conv_general_dilated(h, w_dw, (stride, stride), ((1, 1), (1, 1)),
                                     dimension_numbers=dn, feature_group_count=hidden)
    h = h * params["bn2_scale"] + params["bn2_shift"]
    h = jnp.where(h >= 0, h, params["prelu2"] * h)
    h = jnp.einsum("nhwc,cd->nhwd", h, params["w3"])
    h = h * params["bn3_scale"] + params["bn3_shift"]
    if stride == 1 and inp == oup:
        h = h + x
    return jnp.transpose(h, (0, 3, 1, 2))


# ------------------------------------ main ------------------------------------

if __name__ == "__main__":
    inp, oup, stride, expand_ratio = 4, 4, 1, 6
    N, H, W = 2, 16, 16

    key = jax.random.PRNGKey(0)
    kx, kp = jax.random.split(key)
    x = jax.random.normal(kx, (N, inp, H, W), jnp.float32)          # NCHW input
    params = init_params(kp, inp, oup, expand_ratio)

    out = inverted_residual_forward(x, params, inp=inp, oup=oup,
                                    stride=stride, expand_ratio=expand_ratio)
    out = jax.block_until_ready(out)
    assert out.shape == (N, oup, H, W), out.shape

    ref = jax.block_until_ready(
        reference_forward(x, params, inp=inp, oup=oup,
                          stride=stride, expand_ratio=expand_ratio))
    assert jnp.allclose(out, ref, atol=1e-2, rtol=1e-2), \
        float(jnp.max(jnp.abs(out - ref)))

    print("KERNEL_OK")
</pallas_src>

<mosaic_0001>
module attributes {stable_mosaic.version = 11 : i64} {
  func.func @_inv_res_kernel(%arg0: i32, %arg1: i32, %arg2: memref<1x4x16x16xf32, #tpu.memory_space<vmem>>, %arg3: memref<4x24x1xf32, #tpu.memory_space<vmem>>, %arg4: memref<24x1xf32, #tpu.memory_space<vmem>>, %arg5: memref<9x24x1xf32, #tpu.memory_space<vmem>>, %arg6: memref<24x1xf32, #tpu.memory_space<vmem>>, %arg7: memref<4x24xbf16, #tpu.memory_space<vmem>>, %arg8: memref<4x1xf32, #tpu.memory_space<vmem>>, %arg9: memref<2xf32, #tpu.memory_space<smem>>, %arg10: memref<1x4x128xf32, #tpu.memory_space<vmem>>, %arg11: memref<24x162xf32, #tpu.memory_space<vmem>>, %arg12: memref<4x128xf32, #tpu.memory_space<vmem>>) attributes {dimension_semantics = [#tpu.dimension_semantics<parallel>, #tpu.dimension_semantics<parallel>], iteration_bounds = array<i64: 2, 2>, scalar_prefetch = 0 : i64, scratch_operands = 2 : i64, tpu.core_type = #tpu.core_type<tc>, window_params = [{transform_indices = @transform_0, window_bounds = array<i64: 1, 4, 16, 16>}, {pipeline_mode = #tpu.pipeline_mode<synchronous>, transform_indices = @transform_1, window_bounds = array<i64: 4, 24, 1>}, {pipeline_mode = #tpu.pipeline_mode<synchronous>, transform_indices = @transform_2, window_bounds = array<i64: 24, 1>}, {pipeline_mode = #tpu.pipeline_mode<synchronous>, transform_indices = @transform_3, window_bounds = array<i64: 9, 24, 1>}, {pipeline_mode = #tpu.pipeline_mode<synchronous>, transform_indices = @transform_4, window_bounds = array<i64: 24, 1>}, {pipeline_mode = #tpu.pipeline_mode<synchronous>, transform_indices = @transform_5, window_bounds = array<i64: 4, 24>}, {pipeline_mode = #tpu.pipeline_mode<synchronous>, transform_indices = @transform_6, window_bounds = array<i64: 4, 1>}, {transform_indices = @transform_7, window_bounds = array<i64: 2>}, {transform_indices = @transform_8, window_bounds = array<i64: 1, 4, 128>}]} {
    %c8_i32 = arith.constant 8 : i32
    %0 = arith.muli %arg1, %c8_i32 : i32
    %c1_i32 = arith.constant 1 : i32
    %1 = arith.subi %0, %c1_i32 : i32
    %c0 = arith.constant 0 : index
    %2 = memref.load %arg9[%c0] : memref<2xf32, #tpu.memory_space<smem>>
    %c1 = arith.constant 1 : index
    %3 = memref.load %arg9[%c1] : memref<2xf32, #tpu.memory_space<smem>>
    %cst = arith.constant 0.000000e+00 : f32
    %4 = vector.broadcast %cst : f32 to vector<24x162xf32>
    %c0_0 = arith.constant 0 : index
    %c0_1 = arith.constant 0 : index
    %5 = vector.load %arg11[%c0_0, %c0_1] : memref<24x162xf32, #tpu.memory_space<vmem>>, vector<24x162xf32>
    tpu.vector_store %arg11[%c0_0, %c0_1], %4 {strides = array<i32>} : memref<24x162xf32, #tpu.memory_space<vmem>>, vector<24x162xf32>,
    %c0_i32 = arith.constant 0 : i32
    %6 = arith.addi %1, %c0_i32 : i32
    %c0_i32_2 = arith.constant 0 : i32
    %c15_i32 = arith.constant 15 : i32
    %7 = arith.maxsi %c0_i32_2, %6 : i32
    %8 = arith.minsi %c15_i32, %7 : i32
    %c0_i32_3 = arith.constant 0 : i32
    %9 = arith.cmpi sge, %6, %c0_i32_3 : i32
    %c16_i32 = arith.constant 16 : i32
    %10 = arith.cmpi slt, %6, %c16_i32 : i32
    %11 = arith.andi %9, %10 : i1
    %12 = arith.extui %11 : i1 to i32
    %13 = arith.sitofp %12 : i32 to f32
    %cst_4 = arith.constant 0.000000e+00 : f32
    %14 = vector.broadcast %cst_4 : f32 to vector<24x16xf32>
    %c0_5 = arith.constant 0 : index
    %c0_6 = arith.constant 0 : index
    %15 = arith.index_cast %8 : i32 to index
    %c0_7 = arith.constant 0 : index
    %16 = vector.load %arg2[%c0_5, %c0_6, %15, %c0_7] : memref<1x4x16x16xf32, #tpu.memory_space<vmem>>, vector<1x1x1x16xf32>
    %17 = vector.shape_cast %16 : vector<1x1x1x16xf32> to vector<1x16xf32>
    %c0_8 = arith.constant 0 : index
    %c0_9 = arith.constant 0 : index
    %c0_10 = arith.constant 0 : index
    %18 = vector.load %arg3[%c0_8, %c0_9, %c0_10] : memref<4x24x1xf32, #tpu.memory_space<vmem>>, vector<1x24x1xf32>
    %19 = vector.shape_cast %18 : vector<1x24x1xf32> to vector<24x1xf32>
    %20 = vector.broadcast %19 : vector<24x1xf32> to vector<24x16xf32>
    %21 = vector.broadcast %17 : vector<1x16xf32> to vector<24x16xf32>
    %22 = arith.mulf %20, %21 : vector<24x16xf32>
    %23 = arith.addf %14, %22 : vector<24x16xf32>
    %c0_11 = arith.constant 0 : index
    %c1_12 = arith.constant 1 : index
    %24 = arith.index_cast %8 : i32 to index
    %c0_13 = arith.constant 0 : index
    %25 = vector.load %arg2[%c0_11, %c1_12, %24, %c0_13] : memref<1x4x16x16xf32, #tpu.memory_space<vmem>>, vector<1x1x1x16xf32>
    %26 = vector.shape_cast %25 : vector<1x1x1x16xf32> to vector<1x16xf32>
    %c1_14 = arith.constant 1 : index
    %c0_15 = arith.constant 0 : index
    %c0_16 = arith.constant 0 : index
    %27 = vector.load %arg3[%c1_14, %c0_15, %c0_16] : memref<4x24x1xf32, #tpu.memory_space<vmem>>, vector<1x24x1xf32>
    %28 = vector.shape_cast %27 : vector<1x24x1xf32> to vector<24x1xf32>
    %29 = vector.broadcast %28 : vector<24x1xf32> to vector<24x16xf32>
    %30 = vector.broadcast %26 : vector<1x16xf32> to vector<24x16xf32>
    %31 = arith.mulf %29, %30 : vector<24x16xf32>
    %32 = arith.addf %23, %31 : vector<24x16xf32>
    %c0_17 = arith.constant 0 : index
    %c2 = arith.constant 2 : index
    %33 = arith.index_cast %8 : i32 to index
    %c0_18 = arith.constant 0 : index
    %34 = vector.load %arg2[%c0_17, %c2, %33, %c0_18] : memref<1x4x16x16xf32, #tpu.memory_space<vmem>>, vector<1x1x1x16xf32>
    %35 = vector.shape_cast %34 : vector<1x1x1x16xf32> to vector<1x16xf32>
    %c2_19 = arith.constant 2 : index
    %c0_20 = arith.constant 0 : index
    %c0_21 = arith.constant 0 : index
    %36 = vector.load %arg3[%c2_19, %c0_20, %c0_21] : memref<4x24x1xf32, #tpu.memory_space<vmem>>, vector<1x24x1xf32>
    %37 = vector.shape_cast %36 : vector<1x24x1xf32> to vector<24x1xf32>
    %38 = vector.broadcast %37 : vector<24x1xf32> to vector<24x16xf32>
    %39 = vector.broadcast %35 : vector<1x16xf32> to vector<24x16xf32>
    %40 = arith.mulf %38, %39 : vector<24x16xf32>
    %41 = arith.addf %32, %40 : vector<24x16xf32>
    %c0_22 = arith.constant 0 : index
    %c3 = arith.constant 3 : index
    %42 = arith.index_cast %8 : i32 to index
    %c0_23 = arith.constant 0 : index
    %43 = vector.load %arg2[%c0_22, %c3, %42, %c0_23] : memref<1x4x16x16xf32, #tpu.memory_space<vmem>>, vector<1x1x1x16xf32>
    %44 = vector.shape_cast %43 : vector<1x1x1x16xf32> to vector<1x16xf32>
    %c3_24 = arith.constant 3 : index
    %c0_25 = arith.constant 0 : index
    %c0_26 = arith.constant 0 : index
    %45 = vector.load %arg3[%c3_24, %c0_25, %c0_26] : memref<4x24x1xf32, #tpu.memory_space<vmem>>, vector<1x24x1xf32>
    %46 = vector.shape_cast %45 : vector<1x24x1xf32> to vector<24x1xf32>
    %47 = vector.broadcast %46 : vector<24x1xf32> to vector<24x16xf32>
    %48 = vector.broadcast %44 : vector<1x16xf32> to vector<24x16xf32>
    %49 = arith.mulf %47, %48 : vector<24x16xf32>
    %50 = arith.addf %41, %49 : vector<24x16xf32>
    %c0_27 = arith.constant 0 : index
    %c0_28 = arith.constant 0 : index
    %51 = vector.load %arg4[%c0_27, %c0_28] : memref<24x1xf32, #tpu.memory_space<vmem>>, vector<24x1xf32>
    %52 = vector.broadcast %51 : vector<24x1xf32> to vector<24x16xf32>
    %53 = arith.addf %50, %52 : vector<24x16xf32>
    %cst_29 = arith.constant 0.000000e+00 : f32
    %54 = vector.broadcast %cst_29 : f32 to vector<24x16xf32>
    %55 = arith.cmpf oge, %53, %54 : vector<24x16xf32>
    %56 = vector.broadcast %2 : f32 to vector<24x16xf32>
    %57 = arith.mulf %56, %53 : vector<24x16xf32>
    %58 = arith.select %55, %53, %57 : vector<24x16xi1>, vector<24x16xf32>
    %59 = vector.broadcast %13 : f32 to vector<24x16xf32>
    %60 = arith.mulf %58, %59 : vector<24x16xf32>
    %c0_30 = arith.constant 0 : index
    %c1_31 = arith.constant 1 : index
    %61 = vector.load %arg11[%c0_30, %c1_31] : memref<24x162xf32, #tpu.memory_space<vmem>>, vector<24x16xf32>
    tpu.vector_store %arg11[%c0_30, %c1_31], %60 {strides = array<i32>} : memref<24x162xf32, #tpu.memory_space<vmem>>, vector<24x16xf32>,
    %c1_i32_32 = arith.constant 1 : i32
    %62 = arith.addi %1, %c1_i32_32 : i32
    %c0_i32_33 = arith.constant 0 : i32
    %c15_i32_34 = arith.constant 15 : i32
    %63 = arith.maxsi %c0_i32_33, %62 : i32
    %64 = arith.minsi %c15_i32_34, %63 : i32
    %c0_i32_35 = arith.constant 0 : i32
    %65 = arith.cmpi sge, %62, %c0_i32_35 : i32
    %c16_i32_36 = arith.constant 16 : i32
    %66 = arith.cmpi slt, %62, %c16_i32_36 : i32
    %67 = arith.andi %65, %66 : i1
    %68 = arith.extui %67 : i1 to i32
    %69 = arith.sitofp %68 : i32 to f32
    %cst_37 = arith.constant 0.000000e+00 : f32
    %70 = vector.broadcast %cst_37 : f32 to vector<24x16xf32>
    %c0_38 = arith.constant 0 : index
    %c0_39 = arith.constant 0 : index
    %71 = arith.index_cast %64 : i32 to index
    %c0_40 = arith.constant 0 : index
    %72 = vector.load %arg2[%c0_38, %c0_39, %71, %c0_40] : memref<1x4x16x16xf32, #tpu.memory_space<vmem>>, vector<1x1x1x16xf32>
    %73 = vector.shape_cast %72 : vector<1x1x1x16xf32> to vector<1x16xf32>
    %c0_41 = arith.constant 0 : index
    %c0_42 = arith.constant 0 : index
    %c0_43 = arith.constant 0 : index
    %74 = vector.load %arg3[%c0_41, %c0_42, %c0_43] : memref<4x24x1xf32, #tpu.memory_space<vmem>>, vector<1x24x1xf32>
    %75 = vector.shape_cast %74 : vector<1x24x1xf32> to vector<24x1xf32>
    %76 = vector.broadcast %75 : vector<24x1xf32> to vector<24x16xf32>
    %77 = vector.broadcast %73 : vector<1x16xf32> to vector<24x16xf32>
    %78 = arith.mulf %76, %77 : vector<24x16xf32>
    %79 = arith.addf %70, %78 : vector<24x16xf32>
    %c0_44 = arith.constant 0 : index
    %c0_45 = arith.constant 0 : index
    %80 = vector.load %arg12[%c0_44, %c0_45] : memref<4x128xf32, #tpu.memory_space<vmem>>, vector<1x16xf32>
    tpu.vector_store %arg12[%c0_44, %c0_45], %73 {strides = array<i32>} : memref<4x128xf32, #tpu.memory_space<vmem>>, vector<1x16xf32>,
    %c0_46 = arith.constant 0 : index
    %c1_47 = arith.constant 1 : index
    %81 = arith.index_cast %64 : i32 to index
    %c0_48 = arith.constant 0 : index
    %82 = vector.load %arg2[%c0_46, %c1_47, %81, %c0_48] : memref<1x4x16x16xf32, #tpu.memory_space<vmem>>, vector<1x1x1x16xf32>
    %83 = vector.shape_cast %82 : vector<1x1x1x16xf32> to vector<1x16xf32>
    %c1_49 = arith.constant 1 : index
    %c0_50 = arith.constant 0 : index
    %c0_51 = arith.constant 0 : index
    %84 = vector.load %arg3[%c1_49, %c0_50, %c0_51] : memref<4x24x1xf32, #tpu.memory_space<vmem>>, vector<1x24x1xf32>
    %85 = vector.shape_cast %84 : vector<1x24x1xf32> to vector<24x1xf32>
    %86 = vector.broadcast %85 : vector<24x1xf32> to vector<24x16xf32>
    %87 = vector.broadcast %83 : vector<1x16xf32> to vector<24x16xf32>
    %88 = arith.mulf %86, %87 : vector<24x16xf32>
    %89 = arith.addf %79, %88 : vector<24x16xf32>
    %c1_52 = arith.constant 1 : index
    %c0_53 = arith.constant 0 : index
    %90 = vector.load %arg12[%c1_52, %c0_53] : memref<4x128xf32, #tpu.memory_space<vmem>>, vector<1x16xf32>
    tpu.vector_store %arg12[%c1_52, %c0_53], %83 {strides = array<i32>} : memref<4x128xf32, #tpu.memory_space<vmem>>, vector<1x16xf32>,
    %c0_54 = arith.constant 0 : index
    %c2_55 = arith.constant 2 : index
    %91 = arith.index_cast %64 : i32 to index
    %c0_56 = arith.constant 0 : index
    %92 = vector.load %arg2[%c0_54, %c2_55, %91, %c0_56] : memref<1x4x16x16xf32, #tpu.memory_space<vmem>>, vector<1x1x1x16xf32>
    %93 = vector.shape_cast %92 : vector<1x1x1x16xf32> to vector<1x16xf32>
    %c2_57 = arith.constant 2 : index
    %c0_58 = arith.constant 0 : index
    %c0_59 = arith.constant 0 : index
    %94 = vector.load %arg3[%c2_57, %c0_58, %c0_59] : memref<4x24x1xf32, #tpu.memory_space<vmem>>, vector<1x24x1xf32>
    %95 = vector.shape_cast %94 : vector<1x24x1xf32> to vector<24x1xf32>
    %96 = vector.broadcast %95 : vector<24x1xf32> to vector<24x16xf32>
    %97 = vector.broadcast %93 : vector<1x16xf32> to vector<24x16xf32>
    %98 = arith.mulf %96, %97 : vector<24x16xf32>
    %99 = arith.addf %89, %98 : vector<24x16xf32>
    %c2_60 = arith.constant 2 : index
    %c0_61 = arith.constant 0 : index
    %100 = vector.load %arg12[%c2_60, %c0_61] : memref<4x128xf32, #tpu.memory_space<vmem>>, vector<1x16xf32>
    tpu.vector_store %arg12[%c2_60, %c0_61], %93 {strides = array<i32>} : memref<4x128xf32, #tpu.memory_space<vmem>>, vector<1x16xf32>,
    %c0_62 = arith.constant 0 : index
    %c3_63 = arith.constant 3 : index
    %101 = arith.index_cast %64 : i32 to index
    %c0_64 = arith.constant 0 : index
    %102 = vector.load %arg2[%c0_62, %c3_63, %101, %c0_64] : memref<1x4x16x16xf32, #tpu.memory_space<vmem>>, vector<1x1x1x16xf32>
    %103 = vector.shape_cast %102 : vector<1x1x1x16xf32> to vector<1x16xf32>
    %c3_65 = arith.constant 3 : index
    %c0_66 = arith.constant 0 : index
    %c0_67 = arith.constant 0 : index
    %104 = vector.load %arg3[%c3_65, %c0_66, %c0_67] : memref<4x24x1xf32, #tpu.memory_space<vmem>>, vector<1x24x1xf32>
    %105 = vector.shape_cast %104 : vector<1x24x1xf32> to vector<24x1xf32>
    %106 = vector.broadcast %105 : vector<24x1xf32> to vector<24x16xf32>
    %107 = vector.broadcast %103 : vector<1x16xf32> to vector<24x16xf32>
    %108 = arith.mulf %106, %107 : vector<24x16xf32>
    %109 = arith.addf %99, %108 : vector<24x16xf32>
    %c3_68 = arith.constant 3 : index
    %c0_69 = arith.constant 0 : index
    %110 = vector.load %arg12[%c3_68, %c0_69] : memref<4x128xf32, #tpu.memory_space<vmem>>, vector<1x16xf32>
    tpu.vector_store %arg12[%c3_68, %c0_69], %103 {strides = array<i32>} : memref<4x128xf32, #tpu.memory_space<vmem>>, vector<1x16xf32>,
    %c0_70 = arith.constant 0 : index
    %c0_71 = arith.constant 0 : index
    %111 = vector.load %arg4[%c0_70, %c0_71] : memref<24x1xf32, #tpu.memory_space<vmem>>, vector<24x1xf32>
    %112 = vector.broadcast %111 : vector<24x1xf32> to vector<24x16xf32>
    %113 = arith.addf %109, %112 : vector<24x16xf32>
    %cst_72 = arith.constant 0.000000e+00 : f32
    %114 = vector.broadcast %cst_72 : f32 to vector<24x16xf32>
    %115 = arith.cmpf oge, %113, %114 : vector<24x16xf32>
    %116 = vector.broadcast %2 : f32 to vector<24x16xf32>
    %117 = arith.mulf %116, %113 : vector<24x16xf32>
    %118 = arith.select %115, %113, %117 : vector<24x16xi1>, vector<24x16xf32>
    %119 = vector.broadcast %69 : f32 to vector<24x16xf32>
    %120 = arith.mulf %118, %119 : vector<24x16xf32>
    %c0_73 = arith.constant 0 : index
    %c17 = arith.constant 17 : index
    %121 = vector.load %arg11[%c0_73, %c17] : memref<24x162xf32, #tpu.memory_space<vmem>>, vector<24x16xf32>
    tpu.vector_store %arg11[%c0_73, %c17], %120 {strides = array<i32>} : memref<24x162xf32, #tpu.memory_space<vmem>>, vector<24x16xf32>,
    %c2_i32 = arith.constant 2 : i32
    %122 = arith.addi %1, %c2_i32 : i32
    %c0_i32_74 = arith.constant 0 : i32
    %c15_i32_75 = arith.constant 15 : i32
    %123 = arith.maxsi %c0_i32_74, %122 : i32
    %124 = arith.minsi %c15_i32_75, %123 : i32
    %c0_i32_76 = arith.constant 0 : i32
    %125 = arith.cmpi sge, %122, %c0_i32_76 : i32
    %c16_i32_77 = arith.constant 16 : i32
    %126 = arith.cmpi slt, %122, %c16_i32_77 : i32
    %127 = arith.andi %125, %126 : i1
    %128 = arith.extui %127 : i1 to i32
    %129 = arith.sitofp %128 : i32 to f32
    %cst_78 = arith.constant 0.000000e+00 : f32
    %130 = vector.broadcast %cst_78 : f32 to vector<24x16xf32>
    %c0_79 = arith.constant 0 : index
    %c0_80 = arith.constant 0 : index
    %131 = arith.index_cast %124 : i32 to index
    %c0_81 = arith.constant 0 : index
    %132 = vector.load %arg2[%c0_79, %c0_80, %131, %c0_81] : memref<1x4x16x16xf32, #tpu.memory_space<vmem>>, vector<1x1x1x16xf32>
    %133 = vector.shape_cast %132 : vector<1x1x1x16xf32> to vector<1x16xf32>
    %c0_82 = arith.constant 0 : index
    %c0_83 = arith.constant 0 : index
    %c0_84 = arith.constant 0 : index
    %134 = vector.load %arg3[%c0_82, %c0_83, %c0_84] : memref<4x24x1xf32, #tpu.memory_space<vmem>>, vector<1x24x1xf32>
    %135 = vector.shape_cast %134 : vector<1x24x1xf32> to vector<24x1xf32>
    %136 = vector.broadcast %135 : vector<24x1xf32> to vector<24x16xf32>
    %137 = vector.broadcast %133 : vector<1x16xf32> to vector<24x16xf32>
    %138 = arith.mulf %136, %137 : vector<24x16xf32>
    %139 = arith.addf %130, %138 : vector<24x16xf32>
    %c0_85 = arith.constant 0 : index
    %c16 = arith.constant 16 : index
    %140 = vector.load %arg12[%c0_85, %c16] : memref<4x128xf32, #tpu.memory_space<vmem>>, vector<1x16xf32>
    tpu.vector_store %arg12[%c0_85, %c16], %133 {strides = array<i32>} : memref<4x128xf32, #tpu.memory_space<vmem>>, vector<1x16xf32>,
    %c0_86 = arith.constant 0 : index
    %c1_87 = arith.constant 1 : index
    %141 = arith.index_cast %124 : i32 to index
    %c0_88 = arith.constant 0 : index
    %142 = vector.load %arg2[%c0_86, %c1_87, %141, %c0_88] : memref<1x4x16x16xf32, #tpu.memory_space<vmem>>, vector<1x1x1x16xf32>
    %143 = vector.shape_cast %142 : vector<1x1x1x16xf32> to vector<1x16xf32>
    %c1_89 = arith.constant 1 : index
    %c0_90 = arith.constant 0 : index
    %c0_91 = arith.constant 0 : index
    %144 = vector.load %arg3[%c1_89, %c0_90, %c0_91] : memref<4x24x1xf32, #tpu.memory_space<vmem>>, vector<1x24x1xf32>
    %145 = vector.shape_cast %144 : vector<1x24x1xf32> to vector<24x1xf32>
    %146 = vector.broadcast %145 : vector<24x1xf32> to vector<24x16xf32>
    %147 = vector.broadcast %143 : vector<1x16xf32> to vector<24x16xf32>
    %148 = arith.mulf %146, %147 : vector<24x16xf32>
    %149 = arith.addf %139, %148 : vector<24x16xf32>
    %c1_92 = arith.constant 1 : index
    %c16_93 = arith.constant 16 : index
    %150 = vector.load %arg12[%c1_92, %c16_93] : memref<4x128xf32, #tpu.memory_space<vmem>>, vector<1x16xf32>
    tpu.vector_store %arg12[%c1_92, %c16_93], %143 {strides = array<i32>} : memref<4x128xf32, #tpu.memory_space<vmem>>, vector<1x16xf32>,
    %c0_94 = arith.constant 0 : index
    %c2_95 = arith.constant 2 : index
    %151 = arith.index_cast %124 : i32 to index
    %c0_96 = arith.constant 0 : index
    %152 = vector.load %arg2[%c0_94, %c2_95, %151, %c0_96] : memref<1x4x16x16xf32, #tpu.memory_space<vmem>>, vector<1x1x1x16xf32>
    %153 = vector.shape_cast %152 : vector<1x1x1x16xf32> to vector<1x16xf32>
    %c2_97 = arith.constant 2 : index
    %c0_98 = arith.constant 0 : index
    %c0_99 = arith.constant 0 : index
    %154 = vector.load %arg3[%c2_97, %c0_98, %c0_99] : memref<4x24x1xf32, #tpu.memory_space<vmem>>, vector<1x24x1xf32>
    %155 = vector.shape_cast %154 : vector<1x24x1xf32> to vector<24x1xf32>
    %156 = vector.broadcast %155 : vector<24x1xf32> to vector<24x16xf32>
    %157 = vector.broadcast %153 : vector<1x16xf32> to vector<24x16xf32>
    %158 = arith.mulf %156, %157 : vector<24x16xf32>
    %159 = arith.addf %149, %158 : vector<24x16xf32>
    %c2_100 = arith.constant 2 : index
    %c16_101 = arith.constant 16 : index
    %160 = vector.load %arg12[%c2_100, %c16_101] : memref<4x128xf32, #tpu.memory_space<vmem>>, vector<1x16xf32>
    tpu.vector_store %arg12[%c2_100, %c16_101], %153 {strides = array<i32>} : memref<4x128xf32, #tpu.memory_space<vmem>>, vector<1x16xf32>,
    %c0_102 = arith.constant 0 : index
    %c3_103 = arith.constant 3 : index
    %161 = arith.index_cast %124 : i32 to index
    %c0_104 = arith.constant 0 : index
    %162 = vector.load %arg2[%c0_102, %c3_103, %161, %c0_104] : memref<1x4x16x16xf32, #tpu.memory_space<vmem>>, vector<1x1x1x16xf32>
    %163 = vector.shape_cast %162 : vector<1x1x1x16xf32> to vector<1x16xf32>
    %c3_105 = arith.constant 3 : index
    %c0_106 = arith.constant 0 : index
    %c0_107 = arith.constant 0 : index
    %164 = vector.load %arg3[%c3_105, %c0_106, %c0_107] : memref<4x24x1xf32, #tpu.memory_space<vmem>>, vector<1x24x1xf32>
    %165 = vector.shape_cast %164 : vector<1x24x1xf32> to vector<24x1xf32>
    %166 = vector.broadcast %165 : vector<24x1xf32> to vector<24x16xf32>
    %167 = vector.broadcast %163 : vector<1x16xf32> to vector<24x16xf32>
    %168 = arith.mulf %166, %167 : vector<24x16xf32>
    %169 = arith.addf %159, %168 : vector<24x16xf32>
    %c3_108 = arith.constant 3 : index
    %c16_109 = arith.constant 16 : index
    %170 = vector.load %arg12[%c3_108, %c16_109] : memref<4x128xf32, #tpu.memory_space<vmem>>, vector<1x16xf32>
    tpu.vector_store %arg12[%c3_108, %c16_109], %163 {strides = array<i32>} : memref<4x128xf32, #tpu.memory_space<vmem>>, vector<1x16xf32>,
    %c0_110 = arith.constant 0 : index
    %c0_111 = arith.constant 0 : index
    %171 = vector.load %arg4[%c0_110, %c0_111] : memref<24x1xf32, #tpu.memory_space<vmem>>, vector<24x1xf32>
    %172 = vector.broadcast %171 : vector<24x1xf32> to vector<24x16xf32>
    %173 = arith.addf %169, %172 : vector<24x16xf32>
    %cst_112 = arith.constant 0.000000e+00 : f32
    %174 = vector.broadcast %cst_112 : f32 to vector<24x16xf32>
    %175 = arith.cmpf oge, %173, %174 : vector<24x16xf32>
    %176 = vector.broadcast %2 : f32 to vector<24x16xf32>
    %177 = arith.mulf %176, %173 : vector<24x16xf32>
    %178 = arith.select %175, %173, %177 : vector<24x16xi1>, vector<24x16xf32>
    %179 = vector.broadcast %129 : f32 to vector<24x16xf32>
    %180 = arith.mulf %178, %179 : vector<24x16xf32>
    %c0_113 = arith.constant 0 : index
    %c33 = arith.constant 33 : index
    %181 = vector.load %arg11[%c0_113, %c33] : memref<24x162xf32, #tpu.memory_space<vmem>>, vector<24x16xf32>
    tpu.vector_store %arg11[%c0_113, %c33], %180 {strides = array<i32>} : memref<24x162xf32, #tpu.memory_space<vmem>>, vector<24x16xf32>,
    %c3_i32 = arith.constant 3 : i32
    %182 = arith.addi %1, %c3_i32 : i32
    %c0_i32_114 = arith.constant 0 : i32
    %c15_i32_115 = arith.constant 15 : i32
    %183 = arith.maxsi %c0_i32_114, %182 : i32
    %184 = arith.minsi %c15_i32_115, %183 : i32
    %c0_i32_116 = arith.constant 0 : i32
    %185 = arith.cmpi sge, %182, %c0_i32_116 : i32
    %c16_i32_117 = arith.constant 16 : i32
    %186 = arith.cmpi slt, %182, %c16_i32_117 : i32
    %187 = arith.andi %185, %186 : i1
    %188 = arith.extui %187 : i1 to i32
    %189 = arith.sitofp %188 : i32 to f32
    %cst_118 = arith.constant 0.000000e+00 : f32
    %190 = vector.broadcast %cst_118 : f32 to vector<24x16xf32>
    %c0_119 = arith.constant 0 : index
    %c0_120 = arith.constant 0 : index
    %191 = arith.index_cast %184 : i32 to index
    %c0_121 = arith.constant 0 : index
    %192 = vector.load %arg2[%c0_119, %c0_120, %191, %c0_121] : memref<1x4x16x16xf32, #tpu.memory_space<vmem>>, vector<1x1x1x16xf32>
    %193 = vector.shape_cast %192 : vector<1x1x1x16xf32> to vector<1x16xf32>
    %c0_122 = arith.constant 0 : index
    %c0_123 = arith.constant 0 : index
    %c0_124 = arith.constant 0 : index
    %194 = vector.load %arg3[%c0_122, %c0_123, %c0_124] : memref<4x24x1xf32, #tpu.memory_space<vmem>>, vector<1x24x1xf32>
    %195 = vector.shape_cast %194 : vector<1x24x1xf32> to vector<24x1xf32>
    %196 = vector.broadcast %195 : vector<24x1xf32> to vector<24x16xf32>
    %197 = vector.broadcast %193 : vector<1x16xf32> to vector<24x16xf32>
    %198 = arith.mulf %196, %197 : vector<24x16xf32>
    %199 = arith.addf %190, %198 : vector<24x16xf32>
    %c0_125 = arith.constant 0 : index
    %c32 = arith.constant 32 : index
    %200 = vector.load %arg12[%c0_125, %c32] : memref<4x128xf32, #tpu.memory_space<vmem>>, vector<1x16xf32>
    tpu.vector_store %arg12[%c0_125, %c32], %193 {strides = array<i32>} : memref<4x128xf32, #tpu.memory_space<vmem>>, vector<1x16xf32>,
    %c0_126 = arith.constant 0 : index
    %c1_127 = arith.constant 1 : index
    %201 = arith.index_cast %184 : i32 to index
    %c0_128 = arith.constant 0 : index
    %202 = vector.load %arg2[%c0_126, %c1_127, %201, %c0_128] : memref<1x4x16x16xf32, #tpu.memory_space<vmem>>, vector<1x1x1x16xf32>
    %203 = vector.shape_cast %202 : vector<1x1x1x16xf32> to vector<1x16xf32>
    %c1_129 = arith.constant 1 : index
    %c0_130 = arith.constant 0 : index
    %c0_131 = arith.constant 0 : index
    %204 = vector.load %arg3[%c1_129, %c0_130, %c0_131] : memref<4x24x1xf32, #tpu.memory_space<vmem>>, vector<1x24x1xf32>
    %205 = vector.shape_cast %204 : vector<1x24x1xf32> to vector<24x1xf32>
    %206 = vector.broadcast %205 : vector<24x1xf32> to vector<24x16xf32>
    %207 = vector.broadcast %203 : vector<1x16xf32> to vector<24x16xf32>
    %208 = arith.mulf %206, %207 : vector<24x16xf32>
    %209 = arith.addf %199, %208 : vector<24x16xf32>
    %c1_132 = arith.constant 1 : index
    %c32_133 = arith.constant 32 : index
    %210 = vector.load %arg12[%c1_132, %c32_133] : memref<4x128xf32, #tpu.memory_space<vmem>>, vector<1x16xf32>
    tpu.vector_store %arg12[%c1_132, %c32_133], %203 {strides = array<i32>} : memref<4x128xf32, #tpu.memory_space<vmem>>, vector<1x16xf32>,
    %c0_134 = arith.constant 0 : index
    %c2_135 = arith.constant 2 : index
    %211 = arith.index_cast %184 : i32 to index
    %c0_136 = arith.constant 0 : index
    %212 = vector.load %arg2[%c0_134, %c2_135, %211, %c0_136] : memref<1x4x16x16xf32, #tpu.memory_space<vmem>>, vector<1x1x1x16xf32>
    %213 = vector.shape_cast %212 : vector<1x1x1x16xf32> to vector<1x16xf32>
    %c2_137 = arith.constant 2 : index
    %c0_138 = arith.constant 0 : index
    %c0_139 = arith.constant 0 : index
    %214 = vector.load %arg3[%c2_137, %c0_138, %c0_139] : memref<4x24x1xf32, #tpu.memory_space<vmem>>, vector<1x24x1xf32>
    %215 = vector.shape_cast %214 : vector<1x24x1xf32> to vector<24x1xf32>
    %216 = vector.broadcast %215 : vector<24x1xf32> to vector<24x16xf32>
    %217 = vector.broadcast %213 : vector<1x16xf32> to vector<24x16xf32>
    %218 = arith.mulf %216, %217 : vector<24x16xf32>
    %219 = arith.addf %209, %218 : vector<24x16xf32>
    %c2_140 = arith.constant 2 : index
    %c32_141 = arith.constant 32 : index
    %220 = vector.load %arg12[%c2_140, %c32_141] : memref<4x128xf32, #tpu.memory_space<vmem>>, vector<1x16xf32>
    tpu.vector_store %arg12[%c2_140, %c32_141], %213 {strides = array<i32>} : memref<4x128xf32, #tpu.memory_space<vmem>>, vector<1x16xf32>,
    %c0_142 = arith.constant 0 : index
    %c3_143 = arith.constant 3 : index
    %221 = arith.index_cast %184 : i32 to index
    %c0_144 = arith.constant 0 : index
    %222 = vector.load %arg2[%c0_142, %c3_143, %221, %c0_144] : memref<1x4x16x16xf32, #tpu.memory_space<vmem>>, vector<1x1x1x16xf32>
    %223 = vector.shape_cast %222 : vector<1x1x1x16xf32> to vector<1x16xf32>
    %c3_145 = arith.constant 3 : index
    %c0_146 = arith.constant 0 : index
    %c0_147 = arith.constant 0 : index
    %224 = vector.load %arg3[%c3_145, %c0_146, %c0_147] : memref<4x24x1xf32, #tpu.memory_space<vmem>>, vector<1x24x1xf32>
    %225 = vector.shape_cast %224 : vector<1x24x1xf32> to vector<24x1xf32>
    %226 = vector.broadcast %225 : vector<24x1xf32> to vector<24x16xf32>
    %227 = vector.broadcast %223 : vector<1x16xf32> to vector<24x16xf32>
    %228 = arith.mulf %226, %227 : vector<24x16xf32>
    %229 = arith.addf %219, %228 : vector<24x16xf32>
    %c3_148 = arith.constant 3 : index
    %c32_149 = arith.constant 32 : index
    %230 = vector.load %arg12[%c3_148, %c32_149] : memref<4x128xf32, #tpu.memory_space<vmem>>, vector<1x16xf32>
    tpu.vector_store %arg12[%c3_148, %c32_149], %223 {strides = array<i32>} : memref<4x128xf32, #tpu.memory_space<vmem>>, vector<1x16xf32>,
    %c0_150 = arith.constant 0 : index
    %c0_151 = arith.constant 0 : index
    %231 = vector.load %arg4[%c0_150, %c0_151] : memref<24x1xf32, #tpu.memory_space<vmem>>, vector<24x1xf32>
    %232 = vector.broadcast %231 : vector<24x1xf32> to vector<24x16xf32>
    %233 = arith.addf %229, %232 : vector<24x16xf32>
    %cst_152 = arith.constant 0.000000e+00 : f32
    %234 = vector.broadcast %cst_152 : f32 to vector<24x16xf32>
    %235 = arith.cmpf oge, %233, %234 : vector<24x16xf32>
    %236 = vector.broadcast %2 : f32 to vector<24x16xf32>
    %237 = arith.mulf %236, %233 : vector<24x16xf32>
    %238 = arith.select %235, %233, %237 : vector<24x16xi1>, vector<24x16xf32>
    %239 = vector.broadcast %189 : f32 to vector<24x16xf32>
    %240 = arith.mulf %238, %239 : vector<24x16xf32>
    %c0_153 = arith.constant 0 : index
    %c49 = arith.constant 49 : index
    %241 = vector.load %arg11[%c0_153, %c49] : memref<24x162xf32, #tpu.memory_space<vmem>>, vector<24x16xf32>
    tpu.vector_store %arg11[%c0_153, %c49], %240 {strides = array<i32>} : memref<24x162xf32, #tpu.memory_space<vmem>>, vector<24x16xf32>,
    %c4_i32 = arith.constant 4 : i32
    %242 = arith.addi %1, %c4_i32 : i32
    %c0_i32_154 = arith.constant 0 : i32
    %c15_i32_155 = arith.constant 15 : i32
    %243 = arith.maxsi %c0_i32_154, %242 : i32
    %244 = arith.minsi %c15_i32_155, %243 : i32
    %c0_i32_156 = arith.constant 0 : i32
    %245 = arith.cmpi sge, %242, %c0_i32_156 : i32
    %c16_i32_157 = arith.constant 16 : i32
    %246 = arith.cmpi slt, %242, %c16_i32_157 : i32
    %247 = arith.andi %245, %246 : i1
    %248 = arith.extui %247 : i1 to i32
    %249 = arith.sitofp %248 : i32 to f32
    %cst_158 = arith.constant 0.000000e+00 : f32
    %250 = vector.broadcast %cst_158 : f32 to vector<24x16xf32>
    %c0_159 = arith.constant 0 : index
    %c0_160 = arith.constant 0 : index
    %251 = arith.index_cast %244 : i32 to index
    %c0_161 = arith.constant 0 : index
    %252 = vector.load %arg2[%c0_159, %c0_160, %251, %c0_161] : memref<1x4x16x16xf32, #tpu.memory_space<vmem>>, vector<1x1x1x16xf32>
    %253 = vector.shape_cast %252 : vector<1x1x1x16xf32> to vector<1x16xf32>
    %c0_162 = arith.constant 0 : index
    %c0_163 = arith.constant 0 : index
    %c0_164 = arith.constant 0 : index
    %254 = vector.load %arg3[%c0_162, %c0_163, %c0_164] : memref<4x24x1xf32, #tpu.memory_space<vmem>>, vector<1x24x1xf32>
    %255 = vector.shape_cast %254 : vector<1x24x1xf32> to vector<24x1xf32>
    %256 = vector.broadcast %255 : vector<24x1xf32> to vector<24x16xf32>
    %257 = vector.broadcast %253 : vector<1x16xf32> to vector<24x16xf32>
    %258 = arith.mulf %256, %257 : vector<24x16xf32>
    %259 = arith.addf %250, %258 : vector<24x16xf32>
    %c0_165 = arith.constant 0 : index
    %c48 = arith.constant 48 : index
    %260 = vector.load %arg12[%c0_165, %c48] : memref<4x128xf32, #tpu.memory_space<vmem>>, vector<1x16xf32>
    tpu.vector_store %arg12[%c0_165, %c48], %253 {strides = array<i32>} : memref<4x128xf32, #tpu.memory_space<vmem>>, vector<1x16xf32>,
    %c0_166 = arith.constant 0 : index
    %c1_167 = arith.constant 1 : index
    %261 = arith.index_cast %244 : i32 to index
    %c0_168 = arith.constant 0 : index
    %262 = vector.load %arg2[%c0_166, %c1_167, %261, %c0_168] : memref<1x4x16x16xf32, #tpu.memory_space<vmem>>, vector<1x1x1x16xf32>
    %263 = vector.shape_cast %262 : vector<1x1x1x16xf32> to vector<1x16xf32>
    %c1_169 = arith.constant 1 : index
    %c0_170 = arith.constant 0 : index
    %c0_171 = arith.constant 0 : index
    %264 = vector.load %arg3[%c1_169, %c0_170, %c0_171] : memref<4x24x1xf32, #tpu.memory_space<vmem>>, vector<1x24x1xf32>
    %265 = vector.shape_cast %264 : vector<1x24x1xf32> to vector<24x1xf32>
    %266 = vector.broadcast %265 : vector<24x1xf32> to vector<24x16xf32>
    %267 = vector.broadcast %263 : vector<1x16xf32> to vector<24x16xf32>
    %268 = arith.mulf %266, %267 : vector<24x16xf32>
    %269 = arith.addf %259, %268 : vector<24x16xf32>
    %c1_172 = arith.constant 1 : index
    %c48_173 = arith.constant 48 : index
    %270 = vector.load %arg12[%c1_172, %c48_173] : memref<4x128xf32, #tpu.memory_space<vmem>>, vector<1x16xf32>
    tpu.vector_store %arg12[%c1_172, %c48_173], %263 {strides = array<i32>} : memref<4x128xf32, #tpu.memory_space<vmem>>, vector<1x16xf32>,
    %c0_174 = arith.constant 0 : index
    %c2_175 = arith.constant 2 : index
    %271 = arith.index_cast %244 : i32 to index
    %c0_176 = arith.constant 0 : index
    %272 = vector.load %arg2[%c0_174, %c2_175, %271, %c0_176] : memref<1x4x16x16xf32, #tpu.memory_space<vmem>>, vector<1x1x1x16xf32>
    %273 = vector.shape_cast %272 : vector<1x1x1x16xf32> to vector<1x16xf32>
    %c2_177 = arith.constant 2 : index
    %c0_178 = arith.constant 0 : index
    %c0_179 = arith.constant 0 : index
    %274 = vector.load %arg3[%c2_177, %c0_178, %c0_179] : memref<4x24x1xf32, #tpu.memory_space<vmem>>, vector<1x24x1xf32>
    %275 = vector.shape_cast %274 : vector<1x24x1xf32> to vector<24x1xf32>
    %276 = vector.broadcast %275 : vector<24x1xf32> to vector<24x16xf32>
    %277 = vector.broadcast %273 : vector<1x16xf32> to vector<24x16xf32>
    %278 = arith.mulf %276, %277 : vector<24x16xf32>
    %279 = arith.addf %269, %278 : vector<24x16xf32>
    %c2_180 = arith.constant 2 : index
    %c48_181 = arith.constant 48 : index
    %280 = vector.load %arg12[%c2_180, %c48_181] : memref<4x128xf32, #tpu.memory_space<vmem>>, vector<1x16xf32>
    tpu.vector_store %arg12[%c2_180, %c48_181], %273 {strides = array<i32>} : memref<4x128xf32, #tpu.memory_space<vmem>>, vector<1x16xf32>,
    %c0_182 = arith.constant 0 : index
    %c3_183 = arith.constant 3 : index
    %281 = arith.index_cast %244 : i32 to index
    %c0_184 = arith.constant 0 : index
    %282 = vector.load %arg2[%c0_182, %c3_183, %281, %c0_184] : memref<1x4x16x16xf32, #tpu.memory_space<vmem>>, vector<1x1x1x16xf32>
    %283 = vector.shape_cast %282 : vector<1x1x1x16xf32> to vector<1x16xf32>
    %c3_185 = arith.constant 3 : index
    %c0_186 = arith.constant 0 : index
    %c0_187 = arith.constant 0 : index
    %284 = vector.load %arg3[%c3_185, %c0_186, %c0_187] : memref<4x24x1xf32, #tpu.memory_space<vmem>>, vector<1x24x1xf32>
    %285 = vector.shape_cast %284 : vector<1x24x1xf32> to vector<24x1xf32>
    %286 = vector.broadcast %285 : vector<24x1xf32> to vector<24x16xf32>
    %287 = vector.broadcast %283 : vector<1x16xf32> to vector<24x16xf32>
    %288 = arith.mulf %286, %287 : vector<24x16xf32>
    %289 = arith.addf %279, %288 : vector<24x16xf32>
    %c3_188 = arith.constant 3 : index
    %c48_189 = arith.constant 48 : index
    %290 = vector.load %arg12[%c3_188, %c48_189] : memref<4x128xf32, #tpu.memory_space<vmem>>, vector<1x16xf32>
    tpu.vector_store %arg12[%c3_188, %c48_189], %283 {strides = array<i32>} : memref<4x128xf32, #tpu.memory_space<vmem>>, vector<1x16xf32>,
    %c0_190 = arith.constant 0 : index
    %c0_191 = arith.constant 0 : index
    %291 = vector.load %arg4[%c0_190, %c0_191] : memref<24x1xf32, #tpu.memory_space<vmem>>, vector<24x1xf32>
    %292 = vector.broadcast %291 : vector<24x1xf32> to vector<24x16xf32>
    %293 = arith.addf %289, %292 : vector<24x16xf32>
    %cst_192 = arith.constant 0.000000e+00 : f32
    %294 = vector.broadcast %cst_192 : f32 to vector<24x16xf32>
    %295 = arith.cmpf oge, %293, %294 : vector<24x16xf32>
    %296 = vector.broadcast %2 : f32 to vector<24x16xf32>
    %297 = arith.mulf %296, %293 : vector<24x16xf32>
    %298 = arith.select %295, %293, %297 : vector<24x16xi1>, vector<24x16xf32>
    %299 = vector.broadcast %249 : f32 to vector<24x16xf32>
    %300 = arith.mulf %298, %299 : vector<24x16xf32>
    %c0_193 = arith.constant 0 : index
    %c65 = arith.constant 65 : index
    %301 = vector.load %arg11[%c0_193, %c65] : memref<24x162xf32, #tpu.memory_space<vmem>>, vector<24x16xf32>
    tpu.vector_store %arg11[%c0_193, %c65], %300 {strides = array<i32>} : memref<24x162xf32, #tpu.memory_space<vmem>>, vector<24x16xf32>,
    %c5_i32 = arith.constant 5 : i32
    %302 = arith.addi %1, %c5_i32 : i32
    %c0_i32_194 = arith.constant 0 : i32
    %c15_i32_195 = arith.constant 15 : i32
    %303 = arith.maxsi %c0_i32_194, %302 : i32
    %304 = arith.minsi %c15_i32_195, %303 : i32
    %c0_i32_196 = arith.constant 0 : i32
    %305 = arith.cmpi sge, %302, %c0_i32_196 : i32
    %c16_i32_197 = arith.constant 16 : i32
    %306 = arith.cmpi slt, %302, %c16_i32_197 : i32
    %307 = arith.andi %305, %306 : i1
    %308 = arith.extui %307 : i1 to i32
    %309 = arith.sitofp %308 : i32 to f32
    %cst_198 = arith.constant 0.000000e+00 : f32
    %310 = vector.broadcast %cst_198 : f32 to vector<24x16xf32>
    %c0_199 = arith.constant 0 : index
    %c0_200 = arith.constant 0 : index
    %311 = arith.index_cast %304 : i32 to index
    %c0_201 = arith.constant 0 : index
    %312 = vector.load %arg2[%c0_199, %c0_200, %311, %c0_201] : memref<1x4x16x16xf32, #tpu.memory_space<vmem>>, vector<1x1x1x16xf32>
    %313 = vector.shape_cast %312 : vector<1x1x1x16xf32> to vector<1x16xf32>
    %c0_202 = arith.constant 0 : index
    %c0_203 = arith.constant 0 : index
    %c0_204 = arith.constant 0 : index
    %314 = vector.load %arg3[%c0_202, %c0_203, %c0_204] : memref<4x24x1xf32, #tpu.memory_space<vmem>>, vector<1x24x1xf32>
    %315 = vector.shape_cast %314 : vector<1x24x1xf32> to vector<24x1xf32>
    %316 = vector.broadcast %315 : vector<24x1xf32> to vector<24x16xf32>
    %317 = vector.broadcast %313 : vector<1x16xf32> to vector<24x16xf32>
    %318 = arith.mulf %316, %317 : vector<24x16xf32>
    %319 = arith.addf %310, %318 : vector<24x16xf32>
    %c0_205 = arith.constant 0 : index
    %c64 = arith.constant 64 : index
    %320 = vector.load %arg12[%c0_205, %c64] : memref<4x128xf32, #tpu.memory_space<vmem>>, vector<1x16xf32>
    tpu.vector_store %arg12[%c0_205, %c64], %313 {strides = array<i32>} : memref<4x128xf32, #tpu.memory_space<vmem>>, vector<1x16xf32>,
    %c0_206 = arith.constant 0 : index
    %c1_207 = arith.constant 1 : index
    %321 = arith.index_cast %304 : i32 to index
    %c0_208 = arith.constant 0 : index
    %322 = vector.load %arg2[%c0_206, %c1_207, %321, %c0_208] : memref<1x4x16x16xf32, #tpu.memory_space<vmem>>, vector<1x1x1x16xf32>
    %323 = vector.shape_cast %322 : vector<1x1x1x16xf32> to vector<1x16xf32>
    %c1_209 = arith.constant 1 : index
    %c0_210 = arith.constant 0 : index
    %c0_211 = arith.constant 0 : index
    %324 = vector.load %arg3[%c1_209, %c0_210, %c0_211] : memref<4x24x1xf32, #tpu.memory_space<vmem>>, vector<1x24x1xf32>
    %325 = vector.shape_cast %324 : vector<1x24x1xf32> to vector<24x1xf32>
    %326 = vector.broadcast %325 : vector<24x1xf32> to vector<24x16xf32>
    %327 = vector.broadcast %323 : vector<1x16xf32> to vector<24x16xf32>
    %328 = arith.mulf %326, %327 : vector<24x16xf32>
    %329 = arith.addf %319, %328 : vector<24x16xf32>
    %c1_212 = arith.constant 1 : index
    %c64_213 = arith.constant 64 : index
    %330 = vector.load %arg12[%c1_212, %c64_213] : memref<4x128xf32, #tpu.memory_space<vmem>>, vector<1x16xf32>
    tpu.vector_store %arg12[%c1_212, %c64_213], %323 {strides = array<i32>} : memref<4x128xf32, #tpu.memory_space<vmem>>, vector<1x16xf32>,
    %c0_214 = arith.constant 0 : index
    %c2_215 = arith.constant 2 : index
    %331 = arith.index_cast %304 : i32 to index
    %c0_216 = arith.constant 0 : index
    %332 = vector.load %arg2[%c0_214, %c2_215, %331, %c0_216] : memref<1x4x16x16xf32, #tpu.memory_space<vmem>>, vector<1x1x1x16xf32>
    %333 = vector.shape_cast %332 : vector<1x1x1x16xf32> to vector<1x16xf32>
    %c2_217 = arith.constant 2 : index
    %c0_218 = arith.constant 0 : index
    %c0_219 = arith.constant 0 : index
    %334 = vector.load %arg3[%c2_217, %c0_218, %c0_219] : memref<4x24x1xf32, #tpu.memory_space<vmem>>, vector<1x24x1xf32>
    %335 = vector.shape_cast %334 : vector<1x24x1xf32> to vector<24x1xf32>
    %336 = vector.broadcast %335 : vector<24x1xf32> to vector<24x16xf32>
    %337 = vector.broadcast %333 : vector<1x16xf32> to vector<24x16xf32>
    %338 = arith.mulf %336, %337 : vector<24x16xf32>
    %339 = arith.addf %329, %338 : vector<24x16xf32>
    %c2_220 = arith.constant 2 : index
    %c64_221 = arith.constant 64 : index
    %340 = vector.load %arg12[%c2_220, %c64_221] : memref<4x128xf32, #tpu.memory_space<vmem>>, vector<1x16xf32>
    tpu.vector_store %arg12[%c2_220, %c64_221], %333 {strides = array<i32>} : memref<4x128xf32, #tpu.memory_space<vmem>>, vector<1x16xf32>,
    %c0_222 = arith.constant 0 : index
    %c3_223 = arith.constant 3 : index
    %341 = arith.index_cast %304 : i32 to index
    %c0_224 = arith.constant 0 : index
    %342 = vector.load %arg2[%c0_222, %c3_223, %341, %c0_224] : memref<1x4x16x16xf32, #tpu.memory_space<vmem>>, vector<1x1x1x16xf32>
    %343 = vector.shape_cast %342 : vector<1x1x1x16xf32> to vector<1x16xf32>
    %c3_225 = arith.constant 3 : index
    %c0_226 = arith.constant 0 : index
    %c0_227 = arith.constant 0 : index
    %344 = vector.load %arg3[%c3_225, %c0_226, %c0_227] : memref<4x24x1xf32, #tpu.memory_space<vmem>>, vector<1x24x1xf32>
    %345 = vector.shape_cast %344 : vector<1x24x1xf32> to vector<24x1xf32>
    %346 = vector.broadcast %345 : vector<24x1xf32> to vector<24x16xf32>
    %347 = vector.broadcast %343 : vector<1x16xf32> to vector<24x16xf32>
    %348 = arith.mulf %346, %347 : vector<24x16xf32>
    %349 = arith.addf %339, %348 : vector<24x16xf32>
    %c3_228 = arith.constant 3 : index
    %c64_229 = arith.constant 64 : index
    %350 = vector.load %arg12[%c3_228, %c64_229] : memref<4x128xf32, #tpu.memory_space<vmem>>, vector<1x16xf32>
    tpu.vector_store %arg12[%c3_228, %c64_229], %343 {strides = array<i32>} : memref<4x128xf32, #tpu.memory_space<vmem>>, vector<1x16xf32>,
    %c0_230 = arith.constant 0 : index
    %c0_231 = arith.constant 0 : index
    %351 = vector.load %arg4[%c0_230, %c0_231] : memref<24x1xf32, #tpu.memory_space<vmem>>, vector<24x1xf32>
    %352 = vector.broadcast %351 : vector<24x1xf32> to vector<24x16xf32>
    %353 = arith.addf %349, %352 : vector<24x16xf32>
    %cst_232 = arith.constant 0.000000e+00 : f32
    %354 = vector.broadcast %cst_232 : f32 to vector<24x16xf32>
    %355 = arith.cmpf oge, %353, %354 : vector<24x16xf32>
    %356 = vector.broadcast %2 : f32 to vector<24x16xf32>
    %357 = arith.mulf %356, %353 : vector<24x16xf32>
    %358 = arith.select %355, %353, %357 : vector<24x16xi1>, vector<24x16xf32>
    %359 = vector.broadcast %309 : f32 to vector<24x16xf32>
    %360 = arith.mulf %358, %359 : vector<24x16xf32>
    %c0_233 = arith.constant 0 : index
    %c81 = arith.constant 81 : index
    %361 = vector.load %arg11[%c0_233, %c81] : memref<24x162xf32, #tpu.memory_space<vmem>>, vector<24x16xf32>
    tpu.vector_store %arg11[%c0_233, %c81], %360 {strides = array<i32>} : memref<24x162xf32, #tpu.memory_space<vmem>>, vector<24x16xf32>,
    %c6_i32 = arith.constant 6 : i32
    %362 = arith.addi %1, %c6_i32 : i32
    %c0_i32_234 = arith.constant 0 : i32
    %c15_i32_235 = arith.constant 15 : i32
    %363 = arith.maxsi %c0_i32_234, %362 : i32
    %364 = arith.minsi %c15_i32_235, %363 : i32
    %c0_i32_236 = arith.constant 0 : i32
    %365 = arith.cmpi sge, %362, %c0_i32_236 : i32
    %c16_i32_237 = arith.constant 16 : i32
    %366 = arith.cmpi slt, %362, %c16_i32_237 : i32
    %367 = arith.andi %365, %366 : i1
    %368 = arith.extui %367 : i1 to i32
    %369 = arith.sitofp %368 : i32 to f32
    %cst_238 = arith.constant 0.000000e+00 : f32
    %370 = vector.broadcast %cst_238 : f32 to vector<24x16xf32>
    %c0_239 = arith.constant 0 : index
    %c0_240 = arith.constant 0 : index
    %371 = arith.index_cast %364 : i32 to index
    %c0_241 = arith.constant 0 : index
    %372 = vector.load %arg2[%c0_239, %c0_240, %371, %c0_241] : memref<1x4x16x16xf32, #tpu.memory_space<vmem>>, vector<1x1x1x16xf32>
    %373 = vector.shape_cast %372 : vector<1x1x1x16xf32> to vector<1x16xf32>
    %c0_242 = arith.constant 0 : index
    %c0_243 = arith.constant 0 : index
    %c0_244 = arith.constant 0 : index
    %374 = vector.load %arg3[%c0_242, %c0_243, %c0_244] : memref<4x24x1xf32, #tpu.memory_space<vmem>>, vector<1x24x1xf32>
    %375 = vector.shape_cast %374 : vector<1x24x1xf32> to vector<24x1xf32>
    %376 = vector.broadcast %375 : vector<24x1xf32> to vector<24x16xf32>
    %377 = vector.broadcast %373 : vector<1x16xf32> to vector<24x16xf32>
    %378 = arith.mulf %376, %377 : vector<24x16xf32>
    %379 = arith.addf %370, %378 : vector<24x16xf32>
    %c0_245 = arith.constant 0 : index
    %c80 = arith.constant 80 : index
    %380 = vector.load %arg12[%c0_245, %c80] : memref<4x128xf32, #tpu.memory_space<vmem>>, vector<1x16xf32>
    tpu.vector_store %arg12[%c0_245, %c80], %373 {strides = array<i32>} : memref<4x128xf32, #tpu.memory_space<vmem>>, vector<1x16xf32>,
    %c0_246 = arith.constant 0 : index
    %c1_247 = arith.constant 1 : index
    %381 = arith.index_cast %364 : i32 to index
    %c0_248 = arith.constant 0 : index
    %382 = vector.load %arg2[%c0_246, %c1_247, %381, %c0_248] : memref<1x4x16x16xf32, #tpu.memory_space<vmem>>, vector<1x1x1x16xf32>
    %383 = vector.shape_cast %382 : vector<1x1x1x16xf32> to vector<1x16xf32>
    %c1_249 = arith.constant 1 : index
    %c0_250 = arith.constant 0 : index
    %c0_251 = arith.constant 0 : index
    %384 = vector.load %arg3[%c1_249, %c0_250, %c0_251] : memref<4x24x1xf32, #tpu.memory_space<vmem>>, vector<1x24x1xf32>
    %385 = vector.shape_cast %384 : vector<1x24x1xf32> to vector<24x1xf32>
    %386 = vector.broadcast %385 : vector<24x1xf32> to vector<24x16xf32>
    %387 = vector.broadcast %383 : vector<1x16xf32> to vector<24x16xf32>
    %388 = arith.mulf %386, %387 : vector<24x16xf32>
    %389 = arith.addf %379, %388 : vector<24x16xf32>
    %c1_252 = arith.constant 1 : index
    %c80_253 = arith.constant 80 : index
    %390 = vector.load %arg12[%c1_252, %c80_253] : memref<4x128xf32, #tpu.memory_space<vmem>>, vector<1x16xf32>
    tpu.vector_store %arg12[%c1_252, %c80_253], %383 {strides = array<i32>} : memref<4x128xf32, #tpu.memory_space<vmem>>, vector<1x16xf32>,
    %c0_254 = arith.constant 0 : index
    %c2_255 = arith.constant 2 : index
    %391 = arith.index_cast %364 : i32 to index
    %c0_256 = arith.constant 0 : index
    %392 = vector.load %arg2[%c0_254, %c2_255, %391, %c0_256] : memref<1x4x16x16xf32, #tpu.memory_space<vmem>>, vector<1x1x1x16xf32>
    %393 = vector.shape_cast %392 : vector<1x1x1x16xf32> to vector<1x16xf32>
    %c2_257 = arith.constant 2 : index
    %c0_258 = arith.constant 0 : index
    %c0_259 = arith.constant 0 : index
    %394 = vector.load %arg3[%c2_257, %c0_258, %c0_259] : memref<4x24x1xf32, #tpu.memory_space<vmem>>, vector<1x24x1xf32>
    %395 = vector.shape_cast %394 : vector<1x24x1xf32> to vector<24x1xf32>
    %396 = vector.broadcast %395 : vector<24x1xf32> to vector<24x16xf32>
    %397 = vector.broadcast %393 : vector<1x16xf32> to vector<24x16xf32>
    %398 = arith.mulf %396, %397 : vector<24x16xf32>
    %399 = arith.addf %389, %398 : vector<24x16xf32>
    %c2_260 = arith.constant 2 : index
    %c80_261 = arith.constant 80 : index
    %400 = vector.load %arg12[%c2_260, %c80_261] : memref<4x128xf32, #tpu.memory_space<vmem>>, vector<1x16xf32>
    tpu.vector_store %arg12[%c2_260, %c80_261], %393 {strides = array<i32>} : memref<4x128xf32, #tpu.memory_space<vmem>>, vector<1x16xf32>,
    %c0_262 = arith.constant 0 : index
    %c3_263 = arith.constant 3 : index
    %401 = arith.index_cast %364 : i32 to index
    %c0_264 = arith.constant 0 : index
    %402 = vector.load %arg2[%c0_262, %c3_263, %401, %c0_264] : memref<1x4x16x16xf32, #tpu.memory_space<vmem>>, vector<1x1x1x16xf32>
    %403 = vector.shape_cast %402 : vector<1x1x1x16xf32> to vector<1x16xf32>
    %c3_265 = arith.constant 3 : index
    %c0_266 = arith.constant 0 : index
    %c0_267 = arith.constant 0 : index
    %404 = vector.load %arg3[%c3_265, %c0_266, %c0_267] : memref<4x24x1xf32, #tpu.memory_space<vmem>>, vector<1x24x1xf32>
    %405 = vector.shape_cast %404 : vector<1x24x1xf32> to vector<24x1xf32>
    %406 = vector.broadcast %405 : vector<24x1xf32> to vector<24x16xf32>
    %407 = vector.broadcast %403 : vector<1x16xf32> to vector<24x16xf32>
    %408 = arith.mulf %406, %407 : vector<24x16xf32>
    %409 = arith.addf %399, %408 : vector<24x16xf32>
    %c3_268 = arith.constant 3 : index
    %c80_269 = arith.constant 80 : index
    %410 = vector.load %arg12[%c3_268, %c80_269] : memref<4x128xf32, #tpu.memory_space<vmem>>, vector<1x16xf32>
    tpu.vector_store %arg12[%c3_268, %c80_269], %403 {strides = array<i32>} : memref<4x128xf32, #tpu.memory_space<vmem>>, vector<1x16xf32>,
    %c0_270 = arith.constant 0 : index
    %c0_271 = arith.constant 0 : index
    %411 = vector.load %arg4[%c0_270, %c0_271] : memref<24x1xf32, #tpu.memory_space<vmem>>, vector<24x1xf32>
    %412 = vector.broadcast %411 : vector<24x1xf32> to vector<24x16xf32>
    %413 = arith.addf %409, %412 : vector<24x16xf32>
    %cst_272 = arith.constant 0.000000e+00 : f32
    %414 = vector.broadcast %cst_272 : f32 to vector<24x16xf32>
    %415 = arith.cmpf oge, %413, %414 : vector<24x16xf32>
    %416 = vector.broadcast %2 : f32 to vector<24x16xf32>
    %417 = arith.mulf %416, %413 : vector<24x16xf32>
    %418 = arith.select %415, %413, %417 : vector<24x16xi1>, vector<24x16xf32>
    %419 = vector.broadcast %369 : f32 to vector<24x16xf32>
    %420 = arith.mulf %418, %419 : vector<24x16xf32>
    %c0_273 = arith.constant 0 : index
    %c97 = arith.constant 97 : index
    %421 = vector.load %arg11[%c0_273, %c97] : memref<24x162xf32, #tpu.memory_space<vmem>>, vector<24x16xf32>
    tpu.vector_store %arg11[%c0_273, %c97], %420 {strides = array<i32>} : memref<24x162xf32, #tpu.memory_space<vmem>>, vector<24x16xf32>,
    %c7_i32 = arith.constant 7 : i32
    %422 = arith.addi %1, %c7_i32 : i32
    %c0_i32_274 = arith.constant 0 : i32
    %c15_i32_275 = arith.constant 15 : i32
    %423 = arith.maxsi %c0_i32_274, %422 : i32
    %424 = arith.minsi %c15_i32_275, %423 : i32
    %c0_i32_276 = arith.constant 0 : i32
    %425 = arith.cmpi sge, %422, %c0_i32_276 : i32
    %c16_i32_277 = arith.constant 16 : i32
    %426 = arith.cmpi slt, %422, %c16_i32_277 : i32
    %427 = arith.andi %425, %426 : i1
    %428 = arith.extui %427 : i1 to i32
    %429 = arith.sitofp %428 : i32 to f32
    %cst_278 = arith.constant 0.000000e+00 : f32
    %430 = vector.broadcast %cst_278 : f32 to vector<24x16xf32>
    %c0_279 = arith.constant 0 : index
    %c0_280 = arith.constant 0 : index
    %431 = arith.index_cast %424 : i32 to index
    %c0_281 = arith.constant 0 : index
    %432 = vector.load %arg2[%c0_279, %c0_280, %431, %c0_281] : memref<1x4x16x16xf32, #tpu.memory_space<vmem>>, vector<1x1x1x16xf32>
    %433 = vector.shape_cast %432 : vector<1x1x1x16xf32> to vector<1x16xf32>
    %c0_282 = arith.constant 0 : index
    %c0_283 = arith.constant 0 : index
    %c0_284 = arith.constant 0 : index
    %434 = vector.load %arg3[%c0_282, %c0_283, %c0_284] : memref<4x24x1xf32, #tpu.memory_space<vmem>>, vector<1x24x1xf32>
    %435 = vector.shape_cast %434 : vector<1x24x1xf32> to vector<24x1xf32>
    %436 = vector.broadcast %435 : vector<24x1xf32> to vector<24x16xf32>
    %437 = vector.broadcast %433 : vector<1x16xf32> to vector<24x16xf32>
    %438 = arith.mulf %436, %437 : vector<24x16xf32>
    %439 = arith.addf %430, %438 : vector<24x16xf32>
    %c0_285 = arith.constant 0 : index
    %c96 = arith.constant 96 : index
    %440 = vector.load %arg12[%c0_285, %c96] : memref<4x128xf32, #tpu.memory_space<vmem>>, vector<1x16xf32>
    tpu.vector_store %arg12[%c0_285, %c96], %433 {strides = array<i32>} : memref<4x128xf32, #tpu.memory_space<vmem>>, vector<1x16xf32>,
    %c0_286 = arith.constant 0 : index
    %c1_287 = arith.constant 1 : index
    %441 = arith.index_cast %424 : i32 to index
    %c0_288 = arith.constant 0 : index
    %442 = vector.load %arg2[%c0_286, %c1_287, %441, %c0_288] : memref<1x4x16x16xf32, #tpu.memory_space<vmem>>, vector<1x1x1x16xf32>
    %443 = vector.shape_cast %442 : vector<1x1x1x16xf32> to vector<1x16xf32>
    %c1_289 = arith.constant 1 : index
    %c0_290 = arith.constant 0 : index
    %c0_291 = arith.constant 0 : index
    %444 = vector.load %arg3[%c1_289, %c0_290, %c0_291] : memref<4x24x1xf32, #tpu.memory_space<vmem>>, vector<1x24x1xf32>
    %445 = vector.shape_cast %444 : vector<1x24x1xf32> to vector<24x1xf32>
    %446 = vector.broadcast %445 : vector<24x1xf32> to vector<24x16xf32>
    %447 = vector.broadcast %443 : vector<1x16xf32> to vector<24x16xf32>
    %448 = arith.mulf %446, %447 : vector<24x16xf32>
    %449 = arith.addf %439, %448 : vector<24x16xf32>
    %c1_292 = arith.constant 1 : index
    %c96_293 = arith.constant 96 : index
    %450 = vector.load %arg12[%c1_292, %c96_293] : memref<4x128xf32, #tpu.memory_space<vmem>>, vector<1x16xf32>
    tpu.vector_store %arg12[%c1_292, %c96_293], %443 {strides = array<i32>} : memref<4x128xf32, #tpu.memory_space<vmem>>, vector<1x16xf32>,
    %c0_294 = arith.constant 0 : index
    %c2_295 = arith.constant 2 : index
    %451 = arith.index_cast %424 : i32 to index
    %c0_296 = arith.constant 0 : index
    %452 = vector.load %arg2[%c0_294, %c2_295, %451, %c0_296] : memref<1x4x16x16xf32, #tpu.memory_space<vmem>>, vector<1x1x1x16xf32>
    %453 = vector.shape_cast %452 : vector<1x1x1x16xf32> to vector<1x16xf32>
    %c2_297 = arith.constant 2 : index
    %c0_298 = arith.constant 0 : index
    %c0_299 = arith.constant 0 : index
    %454 = vector.load %arg3[%c2_297, %c0_298, %c0_299] : memref<4x24x1xf32, #tpu.memory_space<vmem>>, vector<1x24x1xf32>
    %455 = vector.shape_cast %454 : vector<1x24x1xf32> to vector<24x1xf32>
    %456 = vector.broadcast %455 : vector<24x1xf32> to vector<24x16xf32>
    %457 = vector.broadcast %453 : vector<1x16xf32> to vector<24x16xf32>
    %458 = arith.mulf %456, %457 : vector<24x16xf32>
    %459 = arith.addf %449, %458 : vector<24x16xf32>
    %c2_300 = arith.constant 2 : index
    %c96_301 = arith.constant 96 : index
    %460 = vector.load %arg12[%c2_300, %c96_301] : memref<4x128xf32, #tpu.memory_space<vmem>>, vector<1x16xf32>
    tpu.vector_store %arg12[%c2_300, %c96_301], %453 {strides = array<i32>} : memref<4x128xf32, #tpu.memory_space<vmem>>, vector<1x16xf32>,
    %c0_302 = arith.constant 0 : index
    %c3_303 = arith.constant 3 : index
    %461 = arith.index_cast %424 : i32 to index
    %c0_304 = arith.constant 0 : index
    %462 = vector.load %arg2[%c0_302, %c3_303, %461, %c0_304] : memref<1x4x16x16xf32, #tpu.memory_space<vmem>>, vector<1x1x1x16xf32>
    %463 = vector.shape_cast %462 : vector<1x1x1x16xf32> to vector<1x16xf32>
    %c3_305 = arith.constant 3 : index
    %c0_306 = arith.constant 0 : index
    %c0_307 = arith.constant 0 : index
    %464 = vector.load %arg3[%c3_305, %c0_306, %c0_307] : memref<4x24x1xf32, #tpu.memory_space<vmem>>, vector<1x24x1xf32>
    %465 = vector.shape_cast %464 : vector<1x24x1xf32> to vector<24x1xf32>
    %466 = vector.broadcast %465 : vector<24x1xf32> to vector<24x16xf32>
    %467 = vector.broadcast %463 : vector<1x16xf32> to vector<24x16xf32>
    %468 = arith.mulf %466, %467 : vector<24x16xf32>
    %469 = arith.addf %459, %468 : vector<24x16xf32>
    %c3_308 = arith.constant 3 : index
    %c96_309 = arith.constant 96 : index
    %470 = vector.load %arg12[%c3_308, %c96_309] : memref<4x128xf32, #tpu.memory_space<vmem>>, vector<1x16xf32>
    tpu.vector_store %arg12[%c3_308, %c96_309], %463 {strides = array<i32>} : memref<4x128xf32, #tpu.memory_space<vmem>>, vector<1x16xf32>,
    %c0_310 = arith.constant 0 : index
    %c0_311 = arith.constant 0 : index
    %471 = vector.load %arg4[%c0_310, %c0_311] : memref<24x1xf32, #tpu.memory_space<vmem>>, vector<24x1xf32>
    %472 = vector.broadcast %471 : vector<24x1xf32> to vector<24x16xf32>
    %473 = arith.addf %469, %472 : vector<24x16xf32>
    %cst_312 = arith.constant 0.000000e+00 : f32
    %474 = vector.broadcast %cst_312 : f32 to vector<24x16xf32>
    %475 = arith.cmpf oge, %473, %474 : vector<24x16xf32>
    %476 = vector.broadcast %2 : f32 to vector<24x16xf32>
    %477 = arith.mulf %476, %473 : vector<24x16xf32>
    %478 = arith.select %475, %473, %477 : vector<24x16xi1>, vector<24x16xf32>
    %479 = vector.broadcast %429 : f32 to vector<24x16xf32>
    %480 = arith.mulf %478, %479 : vector<24x16xf32>
    %c0_313 = arith.constant 0 : index
    %c113 = arith.constant 113 : index
    %481 = vector.load %arg11[%c0_313, %c113] : memref<24x162xf32, #tpu.memory_space<vmem>>, vector<24x16xf32>
    tpu.vector_store %arg11[%c0_313, %c113], %480 {strides = array<i32>} : memref<24x162xf32, #tpu.memory_space<vmem>>, vector<24x16xf32>,
    %c8_i32_314 = arith.constant 8 : i32
    %482 = arith.addi %1, %c8_i32_314 : i32
    %c0_i32_315 = arith.constant 0 : i32
    %c15_i32_316 = arith.constant 15 : i32
    %483 = arith.maxsi %c0_i32_315, %482 : i32
    %484 = arith.minsi %c15_i32_316, %483 : i32
    %c0_i32_317 = arith.constant 0 : i32
    %485 = arith.cmpi sge, %482, %c0_i32_317 : i32
    %c16_i32_318 = arith.constant 16 : i32
    %486 = arith.cmpi slt, %482, %c16_i32_318 : i32
    %487 = arith.andi %485, %486 : i1
    %488 = arith.extui %487 : i1 to i32
    %489 = arith.sitofp %488 : i32 to f32
    %cst_319 = arith.constant 0.000000e+00 : f32
    %490 = vector.broadcast %cst_319 : f32 to vector<24x16xf32>
    %c0_320 = arith.constant 0 : index
    %c0_321 = arith.constant 0 : index
    %491 = arith.index_cast %484 : i32 to index
    %c0_322 = arith.constant 0 : index
    %492 = vector.load %arg2[%c0_320, %c0_321, %491, %c0_322] : memref<1x4x16x16xf32, #tpu.memory_space<vmem>>, vector<1x1x1x16xf32>
    %493 = vector.shape_cast %492 : vector<1x1x1x16xf32> to vector<1x16xf32>
    %c0_323 = arith.constant 0 : index
    %c0_324 = arith.constant 0 : index
    %c0_325 = arith.constant 0 : index
    %494 = vector.load %arg3[%c0_323, %c0_324, %c0_325] : memref<4x24x1xf32, #tpu.memory_space<vmem>>, vector<1x24x1xf32>
    %495 = vector.shape_cast %494 : vector<1x24x1xf32> to vector<24x1xf32>
    %496 = vector.broadcast %495 : vector<24x1xf32> to vector<24x16xf32>
    %497 = vector.broadcast %493 : vector<1x16xf32> to vector<24x16xf32>
    %498 = arith.mulf %496, %497 : vector<24x16xf32>
    %499 = arith.addf %490, %498 : vector<24x16xf32>
    %c0_326 = arith.constant 0 : index
    %c112 = arith.constant 112 : index
    %500 = vector.load %arg12[%c0_326, %c112] : memref<4x128xf32, #tpu.memory_space<vmem>>, vector<1x16xf32>
    tpu.vector_store %arg12[%c0_326, %c112], %493 {strides = array<i32>} : memref<4x128xf32, #tpu.memory_space<vmem>>, vector<1x16xf32>,
    %c0_327 = arith.constant 0 : index
    %c1_328 = arith.constant 1 : index
    %501 = arith.index_cast %484 : i32 to index
    %c0_329 = arith.constant 0 : index
    %502 = vector.load %arg2[%c0_327, %c1_328, %501, %c0_329] : memref<1x4x16x16xf32, #tpu.memory_space<vmem>>, vector<1x1x1x16xf32>
    %503 = vector.shape_cast %502 : vector<1x1x1x16xf32> to vector<1x16xf32>
    %c1_330 = arith.constant 1 : index
    %c0_331 = arith.constant 0 : index
    %c0_332 = arith.constant 0 : index
    %504 = vector.load %arg3[%c1_330, %c0_331, %c0_332] : memref<4x24x1xf32, #tpu.memory_space<vmem>>, vector<1x24x1xf32>
    %505 = vector.shape_cast %504 : vector<1x24x1xf32> to vector<24x1xf32>
    %506 = vector.broadcast %505 : vector<24x1xf32> to vector<24x16xf32>
    %507 = vector.broadcast %503 : vector<1x16xf32> to vector<24x16xf32>
    %508 = arith.mulf %506, %507 : vector<24x16xf32>
    %509 = arith.addf %499, %508 : vector<24x16xf32>
    %c1_333 = arith.constant 1 : index
    %c112_334 = arith.constant 112 : index
    %510 = vector.load %arg12[%c1_333, %c112_334] : memref<4x128xf32, #tpu.memory_space<vmem>>, vector<1x16xf32>
    tpu.vector_store %arg12[%c1_333, %c112_334], %503 {strides = array<i32>} : memref<4x128xf32, #tpu.memory_space<vmem>>, vector<1x16xf32>,
    %c0_335 = arith.constant 0 : index
    %c2_336 = arith.constant 2 : index
    %511 = arith.index_cast %484 : i32 to index
    %c0_337 = arith.constant 0 : index
    %512 = vector.load %arg2[%c0_335, %c2_336, %511, %c0_337] : memref<1x4x16x16xf32, #tpu.memory_space<vmem>>, vector<1x1x1x16xf32>
    %513 = vector.shape_cast %512 : vector<1x1x1x16xf32> to vector<1x16xf32>
    %c2_338 = arith.constant 2 : index
    %c0_339 = arith.constant 0 : index
    %c0_340 = arith.constant 0 : index
    %514 = vector.load %arg3[%c2_338, %c0_339, %c0_340] : memref<4x24x1xf32, #tpu.memory_space<vmem>>, vector<1x24x1xf32>
    %515 = vector.shape_cast %514 : vector<1x24x1xf32> to vector<24x1xf32>
    %516 = vector.broadcast %515 : vector<24x1xf32> to vector<24x16xf32>
    %517 = vector.broadcast %513 : vector<1x16xf32> to vector<24x16xf32>
    %518 = arith.mulf %516, %517 : vector<24x16xf32>
    %519 = arith.addf %509, %518 : vector<24x16xf32>
    %c2_341 = arith.constant 2 : index
    %c112_342 = arith.constant 112 : index
    %520 = vector.load %arg12[%c2_341, %c112_342] : memref<4x128xf32, #tpu.memory_space<vmem>>, vector<1x16xf32>
    tpu.vector_store %arg12[%c2_341, %c112_342], %513 {strides = array<i32>} : memref<4x128xf32, #tpu.memory_space<vmem>>, vector<1x16xf32>,
    %c0_343 = arith.constant 0 : index
    %c3_344 = arith.constant 3 : index
    %521 = arith.index_cast %484 : i32 to index
    %c0_345 = arith.constant 0 : index
    %522 = vector.load %arg2[%c0_343, %c3_344, %521, %c0_345] : memref<1x4x16x16xf32, #tpu.memory_space<vmem>>, vector<1x1x1x16xf32>
    %523 = vector.shape_cast %522 : vector<1x1x1x16xf32> to vector<1x16xf32>
    %c3_346 = arith.constant 3 : index
    %c0_347 = arith.constant 0 : index
    %c0_348 = arith.constant 0 : index
    %524 = vector.load %arg3[%c3_346, %c0_347, %c0_348] : memref<4x24x1xf32, #tpu.memory_space<vmem>>, vector<1x24x1xf32>
    %525 = vector.shape_cast %524 : vector<1x24x1xf32> to vector<24x1xf32>
    %526 = vector.broadcast %525 : vector<24x1xf32> to vector<24x16xf32>
    %527 = vector.broadcast %523 : vector<1x16xf32> to vector<24x16xf32>
    %528 = arith.mulf %526, %527 : vector<24x16xf32>
    %529 = arith.addf %519, %528 : vector<24x16xf32>
    %c3_349 = arith.constant 3 : index
    %c112_350 = arith.constant 112 : index
    %530 = vector.load %arg12[%c3_349, %c112_350] : memref<4x128xf32, #tpu.memory_space<vmem>>, vector<1x16xf32>
    tpu.vector_store %arg12[%c3_349, %c112_350], %523 {strides = array<i32>} : memref<4x128xf32, #tpu.memory_space<vmem>>, vector<1x16xf32>,
    %c0_351 = arith.constant 0 : index
    %c0_352 = arith.constant 0 : index
    %531 = vector.load %arg4[%c0_351, %c0_352] : memref<24x1xf32, #tpu.memory_space<vmem>>, vector<24x1xf32>
    %532 = vector.broadcast %531 : vector<24x1xf32> to vector<24x16xf32>
    %533 = arith.addf %529, %532 : vector<24x16xf32>
    %cst_353 = arith.constant 0.000000e+00 : f32
    %534 = vector.broadcast %cst_353 : f32 to vector<24x16xf32>
    %535 = arith.cmpf oge, %533, %534 : vector<24x16xf32>
    %536 = vector.broadcast %2 : f32 to vector<24x16xf32>
    %537 = arith.mulf %536, %533 : vector<24x16xf32>
    %538 = arith.select %535, %533, %537 : vector<24x16xi1>, vector<24x16xf32>
    %539 = vector.broadcast %489 : f32 to vector<24x16xf32>
    %540 = arith.mulf %538, %539 : vector<24x16xf32>
    %c0_354 = arith.constant 0 : index
    %c129 = arith.constant 129 : index
    %541 = vector.load %arg11[%c0_354, %c129] : memref<24x162xf32, #tpu.memory_space<vmem>>, vector<24x16xf32>
    tpu.vector_store %arg11[%c0_354, %c129], %540 {strides = array<i32>} : memref<24x162xf32, #tpu.memory_space<vmem>>, vector<24x16xf32>,
    %c9_i32 = arith.constant 9 : i32
    %542 = arith.addi %1, %c9_i32 : i32
    %c0_i32_355 = arith.constant 0 : i32
    %c15_i32_356 = arith.constant 15 : i32
    %543 = arith.maxsi %c0_i32_355, %542 : i32
    %544 = arith.minsi %c15_i32_356, %543 : i32
    %c0_i32_357 = arith.constant 0 : i32
    %545 = arith.cmpi sge, %542, %c0_i32_357 : i32
    %c16_i32_358 = arith.constant 16 : i32
    %546 = arith.cmpi slt, %542, %c16_i32_358 : i32
    %547 = arith.andi %545, %546 : i1
    %548 = arith.extui %547 : i1 to i32
    %549 = arith.sitofp %548 : i32 to f32
    %cst_359 = arith.constant 0.000000e+00 : f32
    %550 = vector.broadcast %cst_359 : f32 to vector<24x16xf32>
    %c0_360 = arith.constant 0 : index
    %c0_361 = arith.constant 0 : index
    %551 = arith.index_cast %544 : i32 to index
    %c0_362 = arith.constant 0 : index
    %552 = vector.load %arg2[%c0_360, %c0_361, %551, %c0_362] : memref<1x4x16x16xf32, #tpu.memory_space<vmem>>, vector<1x1x1x16xf32>
    %553 = vector.shape_cast %552 : vector<1x1x1x16xf32> to vector<1x16xf32>
    %c0_363 = arith.constant 0 : index
    %c0_364 = arith.constant 0 : index
    %c0_365 = arith.constant 0 : index
    %554 = vector.load %arg3[%c0_363, %c0_364, %c0_365] : memref<4x24x1xf32, #tpu.memory_space<vmem>>, vector<1x24x1xf32>
    %555 = vector.shape_cast %554 : vector<1x24x1xf32> to vector<24x1xf32>
    %556 = vector.broadcast %555 : vector<24x1xf32> to vector<24x16xf32>
    %557 = vector.broadcast %553 : vector<1x16xf32> to vector<24x16xf32>
    %558 = arith.mulf %556, %557 : vector<24x16xf32>
    %559 = arith.addf %550, %558 : vector<24x16xf32>
    %c0_366 = arith.constant 0 : index
    %c1_367 = arith.constant 1 : index
    %560 = arith.index_cast %544 : i32 to index
    %c0_368 = arith.constant 0 : index
    %561 = vector.load %arg2[%c0_366, %c1_367, %560, %c0_368] : memref<1x4x16x16xf32, #tpu.memory_space<vmem>>, vector<1x1x1x16xf32>
    %562 = vector.shape_cast %561 : vector<1x1x1x16xf32> to vector<1x16xf32>
    %c1_369 = arith.constant 1 : index
    %c0_370 = arith.constant 0 : index
    %c0_371 = arith.constant 0 : index
    %563 = vector.load %arg3[%c1_369, %c0_370, %c0_371] : memref<4x24x1xf32, #tpu.memory_space<vmem>>, vector<1x24x1xf32>
    %564 = vector.shape_cast %563 : vector<1x24x1xf32> to vector<24x1xf32>
    %565 = vector.broadcast %564 : vector<24x1xf32> to vector<24x16xf32>
    %566 = vector.broadcast %562 : vector<1x16xf32> to vector<24x16xf32>
    %567 = arith.mulf %565, %566 : vector<24x16xf32>
    %568 = arith.addf %559, %567 : vector<24x16xf32>
    %c0_372 = arith.constant 0 : index
    %c2_373 = arith.constant 2 : index
    %569 = arith.index_cast %544 : i32 to index
    %c0_374 = arith.constant 0 : index
    %570 = vector.load %arg2[%c0_372, %c2_373, %569, %c0_374] : memref<1x4x16x16xf32, #tpu.memory_space<vmem>>, vector<1x1x1x16xf32>
    %571 = vector.shape_cast %570 : vector<1x1x1x16xf32> to vector<1x16xf32>
    %c2_375 = arith.constant 2 : index
    %c0_376 = arith.constant 0 : index
    %c0_377 = arith.constant 0 : index
    %572 = vector.load %arg3[%c2_375, %c0_376, %c0_377] : memref<4x24x1xf32, #tpu.memory_space<vmem>>, vector<1x24x1xf32>
    %573 = vector.shape_cast %572 : vector<1x24x1xf32> to vector<24x1xf32>
    %574 = vector.broadcast %573 : vector<24x1xf32> to vector<24x16xf32>
    %575 = vector.broadcast %571 : vector<1x16xf32> to vector<24x16xf32>
    %576 = arith.mulf %574, %575 : vector<24x16xf32>
    %577 = arith.addf %568, %576 : vector<24x16xf32>
    %c0_378 = arith.constant 0 : index
    %c3_379 = arith.constant 3 : index
    %578 = arith.index_cast %544 : i32 to index
    %c0_380 = arith.constant 0 : index
    %579 = vector.load %arg2[%c0_378, %c3_379, %578, %c0_380] : memref<1x4x16x16xf32, #tpu.memory_space<vmem>>, vector<1x1x1x16xf32>
    %580 = vector.shape_cast %579 : vector<1x1x1x16xf32> to vector<1x16xf32>
    %c3_381 = arith.constant 3 : index
    %c0_382 = arith.constant 0 : index
    %c0_383 = arith.constant 0 : index
    %581 = vector.load %arg3[%c3_381, %c0_382, %c0_383] : memref<4x24x1xf32, #tpu.memory_space<vmem>>, vector<1x24x1xf32>
    %582 = vector.shape_cast %581 : vector<1x24x1xf32> to vector<24x1xf32>
    %583 = vector.broadcast %582 : vector<24x1xf32> to vector<24x16xf32>
    %584 = vector.broadcast %580 : vector<1x16xf32> to vector<24x16xf32>
    %585 = arith.mulf %583, %584 : vector<24x16xf32>
    %586 = arith.addf %577, %585 : vector<24x16xf32>
    %c0_384 = arith.constant 0 : index
    %c0_385 = arith.constant 0 : index
    %587 = vector.load %arg4[%c0_384, %c0_385] : memref<24x1xf32, #tpu.memory_space<vmem>>, vector<24x1xf32>
    %588 = vector.broadcast %587 : vector<24x1xf32> to vector<24x16xf32>
    %589 = arith.addf %586, %588 : vector<24x16xf32>
    %cst_386 = arith.constant 0.000000e+00 : f32
    %590 = vector.broadcast %cst_386 : f32 to vector<24x16xf32>
    %591 = arith.cmpf oge, %589, %590 : vector<24x16xf32>
    %592 = vector.broadcast %2 : f32 to vector<24x16xf32>
    %593 = arith.mulf %592, %589 : vector<24x16xf32>
    %594 = arith.select %591, %589, %593 : vector<24x16xi1>, vector<24x16xf32>
    %595 = vector.broadcast %549 : f32 to vector<24x16xf32>
    %596 = arith.mulf %594, %595 : vector<24x16xf32>
    %c0_387 = arith.constant 0 : index
    %c145 = arith.constant 145 : index
    %597 = vector.load %arg11[%c0_387, %c145] : memref<24x162xf32, #tpu.memory_space<vmem>>, vector<24x16xf32>
    tpu.vector_store %arg11[%c0_387, %c145], %596 {strides = array<i32>} : memref<24x162xf32, #tpu.memory_space<vmem>>, vector<24x16xf32>,
    %598 = tpu.iota {dimensions = array<i32: 1>} : vector<1x128xi32>
    %c16_i32_388 = arith.constant 16 : i32
    %c0_i32_389 = arith.constant 0 : i32
    %599 = arith.cmpi eq, %c16_i32_388, %c0_i32_389 : i32
    %c1_i32_390 = arith.constant 1 : i32
    %600 = arith.select %599, %c1_i32_390, %c16_i32_388 : i32
    %601 = vector.broadcast %600 : i32 to vector<1x128xi32>
    %602 = arith.remsi %598, %601 : vector<1x128xi32>
    %c0_i32_391 = arith.constant 0 : i32
    %603 = vector.broadcast %c0_i32_391 : i32 to vector<1x128xi32>
    %604 = arith.cmpi ne, %602, %603 : vector<1x128xi32>
    %c0_i32_392 = arith.constant 0 : i32
    %605 = vector.broadcast %c0_i32_392 : i32 to vector<1x128xi32>
    %606 = arith.cmpi slt, %602, %605 : vector<1x128xi32>
    %c0_i32_393 = arith.constant 0 : i32
    %607 = arith.cmpi slt, %600, %c0_i32_393 : i32
    %608 = vector.broadcast %607 : i1 to vector<1x128xi1>
    %609 = vector.broadcast %608 : vector<1x128xi1> to vector<1x128xi1>
    %610 = arith.xori %606, %609 : vector<1x128xi1>
    %611 = arith.andi %610, %604 : vector<1x128xi1>
    %612 = vector.broadcast %600 : i32 to vector<1x128xi32>
    %613 = arith.addi %602, %612 : vector<1x128xi32>
    %614 = arith.select %611, %613, %602 : vector<1x128xi1>, vector<1x128xi32>
    %c0_i32_394 = arith.constant 0 : i32
    %615 = vector.broadcast %c0_i32_394 : i32 to vector<1x128xi32>
    %616 = arith.cmpi eq, %614, %615 : vector<1x128xi32>
    %c15_i32_395 = arith.constant 15 : i32
    %617 = vector.broadcast %c15_i32_395 : i32 to vector<1x128xi32>
    %618 = arith.cmpi eq, %614, %617 : vector<1x128xi32>
    %cst_396 = arith.constant 0.000000e+00 : f32
    %619 = vector.broadcast %cst_396 : f32 to vector<24x128xf32>
    %c0_397 = arith.constant 0 : index
    %c0_398 = arith.constant 0 : index
    %620 = vector.load %arg11[%c0_397, %c0_398] : memref<24x162xf32, #tpu.memory_space<vmem>>, vector<24x128xf32>
    %c0_399 = arith.constant 0 : index
    %c0_400 = arith.constant 0 : index
    %c0_401 = arith.constant 0 : index
    %621 = vector.load %arg5[%c0_399, %c0_400, %c0_401] : memref<9x24x1xf32, #tpu.memory_space<vmem>>, vector<1x24x1xf32>
    %622 = vector.shape_cast %621 : vector<1x24x1xf32> to vector<24x1xf32>
    %623 = vector.broadcast %622 : vector<24x1xf32> to vector<24x128xf32>
    %624 = arith.mulf %620, %623 : vector<24x128xf32>
    %cst_402 = arith.constant 0.000000e+00 : f32
    %625 = vector.shape_cast %616 : vector<1x128xi1> to vector<1x128xi1>
    %626 = vector.broadcast %625 : vector<1x128xi1> to vector<24x128xi1>
    %627 = vector.broadcast %cst_402 : f32 to vector<24x128xf32>
    %628 = arith.select %626, %627, %624 : vector<24x128xi1>, vector<24x128xf32>
    %629 = arith.addf %619, %628 : vector<24x128xf32>
    %c0_403 = arith.constant 0 : index
    %c1_404 = arith.constant 1 : index
    %630 = vector.load %arg11[%c0_403, %c1_404] : memref<24x162xf32, #tpu.memory_space<vmem>>, vector<24x128xf32>
    %c1_405 = arith.constant 1 : index
    %c0_406 = arith.constant 0 : index
    %c0_407 = arith.constant 0 : index
    %631 = vector.load %arg5[%c1_405, %c0_406, %c0_407] : memref<9x24x1xf32, #tpu.memory_space<vmem>>, vector<1x24x1xf32>
    %632 = vector.shape_cast %631 : vector<1x24x1xf32> to vector<24x1xf32>
    %633 = vector.broadcast %632 : vector<24x1xf32> to vector<24x128xf32>
    %634 = arith.mulf %630, %633 : vector<24x128xf32>
    %635 = arith.addf %629, %634 : vector<24x128xf32>
    %c0_408 = arith.constant 0 : index
    %c2_409 = arith.constant 2 : index
    %636 = vector.load %arg11[%c0_408, %c2_409] : memref<24x162xf32, #tpu.memory_space<vmem>>, vector<24x128xf32>
    %c2_410 = arith.constant 2 : index
    %c0_411 = arith.constant 0 : index
    %c0_412 = arith.constant 0 : index
    %637 = vector.load %arg5[%c2_410, %c0_411, %c0_412] : memref<9x24x1xf32, #tpu.memory_space<vmem>>, vector<1x24x1xf32>
    %638 = vector.shape_cast %637 : vector<1x24x1xf32> to vector<24x1xf32>
    %639 = vector.broadcast %638 : vector<24x1xf32> to vector<24x128xf32>
    %640 = arith.mulf %636, %639 : vector<24x128xf32>
    %cst_413 = arith.constant 0.000000e+00 : f32
    %641 = vector.shape_cast %618 : vector<1x128xi1> to vector<1x128xi1>
    %642 = vector.broadcast %641 : vector<1x128xi1> to vector<24x128xi1>
    %643 = vector.broadcast %cst_413 : f32 to vector<24x128xf32>
    %644 = arith.select %642, %643, %640 : vector<24x128xi1>, vector<24x128xf32>
    %645 = arith.addf %635, %644 : vector<24x128xf32>
    %c0_414 = arith.constant 0 : index
    %c16_415 = arith.constant 16 : index
    %646 = vector.load %arg11[%c0_414, %c16_415] : memref<24x162xf32, #tpu.memory_space<vmem>>, vector<24x128xf32>
    %c3_416 = arith.constant 3 : index
    %c0_417 = arith.constant 0 : index
    %c0_418 = arith.constant 0 : index
    %647 = vector.load %arg5[%c3_416, %c0_417, %c0_418] : memref<9x24x1xf32, #tpu.memory_space<vmem>>, vector<1x24x1xf32>
    %648 = vector.shape_cast %647 : vector<1x24x1xf32> to vector<24x1xf32>
    %649 = vector.broadcast %648 : vector<24x1xf32> to vector<24x128xf32>
    %650 = arith.mulf %646, %649 : vector<24x128xf32>
    %cst_419 = arith.constant 0.000000e+00 : f32
    %651 = vector.shape_cast %616 : vector<1x128xi1> to vector<1x128xi1>
    %652 = vector.broadcast %651 : vector<1x128xi1> to vector<24x128xi1>
    %653 = vector.broadcast %cst_419 : f32 to vector<24x128xf32>
    %654 = arith.select %652, %653, %650 : vector<24x128xi1>, vector<24x128xf32>
    %655 = arith.addf %645, %654 : vector<24x128xf32>
    %c0_420 = arith.constant 0 : index
    %c17_421 = arith.constant 17 : index
    %656 = vector.load %arg11[%c0_420, %c17_421] : memref<24x162xf32, #tpu.memory_space<vmem>>, vector<24x128xf32>
    %c4 = arith.constant 4 : index
    %c0_422 = arith.constant 0 : index
    %c0_423 = arith.constant 0 : index
    %657 = vector.load %arg5[%c4, %c0_422, %c0_423] : memref<9x24x1xf32, #tpu.memory_space<vmem>>, vector<1x24x1xf32>
    %658 = vector.shape_cast %657 : vector<1x24x1xf32> to vector<24x1xf32>
    %659 = vector.broadcast %658 : vector<24x1xf32> to vector<24x128xf32>
    %660 = arith.mulf %656, %659 : vector<24x128xf32>
    %661 = arith.addf %655, %660 : vector<24x128xf32>
    %c0_424 = arith.constant 0 : index
    %c18 = arith.constant 18 : index
    %662 = vector.load %arg11[%c0_424, %c18] : memref<24x162xf32, #tpu.memory_space<vmem>>, vector<24x128xf32>
    %c5 = arith.constant 5 : index
    %c0_425 = arith.constant 0 : index
    %c0_426 = arith.constant 0 : index
    %663 = vector.load %arg5[%c5, %c0_425, %c0_426] : memref<9x24x1xf32, #tpu.memory_space<vmem>>, vector<1x24x1xf32>
    %664 = vector.shape_cast %663 : vector<1x24x1xf32> to vector<24x1xf32>
    %665 = vector.broadcast %664 : vector<24x1xf32> to vector<24x128xf32>
    %666 = arith.mulf %662, %665 : vector<24x128xf32>
    %cst_427 = arith.constant 0.000000e+00 : f32
    %667 = vector.shape_cast %618 : vector<1x128xi1> to vector<1x128xi1>
    %668 = vector.broadcast %667 : vector<1x128xi1> to vector<24x128xi1>
    %669 = vector.broadcast %cst_427 : f32 to vector<24x128xf32>
    %670 = arith.select %668, %669, %666 : vector<24x128xi1>, vector<24x128xf32>
    %671 = arith.addf %661, %670 : vector<24x128xf32>
    %c0_428 = arith.constant 0 : index
    %c32_429 = arith.constant 32 : index
    %672 = vector.load %arg11[%c0_428, %c32_429] : memref<24x162xf32, #tpu.memory_space<vmem>>, vector<24x128xf32>
    %c6 = arith.constant 6 : index
    %c0_430 = arith.constant 0 : index
    %c0_431 = arith.constant 0 : index
    %673 = vector.load %arg5[%c6, %c0_430, %c0_431] : memref<9x24x1xf32, #tpu.memory_space<vmem>>, vector<1x24x1xf32>
    %674 = vector.shape_cast %673 : vector<1x24x1xf32> to vector<24x1xf32>
    %675 = vector.broadcast %674 : vector<24x1xf32> to vector<24x128xf32>
    %676 = arith.mulf %672, %675 : vector<24x128xf32>
    %cst_432 = arith.constant 0.000000e+00 : f32
    %677 = vector.shape_cast %616 : vector<1x128xi1> to vector<1x128xi1>
    %678 = vector.broadcast %677 : vector<1x128xi1> to vector<24x128xi1>
    %679 = vector.broadcast %cst_432 : f32 to vector<24x128xf32>
    %680 = arith.select %678, %679, %676 : vector<24x128xi1>, vector<24x128xf32>
    %681 = arith.addf %671, %680 : vector<24x128xf32>
    %c0_433 = arith.constant 0 : index
    %c33_434 = arith.constant 33 : index
    %682 = vector.load %arg11[%c0_433, %c33_434] : memref<24x162xf32, #tpu.memory_space<vmem>>, vector<24x128xf32>
    %c7 = arith.constant 7 : index
    %c0_435 = arith.constant 0 : index
    %c0_436 = arith.constant 0 : index
    %683 = vector.load %arg5[%c7, %c0_435, %c0_436] : memref<9x24x1xf32, #tpu.memory_space<vmem>>, vector<1x24x1xf32>
    %684 = vector.shape_cast %683 : vector<1x24x1xf32> to vector<24x1xf32>
    %685 = vector.broadcast %684 : vector<24x1xf32> to vector<24x128xf32>
    %686 = arith.mulf %682, %685 : vector<24x128xf32>
    %687 = arith.addf %681, %686 : vector<24x128xf32>
    %c0_437 = arith.constant 0 : index
    %c34 = arith.constant 34 : index
    %688 = vector.load %arg11[%c0_437, %c34] : memref<24x162xf32, #tpu.memory_space<vmem>>, vector<24x128xf32>
    %c8 = arith.constant 8 : index
    %c0_438 = arith.constant 0 : index
    %c0_439 = arith.constant 0 : index
    %689 = vector.load %arg5[%c8, %c0_438, %c0_439] : memref<9x24x1xf32, #tpu.memory_space<vmem>>, vector<1x24x1xf32>
    %690 = vector.shape_cast %689 : vector<1x24x1xf32> to vector<24x1xf32>
    %691 = vector.broadcast %690 : vector<24x1xf32> to vector<24x128xf32>
    %692 = arith.mulf %688, %691 : vector<24x128xf32>
    %cst_440 = arith.constant 0.000000e+00 : f32
    %693 = vector.shape_cast %618 : vector<1x128xi1> to vector<1x128xi1>
    %694 = vector.broadcast %693 : vector<1x128xi1> to vector<24x128xi1>
    %695 = vector.broadcast %cst_440 : f32 to vector<24x128xf32>
    %696 = arith.select %694, %695, %692 : vector<24x128xi1>, vector<24x128xf32>
    %697 = arith.addf %687, %696 : vector<24x128xf32>
    %c0_441 = arith.constant 0 : index
    %c0_442 = arith.constant 0 : index
    %698 = vector.load %arg6[%c0_441, %c0_442] : memref<24x1xf32, #tpu.memory_space<vmem>>, vector<24x1xf32>
    %699 = vector.broadcast %698 : vector<24x1xf32> to vector<24x128xf32>
    %700 = arith.addf %697, %699 : vector<24x128xf32>
    %cst_443 = arith.constant 0.000000e+00 : f32
    %701 = vector.broadcast %cst_443 : f32 to vector<24x128xf32>
    %702 = arith.cmpf oge, %700, %701 : vector<24x128xf32>
    %703 = vector.broadcast %3 : f32 to vector<24x128xf32>
    %704 = arith.mulf %703, %700 : vector<24x128xf32>
    %705 = arith.select %702, %700, %704 : vector<24x128xi1>, vector<24x128xf32>
    %c0_444 = arith.constant 0 : index
    %c0_445 = arith.constant 0 : index
    %706 = vector.load %arg7[%c0_444, %c0_445] : memref<4x24xbf16, #tpu.memory_space<vmem>>, vector<4x24xbf16>
    %707 = arith.truncf %705 : vector<24x128xf32> to vector<24x128xbf16>
    %cst_446 = arith.constant dense<0.000000e+00> : vector<4x128xf32>
    %708 = tpu.matmul %706, %707, %cst_446 {dimension_numbers = #tpu.dot_dimension_numbers<[1], [0], [0], [1], [0, 0, 1, 1], [], []>} : vector<4x24xbf16>, vector<24x128xbf16>, vector<4x128xf32> -> vector<4x128xf32>
    %c0_447 = arith.constant 0 : index
    %c0_448 = arith.constant 0 : index
    %709 = vector.load %arg8[%c0_447, %c0_448] : memref<4x1xf32, #tpu.memory_space<vmem>>, vector<4x1xf32>
    %710 = vector.broadcast %709 : vector<4x1xf32> to vector<4x128xf32>
    %711 = arith.addf %708, %710 : vector<4x128xf32>
    %c0_449 = arith.constant 0 : index
    %c0_450 = arith.constant 0 : index
    %712 = vector.load %arg12[%c0_449, %c0_450] : memref<4x128xf32, #tpu.memory_space<vmem>>, vector<4x128xf32>
    %713 = arith.addf %711, %712 : vector<4x128xf32>
    %c0_451 = arith.constant 0 : index
    %c0_452 = arith.constant 0 : index
    %c0_453 = arith.constant 0 : index
    %714 = vector.load %arg10[%c0_451, %c0_452, %c0_453] : memref<1x4x128xf32, #tpu.memory_space<vmem>>, vector<1x4x128xf32>
    %715 = vector.shape_cast %714 : vector<1x4x128xf32> to vector<4x128xf32>
    %716 = vector.shape_cast %713 : vector<4x128xf32> to vector<1x4x128xf32>
    tpu.vector_store %arg10[%c0_451, %c0_452, %c0_453], %716 {strides = array<i32>} : memref<1x4x128xf32, #tpu.memory_space<vmem>>, vector<1x4x128xf32>,
    return
  }
  func.func @transform_0(%arg0: i32, %arg1: i32) -> (i32, i32, i32, i32) {
    %c0_i32 = arith.constant 0 : i32
    %c0_i32_0 = arith.constant 0 : i32
    %c0_i32_1 = arith.constant 0 : i32
    %c0_i32_2 = arith.constant 0 : i32
    return %arg0, %c0_i32, %c0_i32_0, %c0_i32_1 : i32, i32, i32, i32
  }
  func.func @transform_1(%arg0: i32, %arg1: i32) -> (i32, i32, i32) {
    %c0_i32 = arith.constant 0 : i32
    %c0_i32_0 = arith.constant 0 : i32
    %c0_i32_1 = arith.constant 0 : i32
    %c0_i32_2 = arith.constant 0 : i32
    return %c0_i32, %c0_i32_0, %c0_i32_1 : i32, i32, i32
  }
  func.func @transform_2(%arg0: i32, %arg1: i32) -> (i32, i32) {
    %c0_i32 = arith.constant 0 : i32
    %c0_i32_0 = arith.constant 0 : i32
    %c0_i32_1 = arith.constant 0 : i32
    return %c0_i32, %c0_i32_0 : i32, i32
  }
  func.func @transform_3(%arg0: i32, %arg1: i32) -> (i32, i32, i32) {
    %c0_i32 = arith.constant 0 : i32
    %c0_i32_0 = arith.constant 0 : i32
    %c0_i32_1 = arith.constant 0 : i32
    %c0_i32_2 = arith.constant 0 : i32
    return %c0_i32, %c0_i32_0, %c0_i32_1 : i32, i32, i32
  }
  func.func @transform_4(%arg0: i32, %arg1: i32) -> (i32, i32) {
    %c0_i32 = arith.constant 0 : i32
    %c0_i32_0 = arith.constant 0 : i32
    %c0_i32_1 = arith.constant 0 : i32
    return %c0_i32, %c0_i32_0 : i32, i32
  }
  func.func @transform_5(%arg0: i32, %arg1: i32) -> (i32, i32) {
    %c0_i32 = arith.constant 0 : i32
    %c0_i32_0 = arith.constant 0 : i32
    %c0_i32_1 = arith.constant 0 : i32
    return %c0_i32, %c0_i32_0 : i32, i32
  }
  func.func @transform_6(%arg0: i32, %arg1: i32) -> (i32, i32) {
    %c0_i32 = arith.constant 0 : i32
    %c0_i32_0 = arith.constant 0 : i32
    %c0_i32_1 = arith.constant 0 : i32
    return %c0_i32, %c0_i32_0 : i32, i32
  }
  func.func @transform_7(%arg0: i32, %arg1: i32) -> i32 {
    %c0_i32 = arith.constant 0 : i32
    %c0_i32_0 = arith.constant 0 : i32
    return %c0_i32 : i32
  }
  func.func @transform_8(%arg0: i32, %arg1: i32) -> (i32, i32, i32) {
    %c0_i32 = arith.constant 0 : i32
    %c0_i32_0 = arith.constant 0 : i32
    return %arg0, %c0_i32, %arg1 : i32, i32, i32
  }
}

</mosaic_0001>

<bundles_post_ra>
// kernel: tpu_custom_call.1
= control target key start
LH: loop header
LB: loop body
LE: loop exit
PB: predicated region body
PF: predicated region fallthrough
CT: control target
= control target key end

     0   :  { %s5047_s0 = inlined_call_operand.vmem [shape: f32[2,4,16,16], index: 0, kind: input, shape index: {}]   ;;  %s5048_s1 = inlined_call_operand.vmem [shape: f32[4,24,1], index: 1, kind: input, shape index: {}]   ;;  %s5049_s2 = inlined_call_operand.vmem [shape: f32[24,1], index: 2, kind: input, shape index: {}]   ;;  %s5050_s3 = inlined_call_operand.vmem [shape: f32[9,24,1], index: 3, kind: input, shape index: {}]   ;;  %s5051_s4 = inlined_call_operand.vmem [shape: f32[24,1], index: 4, kind: input, shape index: {}]   ;;  %s5052_s5 = inlined_call_operand.vmem [shape: bf16[4,24], index: 5, kind: input, shape index: {}]   ;;  %s5053_s6 = inlined_call_operand.vmem [shape: f32[4,1], index: 6, kind: input, shape index: {}]   ;;  %s5054_s7 = inlined_call_operand.vmem [shape: f32[2], index: 7, kind: input, shape index: {}]   ;;  %s5055_s8 = inlined_call_operand.hbm [shape: f32[2,4,256], index: 8, kind: output, shape index: {}]  }
   0x1   :  { %5073 = sst [smem:[#allocation22_spill]] %s5047_s0 }
   0x2   :  { %5074 = sst [smem:[#allocation23_spill]] %s5054_s7 }
   0x3   :  { %13 = vsyncpa [#allocation6], 0 }
   0x4   :  { %14 = vsyncpa [#allocation5], 0 }
   0x5   :  { %16 = vsyncpa [#allocation5 + $0x1], 0  ;;  %s3653_s27 = smov 0   ;;  %s3655_s28 = smov 0  }
   0x6   :  { %s3657_s29 = smov 0   ;;  %s3659_s30 = smov 0  }
   0x7   :  { %s3661_s9 = smov 0   ;;  %s3663_s10 = smov 0  }
   0x8   :  { %s3665_s11 = smov 0   ;;  %s3667_s12 = smov 0  }
   0x9 LB: > { %s3096_s13 = sadd.s32 4294967295, %s3580_s12   ;;  %s3097_s14 = sadd.s32 4294967294, %s3580_s12   ;;  %s3580_s12 = sphi %s3667_s12, %s22_s12   ;;  %s3576_s11 = sphi %s3665_s11, %s5129_s11   ;;  %s3572_s10 = sphi %s3663_s10, %s5128_s10   ;;  %s3568_s9 = sphi %s3661_s9, %s5127_s9   ;;  %s3564_s30 = sphi %s3659_s30, %s5126_s30   ;;  %s3560_s29 = sphi %s3657_s29, %s5125_s29   ;;  %s3556_s28 = sphi %s3655_s28, %s5124_s28   ;;  %s3552_s27 = sphi %s3653_s27, %s5123_s27  }
   0xa   : > { %s31_s15 = sadd.s32 1, %s3572_s10  ;;  %s34_s16 = sadd.s32 1, %s3576_s11 }
   0xb   : > { %p32_p0 = scmp.ge.s32.totalorder %s31_s15, 2  ;;  %s216_s17 = sadd.s32 1, %s3560_s29 }
   0xc   : > { %p226_p1 = scmp.ne.s32.totalorder %s3560_s29, %s3556_s28  ;;  %p227_p2 = scmp.eq.s32.totalorder %s3096_s13, 3 }
   0xd   : > { %s5131_s15 = smov (%p32_p0, %s31_s15), 0  ;;  %s5133_s16 = smov (!%p32_p0, %s34_s16), %s3576_s11 }
   0xe   : > { %5075 = sst [smem:[#allocation10_spill]] %s5131_s15  ;;  %s212_s18 = ssub.s32 %s3572_s10, %s5131_s15 }
   0xf   : > { %p3705_p3 = por %p227_p2, %p226_p1  ;;  %p36_p4 = scmp.ge.s32.totalorder %s5133_s16, 2 }
  0x10   : > { %p232_p5 = scmp.ne.s32.totalorder %s3556_s28, %s3552_s27  ;;  %p233_p6 = scmp.eq.s32.totalorder %s3097_s14, 3 }
  0x11   : > { %p3098_p7 = scmp.ge.s32.totalorder %s3580_s12, 1  ;;  %s5135_s16 = smov (%p36_p4, %s5133_s16), 0 }
  0x12   : > { %p3714_p8 = por %p233_p6, %p232_p5  ;;  %p240_p9 = scmp.lt.s32.totalorder %s3580_s12, 5 }
  0x13   : > { %s211_s21 = ssub.s32 %s3576_s11, %s5135_s16  ;;  %p3725_p12 = scmp.eq.s32.totalorder %s3096_s13, 0 }
  0x14   : > { %s5077_s20 = scalar_select %p3714_p8, 1, 0 }
  0x15   : > { %s213_s22 = sor.u32 %s212_s18, %s211_s21  ;;  %p3721_p10 = pnand %p3098_p7, %p240_p9 }
  0x16   : > { %p214_p11 = scmp.eq.s32.totalorder %s213_s22, 0  ;;  %s5080_s7 = sld [smem:[#allocation23_spill]] }
  0x17   : > { %p3365_p13 = pneg %p3721_p10 }
  0x18   : > { %s3735_s15 = scalar_select %p214_p11, %s3560_s29, %s216_s17  }
  0x19   : > { %p3366_p0 = pnand %p3725_p12, %p3365_p13 }
  0x1b   : > { %p3469_p2 = pneg %p3366_p0 }
  0x1c   : > { %s271_s14 = sshll.u32 %s5080_s7, 4  ;;  %s272_s14 = int_to_ptr.vmem [resolvable:$true] %s271_s14 }
  0x1d   : > { %s3467_s18 = scalar_lea.vmem %s272_s14, 16  ;;  %p3475_p6 = scmp.lt.s32.totalorder %s272_s14, %s272_s14 }
  0x1e   : > { %p3468_p1 = scmp.ne.s32.totalorder %s272_s14, %s3467_s18  ;;  %p3476_p7 = scmp.lt.s32.totalorder %s3467_s18, %s3467_s18 }
  0x20   : > { %p3470_p4 = pnand %p3469_p2, %p3468_p1  ;;  %p3477_p9 = por %p3476_p7, %p3475_p6 }
  0x22   : > { %p3471_p5 = pneg %p3470_p4 }
  0x24   : > { %p3478_p8 = pnand %p3477_p9, %p3471_p5 }
  0x26   : > { %3481 = shalt.err (!%p3478_p8)
}
  0x27   : > { %s3582_s13 = smov [#allocation4]   ;;  %292 = sbr.rel (%p3721_p10) target bundleno = 1633 (0x661), region = 52 }
  0x28   : > { %3368 = dma.vmem_to_smem (!%p3366_p0), %s272_s14, 16, %s3582_s13, [#allocation6]  }
  0x2e   : > { %3543 = dma.done.wait (%p3725_p12), [#allocation6], 16  }
  0x2f   : > { %3545 = vsyncadd (%p3725_p12), [#allocation6], 4294967280 }
  0x30   : > { %298 = sfence }
  0x31   : > { %v3748_v0 = vld [vmem:[%s5048_s1 + $0x10] sm:$0xff]  ;;  %v3753_v1 = vld [vmem:[%s5048_s1] sm:$0xff]  ;;  %v3583_v2 = vmov 0   ;;  %v3760_v3 = vld [vmem:[%s5048_s1 + $0x18] sm:$0xff]  ;;  %s3839_s17 = sshll.u32 %s3564_s30, 3  ;;  %p327_p8 = scmp.lt.s32.totalorder %s3568_s9, 1  ;;  %v5063_v49 = vlaneseq }
  0x32   : > { %3466 = vset.pattern.permute.xlu1 %v3583_v2  ;;  %3465 = vset.pattern.permute.xlu0 %v3583_v2  ;;  %v3765_v4 = vld [vmem:[%s5048_s1 + $0x8] sm:$0xff]  ;;  %v3777_v6 = vld [vmem:[%s5048_s1 + $0x20] sm:$0xff]  ;;  %v3784_v7 = vld [vmem:[%s5048_s1 + $0x38] sm:$0xff]  ;;  %s3844_s21 = sadd.s32 1, %s3839_s17  ;;  %p531_p11 = scmp.gt.s32.totalorder %s3839_s17, 0  ;;  %vm571_vm0 = vcmask 122880  }
  0x33   : > { %371 = vperm.xlu1 %3466, %v3748_v0   ;;  %361 = vperm.xlu0 %3465, %v3753_v1   ;;  %v3772_v5 = vld [vmem:[%s5048_s1 + $0x28] sm:$0xff]  ;;  %v3789_v8 = vld [vmem:[%s5048_s1 + $0x30] sm:$0xff]  ;;  %v3801_v10 = vld [vmem:[%s5048_s1 + $0x40] sm:$0xff]  ;;  %p720_p10 = scmp.gt.s32.totalorder %s3844_s21, 0  ;;  %p3149_p12 = scmp.lt.s32.totalorder %s3844_s21, 15  ;;  %v5061_v32 = vmov 0.0  }
  0x34   : > { %v3796_v9 = vld [vmem:[%s5048_s1 + $0x48] sm:$0xff]  ;;  %v3808_v11 = vld [vmem:[%s5048_s1 + $0x58] sm:$0xff]  ;;  %v3813_v12 = vld [vmem:[%s5048_s1 + $0x50] sm:$0xff]  ;;  %s328_s22 = scalar_select %p327_p8, %s3568_s9, 1  ;;  %340 = vst [vmem:[#allocation2 + $0x10] sm:$0xff] %v5061_v32  ;;  %3351 = vmatprep.subr.bf16.mxu0 %v5061_v32  ;;  %v562_v61 = vshrl.u32 %v5063_v49, 7 }
  0x35   : > { %v3820_v13 = vld [vmem:[%s5049_s2 + $0x8] sm:$0xff]  ;;  %v3825_v14 = vld [vmem:[%s5049_s2] sm:$0xff]  ;;  %v3832_v15 = vld [vmem:[%s5049_s2 + $0x10] sm:$0xff]  ;;  %s721_s25 = scalar_select %p720_p10, %s3844_s21, 0  ;;  %337 = vst [vmem:[#allocation2] sm:$0xff] %v5061_v32  ;;  %vm764_vm4 = vcmask 254080  }
  0x36   : > { %p3131_p13 = scmp.lt.s32.totalorder %s3839_s17, 15  ;;  %s3327_s24 = sshll.u32 %s328_s22, 6  ;;  %342 = vst [vmem:[#allocation2 + $0x20] sm:$0xff] %v5061_v32  ;;  %vm969_vm9 = vcmask 385280   ;;  %vm527_vm12 = vcmask 138248   ;;  %vm715_vm13 = vcmask 269448  }
  0x37   : > { %393 = vperm.xlu1 %3466, %v3760_v3   ;;  %366 = vperm.xlu0 %3465, %v3765_v4   ;;  %s532_s23 = scalar_select %p531_p11, %s3839_s17, 0  ;;  %vm920_vm14 = vcmask 400648  }
  0x38   : > { %s5137_s25 = smov (!%p3149_p12, %s721_s25), 15  ;;  %s5081_s0 = sld [smem:[#allocation22_spill]] }
  0x39   : > { %s5139_s23 = smov (!%p3131_p13, %s532_s23), 15  ;;  %s3584_s22 = smov 16  }
  0x3a   : > { %s3107_s26 = sadd.s32 4294967295, %s3839_s17  ;;  %p535_p9 = scmp.ge.s32.totalorder %s3839_s17, 0 }
  0x3b   : > { %403 = vperm.xlu1 %3466, %v3772_v5   ;;  %398 = vperm.xlu0 %3465, %v3777_v6   ;;  %p344_p2 = scmp.gt.s32.totalorder %s3107_s26, 0  ;;  %p3109_p4 = scmp.lt.s32.totalorder %s3107_s26, 15 }
  0x3c   : > { %p348_p5 = scmp.ge.s32.totalorder %s3107_s26, 0  ;;  %p349_p6 = scmp.lt.s32.totalorder %s3107_s26, 16 }
  0x3d   : > { %s345_s14 = scalar_select %p344_p2, %s3107_s26, 0 }
  0x3e   : > { %s3863_s18 = scalar_lea.vmem %s5081_s0, %s3327_s24  ;;  %s3585_s24 = smov 32  }
  0x3f   : > { %430 = vperm.xlu1 %3466, %v3784_v7   ;;  %425 = vperm.xlu0 %3465, %v3789_v8   ;;  %s3868_s13 = scalar_lea.vmem %s3863_s18, %s5137_s25  ;;  %s541_s7 = scalar_lea.vmem %s3863_s18, %s5139_s23 }
  0x40   : > { %v3874_v16 = vld [vmem:[%s3868_s13] sm:$0x1]  ;;  %v3878_v18 = vld [vmem:[%s541_s7 + $0x10] sm:$0x1]  ;;  %s5143_s14 = smov (!%p3109_p4, %s345_s14), 15  ;;  %p3953_p7 = pnand %p349_p6, %p348_p5 }
  0x41   : > { %v3876_v17 = vld [vmem:[%s541_s7] sm:$0x1]  ;;  %v3882_v20 = vld [vmem:[%s541_s7 + $0x30] sm:$0x1]  ;;  %604 = vst.msk [vmem:[#allocation3 + $0x1] sm:$0x1] %vm571_vm0, %v3878_v18 }
  0x42   : > { %v3880_v19 = vld [vmem:[%s541_s7 + $0x20] sm:$0x1]  ;;  %572 = vst.msk [vmem:[#allocation3] sm:$0x1] %vm571_vm0, %v3876_v17  ;;  %668 = vst.msk [vmem:[#allocation3 + $0x3] sm:$0x1] %vm571_vm0, %v3882_v20 }
  0x43   : > { %457 = vperm.xlu1 %3466, %v3796_v9   ;;  %435 = vperm.xlu0 %3465, %v3801_v10   ;;  %636 = vst.msk [vmem:[#allocation3 + $0x2] sm:$0x1] %vm571_vm0, %v3880_v19  ;;  %v3893_v21 = vld [vmem:[%s3868_s13 + $0x10] sm:$0x1]  ;;  %v3900_v22 = vld [vmem:[%s3868_s13 + $0x20] sm:$0x1] }
  0x44   : > { %s3903_s7 = sadd.s32 2, %s3839_s17  ;;  %v3911_v23 = vld [vmem:[%s3868_s13 + $0x30] sm:$0x1]  ;;  %s354_s13 = scalar_lea.vmem %s3863_s18, %s5143_s14 }
  0x45   : > { %p925_p0 = scmp.gt.s32.totalorder %s3903_s7, 0  ;;  %p3167_p1 = scmp.lt.s32.totalorder %s3903_s7, 15  ;;  %v3120_v35 = vld [vmem:[%s354_s13 + $0x10] ss:$0 sm:$0xff]  ;;  %v3115_v38 = vld [vmem:[%s354_s13] ss:$0 sm:$0xff] }
  0x46   : > { %v3125_v39 = vld [vmem:[%s354_s13 + $0x20] ss:$0 sm:$0xff]  ;;  %v3130_v43 = vld [vmem:[%s354_s13 + $0x30] ss:$0 sm:$0xff]  ;;  %s5059_s26 = smov 1   ;;  %p536_p8 = scmp.lt.s32.totalorder %s3839_s17, 16 }
  0x47   : > { %467 = vperm.xlu1 %3466, %v3808_v11   ;;  %462 = vperm.xlu0 %3465, %v3813_v12   ;;  %s926_s25 = scalar_select %p925_p0, %s3903_s7, 0 }
  0x48   : > { %p3980_p10 = pnand %p536_p8, %p535_p9  ;;  %p724_p11 = scmp.ge.s32.totalorder %s3844_s21, 0 }
  0x49   : > { %s5141_s25 = smov (!%p3167_p1, %s926_s25), 15  ;;  %p725_p12 = scmp.lt.s32.totalorder %s3844_s21, 16 }
  0x4a   : > { %s935_s23 = scalar_lea.vmem %s3863_s18, %s5141_s25  ;;  %s335_s25 = sld [smem:[#allocation4]] }
  0x4b   : > { %490 = vperm.xlu1 %3466, %v3820_v13   ;;  %485 = vperm.xlu0 %3465, %v3825_v14   ;;  %v3922_v24 = vld [vmem:[%s935_s23] sm:$0x1]  ;;  %v3928_v25 = vld [vmem:[%s935_s23 + $0x10] sm:$0x1]  ;;  %s3136_s13 = scalar_select %p3980_p10, 0, 1 }
  0x4c   : > { %v3934_v26 = vld [vmem:[%s935_s23 + $0x20] sm:$0x1]  ;;  %v3940_v27 = vld [vmem:[%s935_s23 + $0x30] sm:$0x1]  ;;  %s3114_s23 = scalar_select %p3953_p7, 0, 1 }
  0x4d   : > { %p726_p13 = pnand %p725_p12, %p724_p11  ;;  %p929_p0 = scmp.ge.s32.totalorder %s3903_s7, 0 }
  0x4e   : > { %p930_p1 = scmp.lt.s32.totalorder %s3903_s7, 16  ;;  %s3591_s14 = smov 48  }
  0x4f   : > { %553 = vperm.xlu1 %3466, %v3765_v4   ;;  %495 = vperm.xlu0 %3465, %v3832_v15  }
  0x50   : > { %p4039_p2 = pnand %p930_p1, %p929_p0 }
  0x52   : > { %s3172_s7 = scalar_select %p4039_p2, 0, 1 }
  0x53   : > { %581 = vperm.xlu1 %3466, %v3760_v3   ;;  %548 = vperm.xlu0 %3465, %v3753_v1  }
  0x57   : > { %591 = vperm.xlu1 %3466, %v3772_v5   ;;  %558 = vperm.xlu0 %3465, %v3748_v0  }
  0x5b   : > { %618 = vperm.xlu1 %3466, %v3784_v7   ;;  %586 = vperm.xlu0 %3465, %v3777_v6  }
  0x5f   : > { %645 = vperm.xlu1 %3466, %v3796_v9   ;;  %613 = vperm.xlu0 %3465, %v3789_v8  }
  0x63   : > { %655 = vperm.xlu1 %3466, %v3808_v11   ;;  %623 = vperm.xlu0 %3465, %v3801_v10  }
  0x67   : > { %679 = vperm.xlu1 %3466, %v3820_v13   ;;  %650 = vperm.xlu0 %3465, %v3813_v12  }
  0x6b   : > { %742 = vperm.xlu1 %3466, %v3765_v4   ;;  %674 = vperm.xlu0 %3465, %v3825_v14  }
  0x6f   : > { %684 = vperm.xlu0 %3465, %v3832_v15   ;;  %761 = vrot.lane.b32.xlu1 %v3874_v16, %s3584_s22 }
  0x73   : > { %737 = vperm.xlu0 %3465, %v3753_v1   ;;  %779 = vperm.xlu1 %3466, %v3777_v6  }
  0x77   : > { %747 = vperm.xlu0 %3465, %v3748_v0   ;;  %798 = vrot.lane.b32.xlu1 %v3893_v21, %s3584_s22 }
  0x7b   : > { %774 = vperm.xlu0 %3465, %v3760_v3   ;;  %815 = vperm.xlu1 %3466, %v3784_v7  }
  0x7f   : > { %784 = vperm.xlu0 %3465, %v3772_v5   ;;  %834 = vrot.lane.b32.xlu1 %v3900_v22, %s3584_s22 }
  0x83   : > { %810 = vperm.xlu0 %3465, %v3789_v8   ;;  %851 = vperm.xlu1 %3466, %v3813_v12  }
  0x87   : > { %820 = vperm.xlu0 %3465, %v3801_v10   ;;  %870 = vrot.lane.b32.xlu1 %v3911_v23, %s3584_s22  ;;  %s540_s22 = scvt.s32.f32 %s3136_s13  ;;  %s4050_s13 = sadd.s32 3, %s3839_s17 }
  0x88   : > { %p1130_p4 = scmp.gt.s32.totalorder %s4050_s13, 0  ;;  %p3185_p5 = scmp.lt.s32.totalorder %s4050_s13, 15 }
  0x89   : > { %p1134_p6 = scmp.ge.s32.totalorder %s4050_s13, 0  ;;  %p1135_p7 = scmp.lt.s32.totalorder %s4050_s13, 16 }
  0x8b   : > { %846 = vperm.xlu0 %3465, %v3796_v9   ;;  %884 = vperm.xlu1 %3466, %v3820_v13   ;;  %p4086_p9 = pnand %p1135_p7, %p1134_p6 }
  0x8f   : > { %856 = vperm.xlu0 %3465, %v3808_v11   ;;  %947 = vperm.xlu1 %3466, %v3765_v4  }
  0x93   : > { %879 = vperm.xlu0 %3465, %v3825_v14   ;;  %966 = vrot.lane.b32.xlu1 %v3922_v24, %s3585_s24 }
  0x97   : > { %889 = vperm.xlu0 %3465, %v3832_v15   ;;  %984 = vperm.xlu1 %3466, %v3777_v6  }
  0x9b   : > { %942 = vperm.xlu0 %3465, %v3753_v1   ;;  %1003 = vrot.lane.b32.xlu1 %v3928_v25, %s3585_s24 }
  0x9f   : > { %952 = vperm.xlu0 %3465, %v3748_v0   ;;  %1020 = vperm.xlu1 %3466, %v3784_v7  }
  0xa3   : > { %979 = vperm.xlu0 %3465, %v3760_v3   ;;  %1039 = vrot.lane.b32.xlu1 %v3934_v26, %s3585_s24 }
  0xa7   : > { %989 = vperm.xlu0 %3465, %v3772_v5   ;;  %1056 = vperm.xlu1 %3466, %v3813_v12  }
  0xab   : > { %1015 = vperm.xlu0 %3465, %v3789_v8   ;;  %1075 = vrot.lane.b32.xlu1 %v3940_v27, %s3585_s24  ;;  %s353_s24 = scvt.s32.f32 %s3114_s23 }
  0xac   : > { %s3154_s23 = scalar_select %p726_p13, 0, 1 }
  0xae   : > { %s729_s21 = scvt.s32.f32 %s3154_s23 }
  0xaf   : > { %1025 = vperm.xlu0 %3465, %v3801_v10   ;;  %s1131_s23 = scalar_select %p1130_p4, %s4050_s13, 0 }
  0xb0   : > { %s3190_s13 = scalar_select %p4086_p9, 0, 1 }
  0xb1   : > { %s5145_s23 = smov (!%p3185_p5, %s1131_s23), 15 }
  0xb2   : > { %v372_v28 = vpop.permute.xlu1 %371  ;;  %v362_v29 = vpop.permute.xlu0 %361 }
  0xb3   : > { %1051 = vperm.xlu0 %3465, %v3796_v9   ;;  %v378_v45 = vmul.f32 %v3115_v38, %v362_v29  ;;  %v380_v50 = vmul.f32 %v3115_v38, %v372_v28 }
  0xb6   : > { %v394_v30 = vpop.permute.xlu1 %393  ;;  %v367_v31 = vpop.permute.xlu0 %366 }
  0xb7   : > { %1061 = vperm.xlu0 %3465, %v3808_v11   ;;  %v410_v40 = vmul.f32 %v3120_v35, %v394_v30  ;;  %v379_v46 = vmul.f32 %v3115_v38, %v367_v31  ;;  %v3960_v31 = vstv %s335_s25  ;;  %v511_v38 = vstv %s353_s24  ;;  %s5057_s25 = smov 17   ;;  %s3589_s24 = smov 33  }
  0xb9   : > { %v413_v52 = vadd.f32 %v410_v40, %v378_v45 }
  0xba   : > { %v404_v33 = vpop.permute.xlu1 %403  ;;  %v399_v34 = vpop.permute.xlu0 %398 }
  0xbb   : > { %v411_v41 = vmul.f32 %v3120_v35, %v399_v34  ;;  %v412_v51 = vmul.f32 %v3120_v35, %v404_v33 }
  0xbd   : > { %v414_v53 = vadd.f32 %v411_v41, %v379_v46  ;;  %v415_v62 = vadd.f32 %v412_v51, %v380_v50 }
  0xbe   : > { %v431_v36 = vpop.permute.xlu1 %430  ;;  %v426_v37 = vpop.permute.xlu0 %425 }
  0xbf   : > { %v443_v47 = vmul.f32 %v3125_v39, %v431_v36  ;;  %v442_v48 = vmul.f32 %v3125_v39, %v426_v37  ;;  %v3962_v36 = vsub.s32 0, %v562_v61 }
  0xc1   : > { %v446_v58 = vadd.f32 %v443_v47, %v414_v53  ;;  %v445_v59 = vadd.f32 %v442_v48, %v413_v52  ;;  %v564_v50 = vrot.slane %v3876_v17, %v3962_v36 }
  0xc2   : > { %v458_v42 = vpop.permute.xlu1 %457  ;;  %v436_v44 = vpop.permute.xlu0 %435 }
  0xc3   : > { %v474_v54 = vmul.f32 %v3130_v43, %v458_v42  ;;  %v444_v55 = vmul.f32 %v3125_v39, %v436_v44  ;;  %v597_v44 = vrot.slane %v3878_v18, %v3962_v36 }
  0xc5   : > { %v477_v29 = vadd.f32 %v474_v54, %v445_v59  ;;  %v447_v28 = vadd.f32 %v444_v55, %v415_v62  ;;  %v629_v62 = vrot.slane %v3880_v19, %v3962_v36 }
  0xc6   : > { %v468_v56 = vpop.permute.xlu1 %467  ;;  %v463_v57 = vpop.permute.xlu0 %462 }
  0xc7   : > { %v475_v60 = vmul.f32 %v3130_v43, %v463_v57  ;;  %v476_v63 = vmul.f32 %v3130_v43, %v468_v56 }
  0xc9   : > { %v478_v2 = vadd.f32 %v475_v60, %v446_v58  ;;  %v479_v37 = vadd.f32 %v476_v63, %v447_v28 }
  0xca   : > { %v491_v30 = vpop.permute.xlu1 %490  ;;  %v486_v33 = vpop.permute.xlu0 %485 }
  0xcb   : > { %v499_v34 = vadd.f32 %v491_v30, %v478_v2  ;;  %v498_v35 = vadd.f32 %v486_v33, %v477_v29 }
  0xcd   : > { %vm502_vm1 = vcmp.ge.f32.partialorder %v499_v34, 0.0  ;;  %v506_v39 = vmul.f32 %v3960_v31, %v499_v34  ;;  %vm501_vm2 = vcmp.ge.f32.partialorder %v498_v35, 0.0  ;;  %v505_v40 = vmul.f32 %v3960_v31, %v498_v35 }
  0xce   : > { %v554_v41 = vpop.permute.xlu1 %553  ;;  %v496_v42 = vpop.permute.xlu0 %495 }
  0xcf   : > { %v500_v43 = vadd.f32 %v496_v42, %v479_v37  ;;  %v509_v45 = vsel %vm502_vm1, %v499_v34, %v506_v39  ;;  %v508_v46 = vsel %vm501_vm2, %v498_v35, %v505_v40  ;;  %v566_v29 = vmul.f32 %v564_v50, %v554_v41 }
  0xd0   : > { %v513_v47 = vmul.f32 %v511_v38, %v509_v45  ;;  %v512_v48 = vmul.f32 %v511_v38, %v508_v46  ;;  %v661_v34 = vrot.slane %v3882_v20, %v3962_v36  ;;  %vm1125_vm2 = vcmask 531848  }
  0xd1   : > { %vm503_vm3 = vcmp.ge.f32.partialorder %v500_v43, 0.0  ;;  %v507_v51 = vmul.f32 %v3960_v31, %v500_v43 }
  0xd2   : > { %v582_v52 = vpop.permute.xlu1 %581  ;;  %v549_v53 = vpop.permute.xlu0 %548  ;;  %520 = vrot.lane.b32.xlu0 %v513_v47, %s5059_s26  ;;  %518 = vrot.lane.b32.xlu1 %v512_v48, %s5059_s26 }
  0xd3   : > { %v598_v54 = vmul.f32 %v597_v44, %v582_v52  ;;  %v565_v18 = vmul.f32 %v564_v50, %v549_v53  ;;  %v510_v55 = vsel %vm503_vm3, %v500_v43, %v507_v51  ;;  %vm1174_vm3 = vcmask 516480  }
  0xd4   : > { %v514_v56 = vmul.f32 %v511_v38, %v510_v55  ;;  %v699_v55 = vstv %s540_s22  ;;  %s934_s22 = scvt.s32.f32 %s3172_s7 }
  0xd5   : > { %v601_v57 = vadd.f32 %v598_v54, %v565_v18 }
  0xd6   : > { %v592_v58 = vpop.permute.xlu1 %591  ;;  %v559_v59 = vpop.permute.xlu0 %558  ;;  %522 = vrot.lane.b32.xlu1 %v514_v56, %s5059_s26  ;;  %s4351_s26 = sadd.s32 6, %s3839_s17 }
  0xd7   : > { %v600_v17 = vmul.f32 %v597_v44, %v592_v58  ;;  %v567_v60 = vmul.f32 %v564_v50, %v559_v59  ;;  %v753_v58 = vrot.slane %v3874_v16, %v3962_v36  ;;  %p1745_p2 = scmp.gt.s32.totalorder %s4351_s26, 0  ;;  %p3239_p4 = scmp.lt.s32.totalorder %s4351_s26, 15 }
  0xd8   : > { %p1749_p7 = scmp.ge.s32.totalorder %s4351_s26, 0  ;;  %p1750_p9 = scmp.lt.s32.totalorder %s4351_s26, 16 }
  0xd9   : > { %v603_v61 = vadd.f32 %v600_v17, %v567_v60  ;;  %v790_v60 = vrot.slane %v3893_v21, %v3962_v36 }
  0xda   : > { %v619_v63 = vpop.permute.xlu1 %618  ;;  %v587_v2 = vpop.permute.xlu0 %586 }
  0xdb   : > { %v599_v28 = vmul.f32 %v597_v44, %v587_v2  ;;  %v631_v30 = vmul.f32 %v629_v62, %v619_v63 }
  0xdd   : > { %v602_v33 = vadd.f32 %v599_v28, %v566_v29 }
  0xde   : > { %v646_v35 = vpop.permute.xlu1 %645  ;;  %v614_v37 = vpop.permute.xlu0 %613 }
  0xdf   : > { %v630_v38 = vmul.f32 %v629_v62, %v614_v37  ;;  %v634_v39 = vadd.f32 %v631_v30, %v602_v33  ;;  %v662_v19 = vmul.f32 %v661_v34, %v646_v35 }
  0xe1   : > { %v633_v40 = vadd.f32 %v630_v38, %v601_v57 }
  0xe2   : > { %v656_v41 = vpop.permute.xlu1 %655  ;;  %v624_v42 = vpop.permute.xlu0 %623 }
  0xe3   : > { %v632_v43 = vmul.f32 %v629_v62, %v624_v42  ;;  %v665_v44 = vadd.f32 %v662_v19, %v633_v40  ;;  %v664_v45 = vmul.f32 %v661_v34, %v656_v41 }
  0xe5   : > { %v635_v46 = vadd.f32 %v632_v43, %v603_v61 }
  0xe6   : > { %v680_v20 = vpop.permute.xlu1 %679  ;;  %v651_v47 = vpop.permute.xlu0 %650 }
  0xe7   : > { %v663_v48 = vmul.f32 %v661_v34, %v651_v47  ;;  %v667_v50 = vadd.f32 %v664_v45, %v635_v46  ;;  %v826_v46 = vrot.slane %v3900_v22, %v3962_v36 }
  0xe9   : > { %v666_v51 = vadd.f32 %v663_v48, %v634_v39  ;;  %v862_v48 = vrot.slane %v3911_v23, %v3962_v36 }
  0xea   : > { %v743_v52 = vpop.permute.xlu1 %742  ;;  %v675_v53 = vpop.permute.xlu0 %674 }
  0xeb   : > { %v688_v54 = vadd.f32 %v680_v20, %v666_v51  ;;  %v687_v18 = vadd.f32 %v675_v53, %v665_v44  ;;  %v755_v16 = vmul.f32 %v753_v58, %v743_v52 }
  0xed   : > { %vm690_vm5 = vcmp.ge.f32.partialorder %v687_v18, 0.0  ;;  %v693_v56 = vmul.f32 %v687_v18, %v3960_v31  ;;  %vm691_vm6 = vcmp.ge.f32.partialorder %v688_v54, 0.0  ;;  %v694_v57 = vmul.f32 %v688_v54, %v3960_v31 }
  0xee   : > { %v685_v59 = vpop.permute.xlu0 %684  ;;  %v762_v17 = vpop.permute.xlu1 %761 }
  0xef   : > { %v689_v61 = vadd.f32 %v685_v59, %v667_v50  ;;  %765 = vst.msk [vmem:[#allocation3] sm:$0x1] %vm764_vm4, %v762_v17  ;;  %v697_v62 = vsel %vm691_vm6, %v688_v54, %v694_v57  ;;  %v696_v63 = vsel %vm690_vm5, %v687_v18, %v693_v56 }
  0xf0   : > { %v701_v2 = vmul.f32 %v699_v55, %v697_v62  ;;  %v700_v29 = vmul.f32 %v699_v55, %v696_v63 }
  0xf1   : > { %vm692_vm7 = vcmp.ge.f32.partialorder %v689_v61, 0.0  ;;  %v695_v28 = vmul.f32 %v689_v61, %v3960_v31 }
  0xf2   : > { %v738_v30 = vpop.permute.xlu0 %737  ;;  %v780_v33 = vpop.permute.xlu1 %779  ;;  %708 = vrot.lane.b32.xlu0 %v701_v2, %s5057_s25  ;;  %706 = vrot.lane.b32.xlu1 %v700_v29, %s5057_s25 }
  0xf3   : > { %v792_v21 = vmul.f32 %v790_v60, %v780_v33  ;;  %v698_v34 = vsel %vm692_vm7, %v689_v61, %v695_v28  ;;  %v754_v41 = vmul.f32 %v753_v58, %v738_v30  ;;  %v904_v61 = vstv %s729_s21  ;;  %s3590_s21 = smov 49  }
  0xf4   : > { %v702_v35 = vmul.f32 %v699_v55, %v698_v34  ;;  %vm1330_vm7 = vcmask 663048  }
  0xf5   : > { %v795_v37 = vadd.f32 %v792_v21, %v755_v16 }
  0xf6   : > { %v748_v38 = vpop.permute.xlu0 %747  ;;  %v799_v39 = vpop.permute.xlu1 %798  ;;  %710 = vrot.lane.b32.xlu1 %v702_v35, %s5057_s25  ;;  %s1746_s25 = scalar_select %p1745_p2, %s4351_s26, 0 }
  0xf7   : > { %801 = vst.msk [vmem:[#allocation3 + $0x1] sm:$0x1] %vm764_vm4, %v799_v39  ;;  %v756_v20 = vmul.f32 %v753_v58, %v748_v38 }
  0xf8   : > { %s5151_s25 = smov (!%p3239_p4, %s1746_s25), 15 }
  0xfa   : > { %v775_v19 = vpop.permute.xlu0 %774  ;;  %v816_v40 = vpop.permute.xlu1 %815 }
  0xfb   : > { %v791_v42 = vmul.f32 %v790_v60, %v775_v19  ;;  %v828_v53 = vmul.f32 %v826_v46, %v816_v40 }
  0xfd   : > { %v794_v43 = vadd.f32 %v791_v42, %v754_v41  ;;  %v831_v56 = vadd.f32 %v828_v53, %v795_v37 }
  0xfe   : > { %v785_v44 = vpop.permute.xlu0 %784  ;;  %v835_v45 = vpop.permute.xlu1 %834 }
  0xff   : > { %v793_v47 = vmul.f32 %v790_v60, %v785_v44  ;;  %837 = vst.msk [vmem:[#allocation3 + $0x2] sm:$0x1] %vm764_vm4, %v835_v45 }
 0x101   : > { %v796_v50 = vadd.f32 %v793_v47, %v756_v20 }
 0x102   : > { %v811_v51 = vpop.permute.xlu0 %810  ;;  %v852_v52 = vpop.permute.xlu1 %851 }
 0x103   : > { %v864_v54 = vmul.f32 %v862_v48, %v852_v52  ;;  %v827_v59 = vmul.f32 %v826_v46, %v811_v51 }
 0x105   : > { %v867_v22 = vadd.f32 %v864_v54, %v831_v56  ;;  %v830_v2 = vadd.f32 %v827_v59, %v794_v43 }
 0x106   : > { %v821_v18 = vpop.permute.xlu0 %820  ;;  %v871_v55 = vpop.permute.xlu1 %870 }
 0x107   : > { %873 = vst.msk [vmem:[#allocation3 + $0x3] sm:$0x1] %vm764_vm4, %v871_v55  ;;  %v829_v29 = vmul.f32 %v826_v46, %v821_v18 }
 0x109   : > { %v832_v35 = vadd.f32 %v829_v29, %v796_v50  ;;  %v958_v29 = vrot.slane %v3922_v24, %v3962_v36 }
 0x10a   : > { %v847_v57 = vpop.permute.xlu0 %846  ;;  %v885_v58 = vpop.permute.xlu1 %884 }
 0x10b   : > { %v893_v17 = vadd.f32 %v885_v58, %v867_v22  ;;  %v863_v60 = vmul.f32 %v862_v48, %v847_v57 }
 0x10d   : > { %vm896_vm8 = vcmp.ge.f32.partialorder %v893_v17, 0.0  ;;  %v899_v23 = vmul.f32 %v893_v17, %v3960_v31  ;;  %v866_v16 = vadd.f32 %v863_v60, %v830_v2  ;;  %v995_v2 = vrot.slane %v3928_v25, %v3962_v36 }
 0x10e   : > { %v857_v62 = vpop.permute.xlu0 %856  ;;  %v4007_v63 = vpop.permute.xlu1 %947 }
 0x10f   : > { %v902_v28 = vsel %vm896_vm8, %v893_v17, %v899_v23  ;;  %v865_v33 = vmul.f32 %v862_v48, %v857_v62  ;;  %vm1379_vm8 = vcmask 647680  }
 0x110   : > { %v906_v30 = vmul.f32 %v904_v61, %v902_v28  ;;  %v1031_v28 = vrot.slane %v3934_v26, %v3962_v36 }
 0x111   : > { %v868_v39 = vadd.f32 %v865_v33, %v832_v35 }
 0x112   : > { %v880_v21 = vpop.permute.xlu0 %879  ;;  %v967_v34 = vpop.permute.xlu1 %966  ;;  %913 = vrot.lane.b32.xlu0 %v906_v30, %s3589_s24 }
 0x113   : > { %v892_v37 = vadd.f32 %v880_v21, %v866_v16  ;;  %970 = vst.msk [vmem:[#allocation3] sm:$0x1] %vm969_vm9, %v967_v34  ;;  %v1067_v16 = vrot.slane %v3940_v27, %v3962_v36 }
 0x115   : > { %vm895_vm10 = vcmp.ge.f32.partialorder %v892_v37, 0.0  ;;  %v898_v38 = vmul.f32 %v892_v37, %v3960_v31 }
 0x116   : > { %v890_v19 = vpop.permute.xlu0 %889  ;;  %v4011_v40 = vpop.permute.xlu1 %984  ;;  %1084 = vperm.xlu0 %3465, %v3825_v14  }
 0x117   : > { %v894_v41 = vadd.f32 %v890_v19, %v868_v39  ;;  %v901_v42 = vsel %vm895_vm10, %v892_v37, %v898_v38 }
 0x118   : > { %v905_v43 = vmul.f32 %v904_v61, %v901_v42 }
 0x119   : > { %vm897_vm11 = vcmp.ge.f32.partialorder %v894_v41, 0.0  ;;  %v900_v44 = vmul.f32 %v894_v41, %v3960_v31 }
 0x11a   : > { %v943_v45 = vpop.permute.xlu0 %942  ;;  %v1004_v46 = vpop.permute.xlu1 %1003  ;;  %1094 = vperm.xlu0 %3465, %v3832_v15   ;;  %911 = vrot.lane.b32.xlu1 %v905_v43, %s3589_s24 }
 0x11b   : > { %1006 = vst.msk [vmem:[#allocation3 + $0x1] sm:$0x1] %vm969_vm9, %v1004_v46  ;;  %v903_v20 = vsel %vm897_vm11, %v894_v41, %v900_v44  ;;  %v959_v25 = vmul.f32 %v958_v29, %v943_v45  ;;  %v997_v45 = vmul.f32 %v995_v2, %v4011_v40 }
 0x11c   : > { %v907_v47 = vmul.f32 %v904_v61, %v903_v20 }
 0x11e   : > { %v953_v48 = vpop.permute.xlu0 %952  ;;  %v4017_v50 = vpop.permute.xlu1 %1020  ;;  %915 = vrot.lane.b32.xlu1 %v907_v47, %s3589_s24  ;;  %v1109_v47 = vstv %s934_s22  ;;  %s1140_s24 = scalar_lea.vmem %s3863_s18, %s5145_s23  ;;  %s1139_s22 = scvt.s32.f32 %s3190_s13 }
 0x11f   : > { %v961_v26 = vmul.f32 %v958_v29, %v953_v48  ;;  %s4096_s23 = sadd.s32 4, %s3839_s17  ;;  %s3595_s13 = smov 80  }
 0x120   : > { %p1335_p8 = scmp.gt.s32.totalorder %s4096_s23, 0  ;;  %p3203_p10 = scmp.lt.s32.totalorder %s4096_s23, 15 }
 0x121   : > { %p1339_p11 = scmp.ge.s32.totalorder %s4096_s23, 0  ;;  %p1340_p12 = scmp.lt.s32.totalorder %s4096_s23, 16 }
 0x122   : > { %v980_v51 = vpop.permute.xlu0 %979  ;;  %v1040_v52 = vpop.permute.xlu1 %1039  ;;  %1089 = vperm.xlu1 %3466, %v3820_v13  }
 0x123   : > { %1042 = vst.msk [vmem:[#allocation3 + $0x2] sm:$0x1] %vm969_vm9, %v1040_v52  ;;  %v996_v30 = vmul.f32 %v995_v2, %v980_v51  ;;  %v960_v51 = vmul.f32 %v958_v29, %v4007_v63  ;;  %v1033_v52 = vmul.f32 %v1031_v28, %v4017_v50  ;;  %p4200_p13 = pnand %p1340_p12, %p1339_p11 }
 0x125   : > { %v999_v34 = vadd.f32 %v996_v30, %v959_v25 }
 0x126   : > { %v4021_v53 = vpop.permute.xlu1 %1056  ;;  %v990_v54 = vpop.permute.xlu0 %989 }
 0x127   : > { %v998_v24 = vmul.f32 %v995_v2, %v990_v54  ;;  %v3195_v2 = vld [vmem:[%s1140_s24 + $0x20] sm:$0x1] }
 0x129   : > { %v1001_v19 = vadd.f32 %v998_v24, %v961_v26 }
 0x12a   : > { %v1076_v18 = vpop.permute.xlu1 %1075  ;;  %v1016_v55 = vpop.permute.xlu0 %1015 }
 0x12b   : > { %1078 = vst.msk [vmem:[#allocation3 + $0x3] sm:$0x1] %vm969_vm9, %v1076_v18  ;;  %v1032_v21 = vmul.f32 %v1031_v28, %v1016_v55 }
 0x12d   : > { %v1035_v38 = vadd.f32 %v1032_v21, %v999_v34 }
 0x12e   : > { %v1026_v56 = vpop.permute.xlu0 %1025 }
 0x12f   : > { %v1034_v39 = vmul.f32 %v1031_v28, %v1026_v56  ;;  %v1000_v56 = vadd.f32 %v997_v45, %v960_v51  ;;  %v1236_v28 = vrot.slane %v3195_v2, %v3962_v36 }
 0x131   : > { %v1037_v43 = vadd.f32 %v1034_v39, %v1001_v19 }
 0x132   : > { %v1052_v22 = vpop.permute.xlu0 %1051 }
 0x133   : > { %v1068_v35 = vmul.f32 %v1067_v16, %v1052_v22  ;;  %v1069_v22 = vmul.f32 %v1067_v16, %v4021_v53  ;;  %v1141_v53 = vld [vmem:[%s1140_s24] sm:$0x1] }
 0x134   : > { %v1163_v29 = vrot.slane %v1141_v53, %v3962_v36 }
 0x135   : > { %v1071_v42 = vadd.f32 %v1068_v35, %v1035_v38 }
 0x136   : > { %v1062_v57 = vpop.permute.xlu0 %1061 }
 0x137   : > { %v1070_v41 = vmul.f32 %v1067_v16, %v1062_v57  ;;  %v1036_v57 = vadd.f32 %v1033_v52, %v1000_v56 }
 0x139   : > { %v1073_v20 = vadd.f32 %v1070_v41, %v1037_v43  ;;  %v1072_v63 = vadd.f32 %v1069_v22, %v1036_v57 }
 0x144   : > { %v521_v58 = vpop.permute.xlu0 %520  ;;  %v519_v59 = vpop.permute.xlu1 %518 }
 0x145   : > { %529 = vst.msk [vmem:[#allocation2 + $0x10] sm:$0xff] %vm527_vm12, %v521_v58  ;;  %528 = vst.msk [vmem:[#allocation2] sm:$0xff] %vm527_vm12, %v519_v59 }
 0x148   : > { %v523_v17 = vpop.permute.xlu1 %522 }
 0x149   : > { %530 = vst.msk [vmem:[#allocation2 + $0x20] sm:$0xff] %vm527_vm12, %v523_v17 }
 0x164   : > { %v709_v60 = vpop.permute.xlu0 %708  ;;  %v707_v23 = vpop.permute.xlu1 %706 }
 0x165   : > { %717 = vst.msk [vmem:[#allocation2 + $0x10] sm:$0xff] %vm715_vm13, %v709_v60  ;;  %716 = vst.msk [vmem:[#allocation2] sm:$0xff] %vm715_vm13, %v707_v23 }
 0x168   : > { %v711_v61 = vpop.permute.xlu1 %710 }
 0x169   : > { %718 = vst.msk [vmem:[#allocation2 + $0x20] sm:$0xff] %vm715_vm13, %v711_v61 }
 0x184   : > { %v914_v62 = vpop.permute.xlu0 %913 }
 0x185   : > { %922 = vst.msk [vmem:[#allocation2 + $0x10] sm:$0xff] %vm920_vm14, %v914_v62  ;;  %v3191_v62 = vld [vmem:[%s1140_s24 + $0x10] sm:$0x1] }
 0x18c   : > { %v912_v33 = vpop.permute.xlu1 %911 }
 0x18d   : > { %921 = vst.msk [vmem:[#allocation2] sm:$0xff] %vm920_vm14, %v912_v33 }
 0x190   : > { %v916_v37 = vpop.permute.xlu1 %915 }
 0x191   : > { %923 = vst.msk [vmem:[#allocation2 + $0x20] sm:$0xff] %vm920_vm14, %v916_v37  ;;  %vm1535_vm14 = vcmask 794248  }
 0x195   : > { %v1085_v27 = vpop.permute.xlu0 %1084 }
 0x196   : > { %v1097_v44 = vadd.f32 %v1085_v27, %v1071_v42 }
 0x198   : > { %vm1100_vm15 = vcmp.ge.f32.partialorder %v1097_v44, 0.0  ;;  %v1103_v46 = vmul.f32 %v1097_v44, %v3960_v31 }
 0x199   : > { %v1095_v48 = vpop.permute.xlu0 %1094 }
 0x19a   : > { %v1099_v54 = vadd.f32 %v1095_v48, %v1073_v20  ;;  %v1106_v18 = vsel %vm1100_vm15, %v1097_v44, %v1103_v46  ;;  %v1314_v46 = vstv %s1139_s22  ;;  %s1336_s22 = scalar_select %p1335_p8, %s4096_s23, 0  ;;  %vm1584_vm15 = vcmask 778880  }
 0x19b   : > { %v1110_v55 = vmul.f32 %v1109_v47, %v1106_v18  ;;  %s3208_s23 = scalar_select %p4200_p13, 0, 1 }
 0x19c   : > { %vm1102_vm0 = vcmp.ge.f32.partialorder %v1099_v54, 0.0  ;;  %v1105_v40 = vmul.f32 %v1099_v54, %v3960_v31  ;;  %s5147_s22 = smov (!%p3203_p10, %s1336_s22), 15  ;;  %p4413_p8 = pnand %p1750_p9, %p1749_p7 }
 0x19d   : > { %1116 = vrot.lane.b32.xlu1 %v1110_v55, %s3590_s21  ;;  %s1345_s0 = scalar_lea.vmem %s3863_s18, %s5147_s22  ;;  %s4209_s22 = sadd.s32 5, %s3839_s17 }
 0x19e   : > { %v1108_v58 = vsel %vm1102_vm0, %v1099_v54, %v1105_v40  ;;  %p1540_p0 = scmp.gt.s32.totalorder %s4209_s22, 0  ;;  %p3221_p1 = scmp.lt.s32.totalorder %s4209_s22, 15  ;;  %vm338_vm0 = vcmask 277504  }
 0x19f   : > { %v1112_v59 = vmul.f32 %v1109_v47, %v1108_v58  ;;  %339 = vst.msk [vmem:[#allocation2 + $0x8] sm:$0xff] %vm338_vm0, %v5061_v32  ;;  %341 = vst.msk [vmem:[#allocation2 + $0x18] sm:$0xff] %vm338_vm0, %v5061_v32  ;;  %p1544_p10 = scmp.ge.s32.totalorder %s4209_s22, 0  ;;  %p1545_p11 = scmp.lt.s32.totalorder %s4209_s22, 16 }
 0x1a0   : > { %343 = vst.msk [vmem:[#allocation2 + $0x28] sm:$0xff] %vm338_vm0, %v5061_v32  ;;  %vm1947_vm0 = vcmask 7168  }
 0x1a1   : > { %1120 = vrot.lane.b32.xlu1 %v1112_v59, %s3590_s21  ;;  %v1090_v50 = vpop.permute.xlu1 %1089 }
 0x1a2   : > { %v1098_v17 = vadd.f32 %v1090_v50, %v1072_v63  ;;  %v4101_v50 = vld [vmem:[%s5048_s1] sm:$0xff] }
 0x1a4   : > { %vm1101_vm1 = vcmp.ge.f32.partialorder %v1098_v17, 0.0  ;;  %v1104_v60 = vmul.f32 %v1098_v17, %v3960_v31 }
 0x1a5   : > { %1152 = vperm.xlu1 %3466, %v3765_v4   ;;  %v3199_v4 = vld [vmem:[%s1140_s24 + $0x30] sm:$0x1]  ;;  %s1541_s24 = scalar_select %p1540_p0, %s4209_s22, 0 }
 0x1a6   : > { %v1107_v23 = vsel %vm1101_vm1, %v1098_v17, %v1104_v60  ;;  %v1272_v30 = vrot.slane %v3199_v4, %v3962_v36 }
 0x1a7   : > { %v1111_v61 = vmul.f32 %v1109_v47, %v1107_v23  ;;  %s5149_s24 = smov (!%p3221_p1, %s1541_s24), 15  ;;  %p4439_p1 = pnand %p1545_p11, %p1544_p10 }
 0x1a8   : > { %s4219_s7 = scalar_lea.vmem %s3863_s18, %s5149_s24  ;;  %s4411_s24 = sadd.s32 8, %s3839_s17 }
 0x1a9   : > { %1171 = vrot.lane.b32.xlu1 %v1141_v53, %s3591_s14  ;;  %1118 = vrot.lane.b32.xlu0 %v1111_v61, %s3590_s21  ;;  %s3592_s21 = smov 65   ;;  %p2158_p0 = scmp.gt.s32.totalorder %s4411_s24, 0 }
 0x1aa   : > { %p3275_p4 = scmp.lt.s32.totalorder %s4411_s24, 15 }
 0x1ad   : > { %1189 = vperm.xlu1 %3466, %v3777_v6   ;;  %1147 = vperm.xlu0 %3465, %v3753_v1  }
 0x1b1   : > { %1208 = vrot.lane.b32.xlu1 %v3191_v62, %s3591_s14  ;;  %1157 = vperm.xlu0 %3465, %v3748_v0  }
 0x1b5   : > { %1225 = vperm.xlu1 %3466, %v3784_v7   ;;  %1184 = vperm.xlu0 %3465, %v3760_v3  }
 0x1b9   : > { %1244 = vrot.lane.b32.xlu1 %v3195_v2, %s3591_s14  ;;  %1194 = vperm.xlu0 %3465, %v3772_v5  }
 0x1bd   : > { %1261 = vperm.xlu1 %3466, %v3813_v12   ;;  %1220 = vperm.xlu0 %3465, %v3789_v8  }
 0x1c1   : > { %1280 = vrot.lane.b32.xlu1 %v3199_v4, %s3591_s14  ;;  %1230 = vperm.xlu0 %3465, %v3801_v10   ;;  %s3593_s14 = smov 64  }
 0x1c5   : > { %1294 = vperm.xlu1 %3466, %v3820_v13   ;;  %1256 = vperm.xlu0 %3465, %v3796_v9   ;;  %v1200_v13 = vrot.slane %v3191_v62, %v3962_v36  ;;  %v4109_v62 = vld [vmem:[%s5048_s1 + $0x10] sm:$0xff] }
 0x1c9   : > { %1266 = vperm.xlu0 %3465, %v3808_v11  }
 0x1cd   : > { %1289 = vperm.xlu0 %3465, %v3825_v14  }
 0x1d1   : > { %1299 = vperm.xlu0 %3465, %v3832_v15  }
 0x20f   : > { %v1117_v0 = vpop.permute.xlu1 %1116 }
 0x210   : > { %1126 = vst.msk [vmem:[#allocation2] sm:$0xff] %vm1125_vm2, %v1117_v0 }
 0x213   : > { %v1121_v1 = vpop.permute.xlu1 %1120 }
 0x214   : > { %1128 = vst.msk [vmem:[#allocation2 + $0x20] sm:$0xff] %vm1125_vm2, %v1121_v1  ;;  %v4118_v1 = vld [vmem:[%s5048_s1 + $0x18] sm:$0xff] }
 0x21b   : > { %v1119_v3 = vpop.permute.xlu0 %1118 }
 0x21c   : > { %1127 = vst.msk [vmem:[#allocation2 + $0x10] sm:$0xff] %vm1125_vm2, %v1119_v3 }
 0x224   : > { %v1153_v5 = vpop.permute.xlu1 %1152 }
 0x225   : > { %v1165_v21 = vmul.f32 %v1163_v29, %v1153_v5  ;;  %v4124_v5 = vld [vmem:[%s5048_s1 + $0x8] sm:$0xff] }
 0x228   : > { %v1172_v6 = vpop.permute.xlu1 %1171 }
 0x229   : > { %1175 = vst.msk [vmem:[#allocation3] sm:$0x1] %vm1174_vm3, %v1172_v6  ;;  %v4129_v6 = vld [vmem:[%s5048_s1 + $0x28] sm:$0xff] }
 0x22c   : > { %v1148_v7 = vpop.permute.xlu0 %1147  ;;  %v1190_v8 = vpop.permute.xlu1 %1189 }
 0x22d   : > { %v1202_v33 = vmul.f32 %v1200_v13, %v1190_v8  ;;  %v1164_v41 = vmul.f32 %v1163_v29, %v1148_v7  ;;  %v1346_v7 = vld [vmem:[%s1345_s0] sm:$0x1]  ;;  %v4137_v8 = vld [vmem:[%s5048_s1 + $0x30] sm:$0xff] }
 0x22f   : > { %v1205_v24 = vadd.f32 %v1202_v33, %v1165_v21  ;;  %v3217_v33 = vld [vmem:[%s1345_s0 + $0x30] sm:$0x1] }
 0x230   : > { %v1158_v9 = vpop.permute.xlu0 %1157  ;;  %v1209_v10 = vpop.permute.xlu1 %1208 }
 0x231   : > { %1211 = vst.msk [vmem:[#allocation3 + $0x1] sm:$0x1] %vm1174_vm3, %v1209_v10  ;;  %v1166_v52 = vmul.f32 %v1163_v29, %v1158_v9  ;;  %v4143_v9 = vld [vmem:[%s5048_s1 + $0x20] sm:$0xff] }
 0x232   : > { %v4148_v10 = vld [vmem:[%s5048_s1 + $0x40] sm:$0xff] }
 0x233   : > { %v4173_v29 = vld [vmem:[%s5049_s2] sm:$0xff] }
 0x234   : > { %v1185_v11 = vpop.permute.xlu0 %1184  ;;  %v1226_v12 = vpop.permute.xlu1 %1225 }
 0x235   : > { %v1238_v34 = vmul.f32 %v1236_v28, %v1226_v12  ;;  %v1201_v39 = vmul.f32 %v1200_v13, %v1185_v11  ;;  %v3209_v11 = vld [vmem:[%s1345_s0 + $0x10] sm:$0x1]  ;;  %v4155_v12 = vld [vmem:[%s5048_s1 + $0x48] sm:$0xff] }
 0x237   : > { %v1241_v38 = vadd.f32 %v1238_v34, %v1205_v24  ;;  %v1204_v45 = vadd.f32 %v1201_v39, %v1164_v41  ;;  %v1405_v41 = vrot.slane %v3209_v11, %v3962_v36 }
 0x238   : > { %v1195_v14 = vpop.permute.xlu0 %1194  ;;  %v1245_v15 = vpop.permute.xlu1 %1244 }
 0x239   : > { %1247 = vst.msk [vmem:[#allocation3 + $0x2] sm:$0x1] %vm1174_vm3, %v1245_v15  ;;  %v1203_v20 = vmul.f32 %v1200_v13, %v1195_v14  ;;  %v4161_v13 = vld [vmem:[%s5048_s1 + $0x38] sm:$0xff]  ;;  %v3213_v15 = vld [vmem:[%s1345_s0 + $0x20] sm:$0x1]  ;;  %s4366_s0 = sadd.s32 7, %s3839_s17 }
 0x23a   : > { %v4166_v14 = vld [vmem:[%s5048_s1 + $0x58] sm:$0xff]  ;;  %p1954_p5 = scmp.gt.s32.totalorder %s4366_s0, 0  ;;  %p3257_p6 = scmp.lt.s32.totalorder %s4366_s0, 15 }
 0x23b   : > { %v1206_v22 = vadd.f32 %v1203_v20, %v1166_v52  ;;  %p1958_p12 = scmp.ge.s32.totalorder %s4366_s0, 0  ;;  %p1959_p13 = scmp.lt.s32.totalorder %s4366_s0, 16 }
 0x23c   : > { %v1221_v16 = vpop.permute.xlu0 %1220  ;;  %v1262_v25 = vpop.permute.xlu1 %1261  ;;  %s3244_s17 = scalar_select %p4413_p8, 0, 1 }
 0x23d   : > { %v1274_v35 = vmul.f32 %v1272_v30, %v1262_v25  ;;  %v1237_v43 = vmul.f32 %v1236_v28, %v1221_v16  ;;  %v4191_v16 = vld [vmem:[%s5049_s2 + $0x8] sm:$0xff]  ;;  %p4450_p2 = pnand %p1959_p13, %p1958_p12 }
 0x23e   : > { %s1754_s22 = scvt.s32.f32 %s3244_s17 }
 0x23f   : > { %v1277_v19 = vadd.f32 %v1274_v35, %v1241_v38  ;;  %v1240_v54 = vadd.f32 %v1237_v43, %v1204_v45  ;;  %v1368_v43 = vrot.slane %v1346_v7, %v3962_v36  ;;  %v1477_v45 = vrot.slane %v3217_v33, %v3962_v36 }
 0x240   : > { %v1231_v37 = vpop.permute.xlu0 %1230  ;;  %v1281_v26 = vpop.permute.xlu1 %1280 }
 0x241   : > { %1283 = vst.msk [vmem:[#allocation3 + $0x3] sm:$0x1] %vm1174_vm3, %v1281_v26  ;;  %v1239_v18 = vmul.f32 %v1236_v28, %v1231_v37  ;;  %v4179_v28 = vld [vmem:[%s5048_s1 + $0x50] sm:$0xff] }
 0x243   : > { %v1242_v59 = vadd.f32 %v1239_v18, %v1206_v22 }
 0x244   : > { %v1257_v42 = vpop.permute.xlu0 %1256  ;;  %v1295_v27 = vpop.permute.xlu1 %1294 }
 0x245   : > { %v1303_v44 = vadd.f32 %v1295_v27, %v1277_v19  ;;  %v1273_v47 = vmul.f32 %v1272_v30, %v1257_v42 }
 0x247   : > { %vm1306_vm4 = vcmp.ge.f32.partialorder %v1303_v44, 0.0  ;;  %v1309_v48 = vmul.f32 %v1303_v44, %v3960_v31  ;;  %v1276_v57 = vadd.f32 %v1273_v47, %v1240_v54 }
 0x248   : > { %v1267_v51 = vpop.permute.xlu0 %1266 }
 0x249   : > { %v1312_v55 = vsel %vm1306_vm4, %v1303_v44, %v1309_v48  ;;  %v1275_v40 = vmul.f32 %v1272_v30, %v1267_v51  ;;  %v4184_v30 = vld [vmem:[%s5049_s2 + $0x10] sm:$0xff]  ;;  %v1441_v44 = vrot.slane %v3213_v15, %v3962_v36 }
 0x24a   : > { %v1316_v56 = vmul.f32 %v1314_v46, %v1312_v55 }
 0x24b   : > { %v1278_v60 = vadd.f32 %v1275_v40, %v1242_v59 }
 0x24c   : > { %v1290_v58 = vpop.permute.xlu0 %1289  ;;  %1323 = vrot.lane.b32.xlu0 %v1316_v56, %s3592_s21 }
 0x24d   : > { %v1302_v63 = vadd.f32 %v1290_v58, %v1276_v57 }
 0x24f   : > { %vm1305_vm5 = vcmp.ge.f32.partialorder %v1302_v63, 0.0  ;;  %v1308_v17 = vmul.f32 %v1302_v63, %v3960_v31 }
 0x250   : > { %v1300_v53 = vpop.permute.xlu0 %1299  ;;  %1352 = vperm.xlu0 %3465, %v4101_v50  }
 0x251   : > { %v1311_v23 = vsel %vm1305_vm5, %v1302_v63, %v1308_v17  ;;  %v1304_v61 = vadd.f32 %v1300_v53, %v1278_v60 }
 0x252   : > { %v1315_v2 = vmul.f32 %v1314_v46, %v1311_v23 }
 0x253   : > { %vm1307_vm6 = vcmp.ge.f32.partialorder %v1304_v61, 0.0  ;;  %v1310_v4 = vmul.f32 %v1304_v61, %v3960_v31 }
 0x254   : > { %1321 = vrot.lane.b32.xlu1 %v1315_v2, %s3592_s21  ;;  %1362 = vperm.xlu0 %3465, %v4109_v62  }
 0x255   : > { %v1313_v0 = vsel %vm1307_vm6, %v1304_v61, %v1310_v4 }
 0x256   : > { %v1317_v3 = vmul.f32 %v1314_v46, %v1313_v0 }
 0x258   : > { %1325 = vrot.lane.b32.xlu1 %v1317_v3, %s3592_s21  ;;  %1389 = vperm.xlu0 %3465, %v4118_v1   ;;  %s3594_s21 = smov 81  }
 0x25c   : > { %1357 = vperm.xlu1 %3466, %v4124_v5   ;;  %1399 = vperm.xlu0 %3465, %v4129_v6  }
 0x260   : > { %1376 = vrot.lane.b32.xlu1 %v1346_v7, %s3593_s14  ;;  %1425 = vperm.xlu0 %3465, %v4137_v8  }
 0x264   : > { %1394 = vperm.xlu1 %3466, %v4143_v9   ;;  %1435 = vperm.xlu0 %3465, %v4148_v10  }
 0x268   : > { %1413 = vrot.lane.b32.xlu1 %v3209_v11, %s3593_s14  ;;  %1461 = vperm.xlu0 %3465, %v4155_v12  }
 0x26c   : > { %1430 = vperm.xlu1 %3466, %v4161_v13   ;;  %1471 = vperm.xlu0 %3465, %v4166_v14  }
 0x270   : > { %1449 = vrot.lane.b32.xlu1 %v3213_v15, %s3593_s14  ;;  %1494 = vperm.xlu0 %3465, %v4173_v29  }
 0x274   : > { %1466 = vperm.xlu1 %3466, %v4179_v28   ;;  %1504 = vperm.xlu0 %3465, %v4184_v30  }
 0x278   : > { %1485 = vrot.lane.b32.xlu1 %v3217_v33, %s3593_s14  ;;  %s1344_s14 = scvt.s32.f32 %s3208_s23  ;;  %s1755_s23 = scalar_lea.vmem %s3863_s18, %s5151_s25 }
 0x279   : > { %s3603_s25 = smov 96  }
 0x27a   : > { %v1519_v61 = vstv %s1344_s14  ;;  %s1955_s14 = scalar_select %p1954_p5, %s4366_s0, 0 }
 0x27b   : > { %s3226_s0 = scalar_select %p4439_p1, 0, 1 }
 0x27c   : > { %1499 = vperm.xlu1 %3466, %v4191_v16   ;;  %s5153_s14 = smov (!%p3257_p6, %s1955_s14), 15  ;;  %p2162_p5 = scmp.ge.s32.totalorder %s4411_s24, 0 }
 0x27d   : > { %s1964_s26 = scalar_lea.vmem %s3863_s18, %s5153_s14  ;;  %s1549_s14 = scvt.s32.f32 %s3226_s0 }
 0x27e   : > { %v4481_v32 = vld [vmem:[%s1964_s26 + $0x30] sm:$0x1]  ;;  %p2163_p6 = scmp.lt.s32.totalorder %s4411_s24, 16  ;;  %s5105_s0 = smov 17  }
 0x27f   : > { %5100 = vst [vmem:[#allocation21_spill] sm:$0xff] %v4481_v32 }
 0x280   : > { %p4591_p7 = pnand %p2163_p6, %p2162_p5 }
 0x2be   : > { %v1324_v25 = vpop.permute.xlu0 %1323 }
 0x2bf   : > { %1332 = vst.msk [vmem:[#allocation2 + $0x10] sm:$0xff] %vm1330_vm7, %v1324_v25 }
 0x2c6   : > { %v1322_v21 = vpop.permute.xlu1 %1321 }
 0x2c7   : > { %1331 = vst.msk [vmem:[#allocation2] sm:$0xff] %vm1330_vm7, %v1322_v21 }
 0x2ca   : > { %v1326_v34 = vpop.permute.xlu1 %1325 }
 0x2cb   : > { %1333 = vst.msk [vmem:[#allocation2 + $0x20] sm:$0xff] %vm1330_vm7, %v1326_v34 }
 0x2cf   : > { %v1353_v24 = vpop.permute.xlu0 %1352 }
 0x2d0   : > { %v1369_v48 = vmul.f32 %v1368_v43, %v1353_v24 }
 0x2d3   : > { %v1363_v35 = vpop.permute.xlu0 %1362 }
 0x2d4   : > { %v1371_v22 = vmul.f32 %v1368_v43, %v1363_v35 }
 0x2d7   : > { %v1390_v37 = vpop.permute.xlu0 %1389 }
 0x2d8   : > { %v1406_v46 = vmul.f32 %v1405_v41, %v1390_v37 }
 0x2da   : > { %v1409_v52 = vadd.f32 %v1406_v46, %v1369_v48  ;;  %v4231_v46 = vld [vmem:[%s4219_s7 + $0x10] sm:$0x1] }
 0x2db   : > { %v1400_v26 = vpop.permute.xlu0 %1399  ;;  %v1358_v38 = vpop.permute.xlu1 %1357 }
 0x2dc   : > { %v1408_v54 = vmul.f32 %v1405_v41, %v1400_v26  ;;  %v1370_v11 = vmul.f32 %v1368_v43, %v1358_v38 }
 0x2de   : > { %v1411_v58 = vadd.f32 %v1408_v54, %v1371_v22 }
 0x2df   : > { %v1426_v39 = vpop.permute.xlu0 %1425  ;;  %v1377_v19 = vpop.permute.xlu1 %1376 }
 0x2e0   : > { %1380 = vst.msk [vmem:[#allocation3] sm:$0x1] %vm1379_vm8, %v1377_v19  ;;  %v1442_v51 = vmul.f32 %v1441_v44, %v1426_v39 }
 0x2e2   : > { %v1445_v40 = vadd.f32 %v1442_v51, %v1409_v52 }
 0x2e3   : > { %v1436_v42 = vpop.permute.xlu0 %1435  ;;  %v1395_v27 = vpop.permute.xlu1 %1394 }
 0x2e4   : > { %v1444_v57 = vmul.f32 %v1441_v44, %v1436_v42  ;;  %v1407_v2 = vmul.f32 %v1405_v41, %v1395_v27 }
 0x2e6   : > { %v1447_v53 = vadd.f32 %v1444_v57, %v1411_v58  ;;  %v1410_v34 = vadd.f32 %v1407_v2, %v1370_v11 }
 0x2e7   : > { %v1462_v20 = vpop.permute.xlu0 %1461  ;;  %v1414_v47 = vpop.permute.xlu1 %1413 }
 0x2e8   : > { %1416 = vst.msk [vmem:[#allocation3 + $0x1] sm:$0x1] %vm1379_vm8, %v1414_v47  ;;  %v1478_v18 = vmul.f32 %v1477_v45, %v1462_v20  ;;  %v4239_v20 = vld [vmem:[%s4219_s7 + $0x20] sm:$0x1] }
 0x2ea   : > { %v1481_v63 = vadd.f32 %v1478_v18, %v1445_v40 }
 0x2eb   : > { %v1472_v55 = vpop.permute.xlu0 %1471  ;;  %v1431_v56 = vpop.permute.xlu1 %1430 }
 0x2ec   : > { %v1480_v59 = vmul.f32 %v1477_v45, %v1472_v55  ;;  %v1443_v15 = vmul.f32 %v1441_v44, %v1431_v56  ;;  %v4224_v44 = vld [vmem:[%s4219_s7] sm:$0x1] }
 0x2ee   : > { %v1483_v0 = vadd.f32 %v1480_v59, %v1447_v53  ;;  %v1446_v26 = vadd.f32 %v1443_v15, %v1410_v34  ;;  %v4388_v34 = vld [vmem:[%s1755_s23] sm:$0x1] }
 0x2ef   : > { %v1495_v17 = vpop.permute.xlu0 %1494  ;;  %v1450_v60 = vpop.permute.xlu1 %1449  ;;  %5088 = vst [vmem:[#allocation12_spill] sm:$0xff] %v4388_v34 }
 0x2f0   : > { %v1507_v23 = vadd.f32 %v1495_v17, %v1481_v63  ;;  %1452 = vst.msk [vmem:[#allocation3 + $0x2] sm:$0x1] %vm1379_vm8, %v1450_v60 }
 0x2f2   : > { %vm1510_vm9 = vcmp.ge.f32.partialorder %v1507_v23, 0.0  ;;  %v1513_v4 = vmul.f32 %v1507_v23, %v3960_v31 }
 0x2f3   : > { %v1505_v3 = vpop.permute.xlu0 %1504  ;;  %v1467_v7 = vpop.permute.xlu1 %1466 }
 0x2f4   : > { %v1516_v33 = vsel %vm1510_vm9, %v1507_v23, %v1513_v4  ;;  %v1509_v25 = vadd.f32 %v1505_v3, %v1483_v0  ;;  %v1479_v35 = vmul.f32 %v1477_v45, %v1467_v7 }
 0x2f5   : > { %v1520_v21 = vmul.f32 %v1519_v61, %v1516_v33  ;;  %v4379_v33 = vld [vmem:[%s1755_s23 + $0x10] sm:$0x1] }
 0x2f6   : > { %vm1512_vm10 = vcmp.ge.f32.partialorder %v1509_v25, 0.0  ;;  %v1515_v24 = vmul.f32 %v1509_v25, %v3960_v31  ;;  %v1482_v19 = vadd.f32 %v1479_v35, %v1446_v26  ;;  %5087 = vst [vmem:[#allocation11_spill] sm:$0xff] %v4379_v33  ;;  %v4394_v35 = vrot.slane %v4379_v33, %v3962_v36 }
 0x2f7   : > { %1526 = vrot.lane.b32.xlu1 %v1520_v21, %s3594_s21  ;;  %v1486_v37 = vpop.permute.xlu1 %1485 }
 0x2f8   : > { %v1518_v39 = vsel %vm1512_vm10, %v1509_v25, %v1515_v24  ;;  %1488 = vst.msk [vmem:[#allocation3 + $0x3] sm:$0x1] %vm1379_vm8, %v1486_v37  ;;  %v4390_v24 = vld [vmem:[%s1755_s23 + $0x20] sm:$0x1]  ;;  %v4396_v37 = vld [vmem:[%s1755_s23 + $0x30] sm:$0x1] }
 0x2f9   : > { %v1522_v38 = vmul.f32 %v1519_v61, %v1518_v39  ;;  %5089 = vst [vmem:[#allocation13_spill] sm:$0xff] %v4390_v24  ;;  %5090 = vst [vmem:[#allocation14_spill] sm:$0xff] %v4396_v37 }
 0x2fb   : > { %1530 = vrot.lane.b32.xlu1 %v1522_v38, %s3594_s21  ;;  %v1500_v41 = vpop.permute.xlu1 %1499  ;;  %v4404_v38 = vrot.slane %v4388_v34, %v3962_v36 }
 0x2fc   : > { %v1508_v42 = vadd.f32 %v1500_v41, %v1482_v19  ;;  %v4408_v19 = vrot.slane %v4390_v24, %v3962_v36 }
 0x2fe   : > { %vm1511_vm11 = vcmp.ge.f32.partialorder %v1508_v42, 0.0  ;;  %v1514_v27 = vmul.f32 %v1508_v42, %v3960_v31 }
 0x2ff   : > { %1562 = vperm.xlu1 %3466, %v4124_v5  }
 0x300   : > { %v1517_v43 = vsel %vm1511_vm11, %v1508_v42, %v1514_v27  ;;  %v4422_v42 = vrot.slane %v4396_v37, %v3962_v36 }
 0x301   : > { %v1521_v45 = vmul.f32 %v1519_v61, %v1517_v43 }
 0x303   : > { %1581 = vrot.lane.b32.xlu1 %v4224_v44, %s3595_s13  ;;  %1528 = vrot.lane.b32.xlu0 %v1521_v45, %s3594_s21  ;;  %s2159_s21 = scalar_select %p2158_p0, %s4411_s24, 0 }
 0x304   : > { %s3280_s24 = scalar_select %p4591_p7, 0, 1 }
 0x305   : > { %s5155_s21 = smov (!%p3275_p4, %s2159_s21), 15 }
 0x306   : > { %s2167_s23 = scvt.s32.f32 %s3280_s24 }
 0x307   : > { %1599 = vperm.xlu1 %3466, %v4143_v9   ;;  %1557 = vperm.xlu0 %3465, %v4101_v50  }
 0x30b   : > { %1618 = vrot.lane.b32.xlu1 %v4231_v46, %s3595_s13  ;;  %1567 = vperm.xlu0 %3465, %v4109_v62  }
 0x30f   : > { %1635 = vperm.xlu1 %3466, %v4161_v13   ;;  %1594 = vperm.xlu0 %3465, %v4118_v1  }
 0x313   : > { %1654 = vrot.lane.b32.xlu1 %v4239_v20, %s3595_s13  ;;  %1604 = vperm.xlu0 %3465, %v4129_v6  }
 0x317   : > { %1671 = vperm.xlu1 %3466, %v4179_v28   ;;  %1630 = vperm.xlu0 %3465, %v4137_v8  }
 0x31b   : > { %1762 = vperm.xlu1 %3466, %v4101_v50   ;;  %1640 = vperm.xlu0 %3465, %v4148_v10  }
 0x31f   : > { %1799 = vperm.xlu1 %3466, %v4118_v1   ;;  %1666 = vperm.xlu0 %3465, %v4155_v12  }
 0x323   : > { %1971 = vperm.xlu1 %3466, %v4101_v50   ;;  %1676 = vperm.xlu0 %3465, %v4166_v14  }
 0x327   : > { %2008 = vperm.xlu1 %3466, %v4118_v1   ;;  %1767 = vperm.xlu0 %3465, %v4124_v5  }
 0x32b   : > { %1835 = vperm.xlu1 %3466, %v4137_v8   ;;  %1804 = vperm.xlu0 %3465, %v4143_v9  }
 0x32f   : > { %2175 = vperm.xlu1 %3466, %v4101_v50   ;;  %1976 = vperm.xlu0 %3465, %v4124_v5  }
 0x333   : > { %2206 = vperm.xlu1 %3466, %v4118_v1   ;;  %2013 = vperm.xlu0 %3465, %v4143_v9  }
 0x337   : > { %1772 = vperm.xlu1 %3466, %v4109_v62   ;;  %1840 = vperm.xlu0 %3465, %v4161_v13  }
 0x33b   : > { %2044 = vperm.xlu1 %3466, %v4137_v8   ;;  %2180 = vperm.xlu0 %3465, %v4124_v5  }
 0x33f   : > { %1871 = vperm.xlu1 %3466, %v4155_v12   ;;  %2211 = vperm.xlu0 %3465, %v4143_v9  }
 0x343   : > { %1981 = vperm.xlu1 %3466, %v4109_v62   ;;  %1809 = vperm.xlu0 %3465, %v4129_v6  }
 0x347   : > { %2237 = vperm.xlu1 %3466, %v4137_v8   ;;  %2049 = vperm.xlu0 %3465, %v4161_v13  }
 0x34b   : > { %1845 = vperm.xlu1 %3466, %v4148_v10   ;;  %1876 = vperm.xlu0 %3465, %v4179_v28  }
 0x34f   : > { %2085 = vperm.xlu1 %3466, %v4179_v28   ;;  %2018 = vperm.xlu0 %3465, %v4129_v6  }
 0x353   : > { %2216 = vperm.xlu1 %3466, %v4129_v6   ;;  %2242 = vperm.xlu0 %3465, %v4161_v13  }
 0x357   : > { %2268 = vperm.xlu1 %3466, %v4155_v12   ;;  %2080 = vperm.xlu0 %3465, %v4155_v12  }
 0x35b   : > { %1881 = vperm.xlu1 %3466, %v4166_v14   ;;  %2185 = vperm.xlu0 %3465, %v4109_v62  }
 0x35f   : > { %1904 = vperm.xlu1 %3466, %v4173_v29   ;;  %2054 = vperm.xlu0 %3465, %v4148_v10  }
 0x363   : > { %2090 = vperm.xlu1 %3466, %v4166_v14   ;;  %2273 = vperm.xlu0 %3465, %v4179_v28  }
 0x367   : > { %1704 = vperm.xlu1 %3466, %v4191_v16   ;;  %2247 = vperm.xlu0 %3465, %v4148_v10  }
 0x369   : > { %v1527_v50 = vpop.permute.xlu1 %1526 }
 0x36a   : > { %1536 = vst.msk [vmem:[#allocation2] sm:$0xff] %vm1535_vm14, %v1527_v50 }
 0x36b   : > { %2118 = vperm.xlu1 %3466, %v4191_v16   ;;  %1909 = vperm.xlu0 %3465, %v4191_v16  }
 0x36d   : > { %v1531_v62 = vpop.permute.xlu1 %1530 }
 0x36e   : > { %1538 = vst.msk [vmem:[#allocation2 + $0x20] sm:$0xff] %vm1535_vm14, %v1531_v62  ;;  %v4445_v62 = vrot.slane %v4231_v46, %v3962_v36  ;;  %v4465_v46 = vrot.slane %v4239_v20, %v3962_v36 }
 0x36f   : > { %2296 = vperm.xlu1 %3466, %v4173_v29   ;;  %1699 = vperm.xlu0 %3465, %v4173_v29  }
 0x373   : > { %1914 = vperm.xlu1 %3466, %v4184_v30   ;;  %2113 = vperm.xlu0 %3465, %v4173_v29  }
 0x375   : > { %v1529_v1 = vpop.permute.xlu0 %1528 }
 0x376   : > { %1537 = vst.msk [vmem:[#allocation2 + $0x10] sm:$0xff] %vm1535_vm14, %v1529_v1 }
 0x377   : > { %2123 = vperm.xlu1 %3466, %v4184_v30   ;;  %2278 = vperm.xlu0 %3465, %v4166_v14  }
 0x37b   : > { %2301 = vperm.xlu0 %3465, %v4191_v16  }
 0x37e   : > { %v4295_v5 = vpop.permute.xlu1 %1562 }
 0x37f   : > { %1709 = vperm.xlu0 %3465, %v4184_v30  }
 0x382   : > { %v1582_v6 = vpop.permute.xlu1 %1581 }
 0x383   : > { %1585 = vst.msk [vmem:[#allocation3] sm:$0x1] %vm1584_vm15, %v1582_v6  ;;  %2306 = vperm.xlu0 %3465, %v4184_v30  }
 0x386   : > { %v4300_v8 = vpop.permute.xlu0 %1557  ;;  %v4302_v9 = vpop.permute.xlu1 %1599 }
 0x38a   : > { %v4304_v10 = vpop.permute.xlu0 %1567  ;;  %v1619_v12 = vpop.permute.xlu1 %1618 }
 0x38b   : > { %1621 = vst.msk [vmem:[#allocation3 + $0x1] sm:$0x1] %vm1584_vm15, %v1619_v12 }
 0x38e   : > { %v4307_v13 = vpop.permute.xlu0 %1594  ;;  %v4309_v14 = vpop.permute.xlu1 %1635 }
 0x392   : > { %v4311_v29 = vpop.permute.xlu0 %1604  ;;  %v1655_v28 = vpop.permute.xlu1 %1654 }
 0x393   : > { %1657 = vst.msk [vmem:[#allocation3 + $0x2] sm:$0x1] %vm1584_vm15, %v1655_v28 }
 0x396   : > { %v4314_v16 = vpop.permute.xlu0 %1630  ;;  %v4316_v30 = vpop.permute.xlu1 %1671 }
 0x39a   : > { %v4318_v47 = vpop.permute.xlu0 %1640  ;;  %v4320_v48 = vpop.permute.xlu1 %1762 }
 0x39b   : > { %v1779_v45 = vmul.f32 %v4404_v38, %v4320_v48  ;;  %v4461_v48 = vrot.slane %v4224_v44, %v3962_v36  ;;  %v1612_v44 = vmul.f32 %v4445_v62, %v4302_v9 }
 0x39d   : > { %v1575_v33 = vmul.f32 %v4461_v48, %v4295_v5  ;;  %v4515_v5 = vrot.slane %v4481_v32, %v3962_v36 }
 0x39e   : > { %v4322_v51 = vpop.permute.xlu0 %1666  ;;  %v1800_v52 = vpop.permute.xlu1 %1799 }
 0x39f   : > { %v1816_v41 = vmul.f32 %v4394_v35, %v1800_v52  ;;  %v4468_v52 = vld [vmem:[%s4219_s7 + $0x30] sm:$0x1]  ;;  %s3262_s7 = scalar_select %p4450_p2, 0, 1 }
 0x3a0   : > { %5096 = vst [vmem:[#allocation17_spill] sm:$0xff] %v4468_v52 }
 0x3a1   : > { %v1819_v1 = vadd.f32 %v1816_v41, %v1779_v45  ;;  %v4473_v41 = vld [vmem:[%s1964_s26 + $0x10] sm:$0x1]  ;;  %v4479_v45 = vld [vmem:[%s1964_s26 + $0x20] sm:$0x1]  ;;  %s1963_s17 = scvt.s32.f32 %s3262_s7  ;;  %s3323_s7 = sshll.u32 %s3568_s9, 1 }
 0x3a2   : > { %v4324_v54 = vpop.permute.xlu0 %1676  ;;  %v4326_v18 = vpop.permute.xlu1 %1971  ;;  %5098 = vst [vmem:[#allocation19_spill] sm:$0xff] %v4473_v41  ;;  %5099 = vst [vmem:[#allocation20_spill] sm:$0xff] %v4479_v45  ;;  %v4511_v24 = vrot.slane %v4479_v45, %v3962_v36 }
 0x3a6   : > { %v4328_v55 = vpop.permute.xlu0 %1767  ;;  %v4330_v56 = vpop.permute.xlu1 %2008 }
 0x3aa   : > { %v4332_v22 = vpop.permute.xlu0 %1804  ;;  %v1836_v40 = vpop.permute.xlu1 %1835 }
 0x3ab   : > { %v1852_v50 = vmul.f32 %v4408_v19, %v1836_v40  ;;  %v4470_v40 = vld [vmem:[%s1964_s26] sm:$0x1]  ;;  %s2168_s26 = scalar_lea.vmem %s3863_s18, %s5155_s21  ;;  %s3596_s18 = smov 113  }
 0x3ac   : > { %5097 = vst [vmem:[#allocation18_spill] sm:$0xff] %v4470_v40  ;;  %v4493_v49 = vrot.slane %v4470_v40, %v3962_v36  ;;  %v1574_v40 = vmul.f32 %v4461_v48, %v4300_v8  ;;  %s3597_s21 = smov 97  }
 0x3ae   : > { %v4334_v57 = vpop.permute.xlu0 %1976  ;;  %v4336_v58 = vpop.permute.xlu1 %2175 }
 0x3b2   : > { %v4338_v59 = vpop.permute.xlu0 %2013  ;;  %v4340_v63 = vpop.permute.xlu1 %2206 }
 0x3b6   : > { %v4342_v17 = vpop.permute.xlu0 %1840  ;;  %v4344_v60 = vpop.permute.xlu1 %1772 }
 0x3ba   : > { %v4346_v53 = vpop.permute.xlu0 %2180  ;;  %v4348_v23 = vpop.permute.xlu1 %2044 }
 0x3be   : > { %v4353_v61 = vpop.permute.xlu0 %2211  ;;  %v1872_v2 = vpop.permute.xlu1 %1871 }
 0x3bf   : > { %v1888_v6 = vmul.f32 %v4422_v42, %v1872_v2  ;;  %v1855_v2 = vadd.f32 %v1852_v50, %v1819_v1  ;;  %v1611_v50 = vmul.f32 %v4445_v62, %v4307_v13  ;;  %v4489_v1 = vrot.slane %v4468_v52, %v3962_v36 }
 0x3c0   : > { %v4503_v13 = vrot.slane %v4473_v41, %v3962_v36  ;;  %v1615_v52 = vadd.f32 %v1612_v44, %v1575_v33  ;;  %v1817_v41 = vmul.f32 %v4394_v35, %v4332_v22  ;;  %v1780_v44 = vmul.f32 %v4404_v38, %v4328_v55 }
 0x3c1   : > { %v1891_v20 = vadd.f32 %v1888_v6, %v1855_v2  ;;  %v1648_v6 = vmul.f32 %v4465_v46, %v4309_v14  ;;  %v4517_v14 = vstv %s1754_s22  ;;  %v1614_v8 = vadd.f32 %v1611_v50, %v1574_v40  ;;  %s5102_s22 = smov 1  }
 0x3c2   : > { %v4359_v4 = vpop.permute.xlu0 %1809  ;;  %v4361_v0 = vpop.permute.xlu1 %1981  ;;  %v1684_v36 = vmul.f32 %v4489_v1, %v4316_v30  ;;  %v2026_v45 = vmul.f32 %v4503_v13, %v4338_v59  ;;  %v1853_v40 = vmul.f32 %v4408_v19, %v4342_v17  ;;  %v1989_v30 = vmul.f32 %v4493_v49, %v4334_v57  ;;  %v4541_v59 = vld [vmem:[%s2168_s26 + $0x10] ss:$0 sm:$0xff] }
 0x3c3   : > { %v1651_v22 = vadd.f32 %v1648_v6, %v1615_v52  ;;  %v1820_v55 = vadd.f32 %v1817_v41, %v1780_v44  ;;  %v4548_v6 = vstv %s1549_s14  ;;  %v1818_v44 = vmul.f32 %v4394_v35, %v4359_v4  ;;  %s3604_s14 = smov 95  }
 0x3c4   : > { %v2029_v57 = vadd.f32 %v2026_v45, %v1989_v30  ;;  %v2025_v45 = vmul.f32 %v4503_v13, %v4330_v56  ;;  %v2061_v4 = vmul.f32 %v4511_v24, %v4348_v23 }
 0x3c5   : > { %v1687_v41 = vadd.f32 %v1684_v36, %v1651_v22  ;;  %v4573_v22 = vld [vmem:[%s2168_s26 + $0x30] ss:$0 sm:$0xff] }
 0x3c6   : > { %v4368_v3 = vpop.permute.xlu0 %2049  ;;  %v4370_v7 = vpop.permute.xlu1 %2237 }
 0x3c7   : > { %v2062_v34 = vmul.f32 %v4511_v24, %v4368_v3 }
 0x3c9   : > { %v2065_v36 = vadd.f32 %v2062_v34, %v2029_v57 }
 0x3ca   : > { %v4373_v11 = vpop.permute.xlu0 %1876  ;;  %v4375_v15 = vpop.permute.xlu1 %1845 }
 0x3cb   : > { %v1889_v17 = vmul.f32 %v4422_v42, %v4373_v11  ;;  %v1854_v34 = vmul.f32 %v4408_v19, %v4375_v15 }
 0x3ce   : > { %v4382_v25 = vpop.permute.xlu0 %2018  ;;  %v4384_v21 = vpop.permute.xlu1 %2085 }
 0x3cf   : > { %v2098_v3 = vmul.f32 %v4515_v5, %v4384_v21  ;;  %v1856_v21 = vadd.f32 %v1853_v40, %v1820_v55  ;;  %v1781_v40 = vmul.f32 %v4404_v38, %v4344_v60 }
 0x3d1   : > { %v1821_v23 = vadd.f32 %v1818_v44, %v1781_v40 }
 0x3d2   : > { %v4398_v26 = vpop.permute.xlu0 %2242  ;;  %v4400_v39 = vpop.permute.xlu1 %2216 }
 0x3d3   : > { %5091 = vst [vmem:[#allocation15_spill] sm:$0xff] %v4400_v39  ;;  %v4554_v39 = vld [vmem:[%s2168_s26 + $0x20] ss:$0 sm:$0xff] }
 0x3d6   : > { %v4427_v27 = vpop.permute.xlu0 %2080  ;;  %v4429_v43 = vpop.permute.xlu1 %2268 }
 0x3d7   : > { %v2285_v60 = vmul.f32 %v4573_v22, %v4429_v43  ;;  %v2097_v15 = vmul.f32 %v4515_v5, %v4427_v27  ;;  %v2224_v43 = vmul.f32 %v4541_v59, %v4353_v61 }
 0x3da   : > { %v4455_v12 = vpop.permute.xlu0 %2185  ;;  %v4457_v28 = vpop.permute.xlu1 %1881 }
 0x3db   : > { %5095 = vst [vmem:[#allocation16_spill] sm:$0xff] %v4455_v12 }
 0x3de   : > { %v4495_v37 = vpop.permute.xlu0 %2054  ;;  %v1905_v9 = vpop.permute.xlu1 %1904 }
 0x3df   : > { %v1917_v2 = vadd.f32 %v1905_v9, %v1891_v20  ;;  %v1647_v9 = vmul.f32 %v4465_v46, %v4314_v16  ;;  %v1683_v16 = vmul.f32 %v4489_v1, %v4322_v51  ;;  %v2063_v40 = vmul.f32 %v4511_v24, %v4495_v37 }
 0x3e0   : > { %v1576_v24 = vmul.f32 %v4461_v48, %v4304_v10  ;;  %v1649_v37 = vmul.f32 %v4465_v46, %v4318_v47  ;;  %v1685_v47 = vmul.f32 %v4489_v1, %v4324_v54 }
 0x3e1   : > { %vm1920_vm1 = vcmp.ge.f32.partialorder %v1917_v2, 0.0  ;;  %v1923_v20 = vmul.f32 %v1917_v2, %v3960_v31  ;;  %v1650_v51 = vadd.f32 %v1647_v9, %v1614_v8  ;;  %v4565_v8 = vmul.f32 %v4445_v62, %v4311_v29 }
 0x3e2   : > { %v4528_v32 = vpop.permute.xlu0 %2273  ;;  %v4530_v33 = vpop.permute.xlu1 %2090  ;;  %v2223_v9 = vmul.f32 %v4541_v59, %v4340_v63  ;;  %v1988_v29 = vmul.f32 %v4493_v49, %v4326_v18  ;;  %v2254_v63 = vmul.f32 %v4554_v39, %v4370_v7  ;;  %v1892_v62 = vadd.f32 %v1889_v17, %v1856_v21 }
 0x3e3   : > { %v1926_v50 = vsel %vm1920_vm1, %v1917_v2, %v1923_v20  ;;  %v4550_v2 = vstv %s1963_s17  ;;  %v4552_v20 = vld [vmem:[%s2168_s26] ss:$0 sm:$0xff]  ;;  %v1686_v30 = vadd.f32 %v1683_v16, %v1650_v51  ;;  %v2101_v16 = vadd.f32 %v2098_v3, %v2065_v36  ;;  %s3600_s17 = smov 112   ;;  %s3601_s26 = smov 111  }
 0x3e4   : > { %v1930_v52 = vmul.f32 %v4517_v14, %v1926_v50  ;;  %v2192_v56 = vmul.f32 %v4552_v20, %v4336_v58  ;;  %v2028_v18 = vadd.f32 %v2025_v45, %v1988_v29  ;;  %v2193_v51 = vmul.f32 %v4552_v20, %v4346_v53 }
 0x3e5   : > { %v1857_v3 = vadd.f32 %v1854_v34, %v1821_v23  ;;  %v1616_v10 = vadd.f32 %v4565_v8, %v1576_v24  ;;  %v5104_v8 = vld [vmem:[#allocation15_spill] sm:$0xff]  ;;  %v3308_v24 = vld [vmem:[%s5050_s3 + $0x70] sm:$0xff]  ;;  %vm1740_vm1 = vcmask 925448  }
 0x3e6   : > { %v4558_v12 = vpop.permute.xlu0 %2247  ;;  %1936 = vrot.lane.b32.xlu1 %v1930_v52, %s3596_s18  ;;  %v1705_v11 = vpop.permute.xlu1 %1704  ;;  %v2226_v58 = vadd.f32 %v2223_v9, %v2192_v56  ;;  %v2064_v57 = vadd.f32 %v2061_v4, %v2028_v18  ;;  %v4632_v18 = vstv %s2167_s23  ;;  %s324_s23 = sand.u32 1, %s3556_s28  }
 0x3e7   : > { %v1713_v50 = vadd.f32 %v1705_v11, %v1687_v41  ;;  %v1890_v11 = vmul.f32 %v4422_v42, %v4457_v28  ;;  %v2027_v42 = vmul.f32 %v4503_v13, %v4382_v25  ;;  %v2255_v28 = vmul.f32 %v4554_v39, %v4398_v26 }
 0x3e8   : > { %v2257_v55 = vadd.f32 %v2254_v63, %v2226_v58  ;;  %v2100_v29 = vadd.f32 %v2097_v15, %v2064_v57  ;;  %v2227_v63 = vadd.f32 %v2224_v43, %v2193_v51  ;;  %v2225_v43 = vmul.f32 %v4541_v59, %v5104_v8 }
 0x3e9   : > { %v1719_v38 = vmul.f32 %v1713_v50, %v3960_v31  ;;  %vm1716_vm2 = vcmp.ge.f32.partialorder %v1713_v50, 0.0 }
 0x3ea   : > { %v1910_v35 = vpop.permute.xlu0 %1909  ;;  %v2119_v52 = vpop.permute.xlu1 %2118  ;;  %v2288_v21 = vadd.f32 %v2285_v60, %v2257_v55  ;;  %v2258_v60 = vadd.f32 %v2255_v28, %v2227_v63 }
 0x3eb   : > { %v1918_v7 = vadd.f32 %v1910_v35, %v1892_v62  ;;  %v2127_v19 = vadd.f32 %v2119_v52, %v2101_v16  ;;  %v1722_v44 = vsel %vm1716_vm2, %v1713_v50, %v1719_v38  ;;  %v1990_v62 = vmul.f32 %v4493_v49, %v4361_v0 }
 0x3ec   : > { %v1893_v35 = vadd.f32 %v1890_v11, %v1857_v3  ;;  %v2286_v49 = vmul.f32 %v4573_v22, %v4528_v32  ;;  %v1726_v0 = vmul.f32 %v4548_v6, %v1722_v44  ;;  %v2256_v3 = vmul.f32 %v4554_v39, %v4558_v12 }
 0x3ed   : > { %vm1921_vm3 = vcmp.ge.f32.partialorder %v1918_v7, 0.0  ;;  %v1924_v17 = vmul.f32 %v1918_v7, %v3960_v31  ;;  %v2133_v53 = vmul.f32 %v2127_v19, %v3960_v31  ;;  %vm2130_vm4 = vcmp.ge.f32.partialorder %v2127_v19, 0.0 }
 0x3ee   : > { %v1700_v41 = vpop.permute.xlu0 %1699  ;;  %v2297_v27 = vpop.permute.xlu1 %2296  ;;  %v2030_v58 = vadd.f32 %v2027_v42, %v1990_v62  ;;  %v2289_v55 = vadd.f32 %v2286_v49, %v2258_v60  ;;  %v3304_v49 = vld [vmem:[%s5050_s3 + $0x50] sm:$0xff]  ;;  %v3315_v60 = vld [vmem:[%s5050_s3 + $0xa8] sm:$0xff]  ;;  %vm1945_vm2 = vcmask 1048456  }
 0x3ef   : > { %v1927_v45 = vsel %vm1921_vm3, %v1918_v7, %v1924_v17  ;;  %v1712_v9 = vadd.f32 %v1700_v41, %v1686_v30  ;;  %v2309_v56 = vadd.f32 %v2297_v27, %v2288_v21  ;;  %v2136_v25 = vsel %vm2130_vm4, %v2127_v19, %v2133_v53 }
 0x3f0   : > { %v1931_v36 = vmul.f32 %v4517_v14, %v1927_v45  ;;  %v2099_v7 = vmul.f32 %v4515_v5, %v4530_v33  ;;  %v2140_v48 = vmul.f32 %v4550_v2, %v2136_v25  ;;  %v2066_v15 = vadd.f32 %v2063_v40, %v2030_v58  ;;  %v5103_v5 = vld [vmem:[#allocation16_spill] sm:$0xff]  ;;  %v3305_v25 = vld [vmem:[%s5050_s3 + $0x58] sm:$0xff] }
 0x3f1   : > { %vm1715_vm5 = vcmp.ge.f32.partialorder %v1712_v9, 0.0  ;;  %v1718_v61 = vmul.f32 %v1712_v9, %v3960_v31  ;;  %v2315_v13 = vmul.f32 %v2309_v56, %v3960_v31  ;;  %vm2312_vm7 = vcmp.ge.f32.partialorder %v2309_v56, 0.0  ;;  %v3314_v58 = vld [vmem:[%s5050_s3 + $0xa0] sm:$0xff] }
 0x3f2   : > { %1938 = vrot.lane.b32.xlu0 %v1931_v36, %s3596_s18  ;;  %v2114_v50 = vpop.permute.xlu0 %2113  ;;  %v1915_v30 = vpop.permute.xlu1 %1914  ;;  %v1652_v17 = vadd.f32 %v1649_v37, %v1616_v10  ;;  %v2194_v54 = vmul.f32 %v4552_v20, %v5103_v5  ;;  %v2102_v1 = vadd.f32 %v2099_v7, %v2066_v15  ;;  %v3312_v37 = vld [vmem:[%s5050_s3 + $0x90] sm:$0xff]  ;;  %v3319_v10 = vld [vmem:[%s5050_s3 + $0xc8] sm:$0xff]  ;;  %vm3606_vm3 = vmmov 0  }
 0x3f3   : > { %v1721_v4 = vsel %vm1715_vm5, %v1712_v9, %v1718_v61  ;;  %v2126_v34 = vadd.f32 %v2114_v50, %v2100_v29  ;;  %v1919_v52 = vadd.f32 %v1915_v30, %v1893_v35  ;;  %v2318_v38 = vsel %vm2312_vm7, %v2309_v56, %v2315_v13  ;;  %v3307_v13 = vld [vmem:[%s5050_s3 + $0x68] sm:$0xff]  ;;  %v3316_v7 = vld [vmem:[%s5050_s3 + $0xb0] sm:$0xff] }
 0x3f4   : > { %v1725_v26 = vmul.f32 %v4548_v6, %v1721_v4  ;;  %v2322_v41 = vmul.f32 %v4632_v18, %v2318_v38  ;;  %v1688_v27 = vadd.f32 %v1685_v47, %v1652_v17  ;;  %v2228_v20 = vadd.f32 %v2225_v43, %v2194_v54  ;;  %v3300_v4 = vld [vmem:[%s5050_s3 + $0x30] sm:$0xff]  ;;  %v3317_v47 = vld [vmem:[%s5050_s3 + $0xb8] sm:$0xff]  ;;  %v2360_v15 = vld [vmem:[%s5050_s3 + $0x8] sm:$0xff] }
 0x3f5   : > { %vm2129_vm6 = vcmp.ge.f32.partialorder %v2126_v34, 0.0  ;;  %v2132_v16 = vmul.f32 %v2126_v34, %v3960_v31  ;;  %v1925_v19 = vmul.f32 %v1919_v52, %v3960_v31  ;;  %vm1922_vm8 = vcmp.ge.f32.partialorder %v1919_v52, 0.0  ;;  %v2361_v38 = vld [vmem:[%s5050_s3 + $0x10] sm:$0xff] }
 0x3f6   : > { %v2279_v32 = vpop.permute.xlu0 %2278  ;;  %1731 = vrot.lane.b32.xlu1 %v1725_v26, %s3597_s21  ;;  %1733 = vrot.lane.b32.xlu0 %v1726_v0, %s3597_s21  ;;  %v2124_v51 = vpop.permute.xlu1 %2123  ;;  %v2259_v12 = vadd.f32 %v2256_v3, %v2228_v20  ;;  %v3302_v0 = vld [vmem:[%s5050_s3 + $0x40] sm:$0xff]  ;;  %vm2492_vm4 = vcmask 1031168   ;;  %vm2657_vm7 = vcmask 900096  }
 0x3f7   : > { %v2135_v23 = vsel %vm2129_vm6, %v2126_v34, %v2132_v16  ;;  %v1928_v11 = vsel %vm1922_vm8, %v1919_v52, %v1925_v19  ;;  %v2128_v45 = vadd.f32 %v2124_v51, %v2102_v1  ;;  %v2287_v44 = vmul.f32 %v4573_v22, %v2279_v32  ;;  %v3297_v22 = vld [vmem:[%s5050_s3 + $0x18] sm:$0xff]  ;;  %v3306_v26 = vld [vmem:[%s5050_s3 + $0x60] sm:$0xff]  ;;  %v3311_v32 = vld [vmem:[%s5050_s3 + $0x88] sm:$0xff] }
 0x3f8   : > { %v2139_v46 = vmul.f32 %v4550_v2, %v2135_v23  ;;  %v1932_v59 = vmul.f32 %v4517_v14, %v1928_v11  ;;  %v3298_v14 = vld [vmem:[%s5050_s3 + $0x20] sm:$0xff]  ;;  %v3301_v34 = vld [vmem:[%s5050_s3 + $0x38] sm:$0xff]  ;;  %vm2548_vm6 = vcmask 916480   ;;  %vm2604_vm8 = vcmask 908288  }
 0x3f9   : > { %v2134_v29 = vmul.f32 %v2128_v45, %v3960_v31  ;;  %vm2131_vm10 = vcmp.ge.f32.partialorder %v2128_v45, 0.0  ;;  %v2290_v63 = vadd.f32 %v2287_v44, %v2259_v12  ;;  %v3309_v16 = vld [vmem:[%s5050_s3 + $0x78] sm:$0xff]  ;;  %v3310_v52 = vld [vmem:[%s5050_s3 + $0x80] sm:$0xff] }
 0x3fa   : > { %v2302_v57 = vpop.permute.xlu0 %2301  ;;  %2145 = vrot.lane.b32.xlu1 %v2139_v46, %s5102_s22  ;;  %2147 = vrot.lane.b32.xlu0 %v2140_v48, %s5102_s22  ;;  %v3318_v23 = vld [vmem:[%s5050_s3 + $0xc0] sm:$0xff]  ;;  %v3320_v48 = vld [vmem:[%s5050_s3 + $0xd0] sm:$0xff] }
 0x3fb   : > { %v2310_v33 = vadd.f32 %v2302_v57, %v2289_v55  ;;  %v2137_v62 = vsel %vm2131_vm10, %v2128_v45, %v2134_v29  ;;  %v2359_v46 = vld [vmem:[%s5050_s3] sm:$0xff]  ;;  %vm2769_vm10 = vcmask 777216  }
 0x3fc   : > { %v2141_v50 = vmul.f32 %v4550_v2, %v2137_v62  ;;  %v3303_v2 = vld [vmem:[%s5050_s3 + $0x48] sm:$0xff] }
 0x3fd   : > { %vm2313_vm9 = vcmp.ge.f32.partialorder %v2310_v33, 0.0  ;;  %v2316_v9 = vmul.f32 %v2310_v33, %v3960_v31 }
 0x3fe   : > { %v1710_v21 = vpop.permute.xlu0 %1709  ;;  %2328 = vrot.lane.b32.xlu1 %v2322_v41, %s5105_s0 }
 0x3ff   : > { %v2319_v36 = vsel %vm2313_vm9, %v2310_v33, %v2316_v9  ;;  %v1714_v53 = vadd.f32 %v1710_v21, %v1688_v27  ;;  %vm2713_vm9 = vcmask 785408  }
 0x400   : > { %v2323_v39 = vmul.f32 %v4632_v18, %v2319_v36 }
 0x401   : > { %v1720_v61 = vmul.f32 %v1714_v53, %v3960_v31  ;;  %vm1717_vm11 = vcmp.ge.f32.partialorder %v1714_v53, 0.0 }
 0x402   : > { %v2307_v56 = vpop.permute.xlu0 %2306  ;;  %2330 = vrot.lane.b32.xlu0 %v2323_v39, %s5105_s0  ;;  %1940 = vrot.lane.b32.xlu1 %v1932_v59, %s3596_s18  ;;  %s3602_s18 = smov 110  }
 0x403   : > { %v1723_v42 = vsel %vm1717_vm11, %v1714_v53, %v1720_v61  ;;  %v2311_v28 = vadd.f32 %v2307_v56, %v2290_v63  ;;  %vm2822_vm11 = vcmask 769024  }
 0x404   : > { %v1727_v30 = vmul.f32 %v4548_v6, %v1723_v42 }
 0x405   : > { %v2317_v40 = vmul.f32 %v2311_v28, %v3960_v31  ;;  %vm2314_vm14 = vcmp.ge.f32.partialorder %v2311_v28, 0.0  ;;  %v3299_v31 = vld [vmem:[%s5050_s3 + $0x28] sm:$0xff] }
 0x406   : > { %2400 = vperm.xlu0 %3465, %v3297_v22   ;;  %2405 = vperm.xlu1 %3466, %v3298_v14  }
 0x407   : > { %v2320_v35 = vsel %vm2314_vm14, %v2311_v28, %v2317_v40 }
 0x408   : > { %v2324_v6 = vmul.f32 %v4632_v18, %v2320_v35  ;;  %v3313_v18 = vld [vmem:[%s5050_s3 + $0x98] sm:$0xff] }
 0x40a   : > { %1735 = vrot.lane.b32.xlu0 %v1727_v30, %s3597_s21  ;;  %2149 = vrot.lane.b32.xlu1 %v2141_v50, %s5102_s22  ;;  %s3598_s21 = smov 127   ;;  %s3599_s22 = smov 126  }
 0x40e   : > { %2453 = vperm.xlu0 %3465, %v3300_v4   ;;  %2458 = vperm.xlu1 %3466, %v3301_v34  }
 0x412   : > { %2332 = vrot.lane.b32.xlu0 %v2324_v6, %s5105_s0  ;;  %2410 = vperm.xlu1 %3466, %v3299_v31   ;;  %s3103_s0 = sshll.u32 %s324_s23, 2 }
 0x416   : > { %2511 = vperm.xlu0 %3465, %v3303_v2   ;;  %2516 = vperm.xlu1 %3466, %v3304_v49  }
 0x41a   : > { %2463 = vperm.xlu0 %3465, %v3302_v0   ;;  %2521 = vperm.xlu1 %3466, %v3305_v25  }
 0x41e   : > { %2567 = vperm.xlu0 %3465, %v3306_v26   ;;  %2572 = vperm.xlu1 %3466, %v3307_v13  }
 0x422   : > { %2620 = vperm.xlu0 %3465, %v3309_v16   ;;  %2625 = vperm.xlu1 %3466, %v3310_v52  }
 0x426   : > { %2577 = vperm.xlu0 %3465, %v3308_v24   ;;  %2676 = vperm.xlu1 %3466, %v3312_v37  }
 0x42a   : > { %2681 = vperm.xlu0 %3465, %v3313_v18   ;;  %2630 = vperm.xlu1 %3466, %v3311_v32  }
 0x42e   : > { %2686 = vperm.xlu0 %3465, %v3314_v58   ;;  %2732 = vperm.xlu1 %3466, %v3315_v60  }
 0x432   : > { %2737 = vperm.xlu0 %3465, %v3316_v7   ;;  %2785 = vperm.xlu1 %3466, %v3318_v23  }
 0x436   : > { %2790 = vperm.xlu0 %3465, %v3319_v10   ;;  %2742 = vperm.xlu1 %3466, %v3317_v47  }
 0x43a   : > { %2795 = vperm.xlu0 %3465, %v3320_v48   ;;  %2364 = vperm.xlu1 %3466, %v2359_v46  }
 0x43e   : > { %2369 = vperm.xlu0 %3465, %v2360_v15   ;;  %2374 = vperm.xlu1 %3466, %v2361_v38  }
 0x458   : > { %v1937_v19 = vpop.permute.xlu1 %1936 }
 0x459   : > { %1948 = vst.msk [vmem:[#allocation2 + $0x8] sm:$0xff] %vm1947_vm0, %v1937_v19 }
 0x464   : > { %v1939_v55 = vpop.permute.xlu0 %1938 }
 0x465   : > { %1950 = vst.msk [vmem:[#allocation2 + $0x18] sm:$0xff] %vm1947_vm0, %v1939_v55 }
 0x468   : > { %v1734_v17 = vpop.permute.xlu0 %1733  ;;  %v1732_v51 = vpop.permute.xlu1 %1731 }
 0x469   : > { %1742 = vst.msk [vmem:[#allocation2 + $0x10] sm:$0xff] %vm1740_vm1, %v1734_v17  ;;  %1741 = vst.msk [vmem:[#allocation2] sm:$0xff] %vm1740_vm1, %v1732_v51 }
 0x46a   : > { %1949 = vst.msk [vmem:[#allocation2 + $0x10] sm:$0xff] %vm1945_vm2, %v1939_v55  ;;  %1946 = vst.msk [vmem:[#allocation2] sm:$0xff] %vm1945_vm2, %v1937_v19 }
 0x46c   : > { %v2148_v57 = vpop.permute.xlu0 %2147  ;;  %v2146_v5 = vpop.permute.xlu1 %2145 }
 0x46d   : > { %2155 = vst.msk [vmem:[#allocation2 + $0x18] sm:$0xff] %vm527_vm12, %v2148_v57  ;;  %2154 = vst.msk [vmem:[#allocation2 + $0x8] sm:$0xff] %vm527_vm12, %v2146_v5 }
 0x470   : > { %v2329_v54 = vpop.permute.xlu1 %2328 }
 0x471   : > { %2337 = vst.msk [vmem:[#allocation2 + $0x8] sm:$0xff] %vm715_vm13, %v2329_v54  ;;  %v4761_v43 = vld [vmem:[#allocation2] sm:$0xff]  ;;  %v4769_v45 = vld [vmem:[#allocation2 + $0x10] sm:$0xff] }
 0x474   : > { %v2331_v1 = vpop.permute.xlu0 %2330  ;;  %v1941_v33 = vpop.permute.xlu1 %1940 }
 0x475   : > { %2338 = vst.msk [vmem:[#allocation2 + $0x18] sm:$0xff] %vm715_vm13, %v2331_v1 }
 0x476   : > { %1952 = vst.msk [vmem:[#allocation2 + $0x28] sm:$0xff] %vm1947_vm0, %v1941_v33 }
 0x478   : > { %v4763_v3 = vld [vmem:[#allocation2 + $0x8] sm:$0xff] }
 0x47c   : > { %v4771_v9 = vld [vmem:[#allocation2 + $0x18] sm:$0xff] }
 0x485   : > { %v2401_v8 = vpop.permute.xlu0 %2400  ;;  %v2406_v41 = vpop.permute.xlu1 %2405 }
 0x486   : > { %v2413_v27 = vmul.f32 %v2401_v8, %v4761_v43  ;;  %v2414_v11 = vmul.f32 %v2401_v8, %v4763_v3  ;;  %v2415_v44 = vmul.f32 %v2406_v41, %v4769_v45  ;;  %v2416_v36 = vmul.f32 %v2406_v41, %v4771_v9 }
 0x488   : > { %2425 = vrot.lane.b32.xlu0 %v2413_v27, %s3598_s21  ;;  %2427 = vrot.lane.b32.xlu1 %v2414_v11, %s3598_s21 }
 0x489   : > { %v1736_v21 = vpop.permute.xlu0 %1735  ;;  %v2150_v20 = vpop.permute.xlu1 %2149 }
 0x48a   : > { %1743 = vst.msk [vmem:[#allocation2 + $0x20] sm:$0xff] %vm1740_vm1, %v1736_v21  ;;  %vm1789_vm1 = vcmask 910080  }
 0x48b   : > { %2156 = vst.msk [vmem:[#allocation2 + $0x28] sm:$0xff] %vm527_vm12, %v2150_v20 }
 0x48c   : > { %1951 = vst.msk [vmem:[#allocation2 + $0x20] sm:$0xff] %vm1945_vm2, %v1941_v33  ;;  %2431 = vrot.lane.b32.xlu1 %v2416_v36, %s3598_s21  ;;  %2429 = vrot.lane.b32.xlu0 %v2415_v44, %s3598_s21 }
 0x48d   : > { %v2454_v53 = vpop.permute.xlu0 %2453  ;;  %v2459_v59 = vpop.permute.xlu1 %2458 }
 0x48e   : > { %v2466_v39 = vmul.f32 %v2454_v53, %v4761_v43  ;;  %v2467_v12 = vmul.f32 %v2454_v53, %v4763_v3  ;;  %v2468_v56 = vmul.f32 %v2459_v59, %v4769_v45  ;;  %v2469_v63 = vmul.f32 %v2459_v59, %v4771_v9  ;;  %v2835_v53 = vld [vmem:[%s5051_s4] sm:$0xff] }
 0x490   : > { %2482 = vrot.lane.b32.xlu1 %v2467_v12, %s3599_s22  ;;  %2480 = vrot.lane.b32.xlu0 %v2466_v39, %s3599_s22  ;;  %v2836_v39 = vld [vmem:[%s5051_s4 + $0x8] sm:$0xff] }
 0x491   : > { %v2333_v29 = vpop.permute.xlu0 %2332  ;;  %v2411_v61 = vpop.permute.xlu1 %2410 }
 0x492   : > { %2339 = vst.msk [vmem:[#allocation2 + $0x28] sm:$0xff] %vm715_vm13, %v2333_v29  ;;  %vm2437_vm13 = vcmask 1039360  }
 0x493   : > { %v4787_v22 = vld [vmem:[#allocation2 + $0x20] sm:$0xff] }
 0x494   : > { %2486 = vrot.lane.b32.xlu1 %v2469_v63, %s3599_s22  ;;  %2484 = vrot.lane.b32.xlu0 %v2468_v56, %s3599_s22  ;;  %v2417_v42 = vmul.f32 %v2411_v61, %v4787_v22 }
 0x495   : > { %v2512_v14 = vpop.permute.xlu0 %2511  ;;  %v2517_v62 = vpop.permute.xlu1 %2516 }
 0x496   : > { %v2524_v4 = vmul.f32 %v2512_v14, %v4761_v43  ;;  %v2525_v31 = vmul.f32 %v2512_v14, %v4763_v3  ;;  %v2526_v6 = vmul.f32 %v2517_v62, %v4769_v45  ;;  %v2527_v0 = vmul.f32 %v2517_v62, %v4771_v9 }
 0x498   : > { %2433 = vrot.lane.b32.xlu0 %v2417_v42, %s3598_s21 }
 0x499   : > { %v4793_v28 = vld [vmem:[#allocation2 + $0x28] sm:$0xff]  ;;  %v2464_v50 = vpop.permute.xlu0 %2463  ;;  %v2522_v30 = vpop.permute.xlu1 %2521 }
 0x49a   : > { %v2418_v40 = vmul.f32 %v2411_v61, %v4793_v28  ;;  %v2470_v25 = vmul.f32 %v2464_v50, %v4787_v22  ;;  %v2471_v16 = vmul.f32 %v2464_v50, %v4793_v28  ;;  %v2528_v52 = vmul.f32 %v2522_v30, %v4787_v22 }
 0x49b   : > { %v2529_v18 = vmul.f32 %v2522_v30, %v4793_v28  ;;  %v2837_v30 = vld [vmem:[%s5051_s4 + $0x10] sm:$0xff] }
 0x49c   : > { %2435 = vrot.lane.b32.xlu1 %v2418_v40, %s3598_s21  ;;  %2536 = vrot.lane.b32.xlu0 %v2524_v4, %s3600_s17  ;;  %s3605_s21 = smov 94  }
 0x49d   : > { %v2568_v34 = vpop.permute.xlu0 %2567  ;;  %v2573_v35 = vpop.permute.xlu1 %2572 }
 0x49e   : > { %v2580_v32 = vmul.f32 %v2568_v34, %v4761_v43  ;;  %v2581_v7 = vmul.f32 %v2568_v34, %v4763_v3  ;;  %v2582_v23 = vmul.f32 %v2573_v35, %v4769_v45  ;;  %v2583_v48 = vmul.f32 %v2573_v35, %v4771_v9 }
 0x49f   : > { %v5106_v34 = vlaneseq }
 0x4a0   : > { %2538 = vrot.lane.b32.xlu1 %v2525_v31, %s3600_s17  ;;  %2540 = vrot.lane.b32.xlu0 %v2526_v6, %s3600_s17  ;;  %v5107_v31 = vld [vmem:[#allocation12_spill] sm:$0xff] }
 0x4a1   : > { %v2621_v2 = vpop.permute.xlu0 %2620  ;;  %v2626_v49 = vpop.permute.xlu1 %2625  ;;  %v2341_v35 = vand.u32 127, %v5106_v34 }
 0x4a2   : > { %v2633_v46 = vmul.f32 %v2621_v2, %v4761_v43  ;;  %v2634_v19 = vmul.f32 %v2621_v2, %v4763_v3  ;;  %v2635_v55 = vmul.f32 %v2626_v49, %v4769_v45  ;;  %v2636_v57 = vmul.f32 %v2626_v49, %v4771_v9  ;;  %v5109_v2 = vld [vmem:[#allocation13_spill] sm:$0xff]  ;;  %v5110_v49 = vld [vmem:[#allocation11_spill] sm:$0xff] }
 0x4a3   : > { %v2346_v6 = vand.u32 15, %v2341_v35 }
 0x4a4   : > { %2542 = vrot.lane.b32.xlu1 %v2527_v0, %s3600_s17  ;;  %2488 = vrot.lane.b32.xlu0 %v2470_v25, %s3599_s22  ;;  %v5113_v0 = vld [vmem:[#allocation14_spill] sm:$0xff]  ;;  %v5114_v25 = vmov 0.0  }
 0x4a5   : > { %v2578_v26 = vpop.permute.xlu0 %2577  ;;  %v2677_v13 = vpop.permute.xlu1 %2676  ;;  %vm4891_vm12 = vcmp.eq.s32.totalorder %v2346_v6, 0  ;;  %3355 = vmatprep.mubr.msk.bf16.mxu0 %vm3606_vm3, %v5114_v25  ;;  %vm4914_vm5 = vcmp.eq.s32.totalorder %v2346_v6, 15 }
 0x4a6   : > { %v2584_v5 = vmul.f32 %v2578_v26, %v4787_v22  ;;  %v2585_v8 = vmul.f32 %v2578_v26, %v4793_v28  ;;  %v2689_v41 = vmul.f32 %v2677_v13, %v4761_v43  ;;  %v2690_v21 = vmul.f32 %v2677_v13, %v4763_v3 }
 0x4a8   : > { %2490 = vrot.lane.b32.xlu1 %v2471_v16, %s3599_s22  ;;  %2544 = vrot.lane.b32.xlu0 %v2528_v52, %s3600_s17  ;;  %s326_s22 = scalar_lea.vmem [#allocation7], %s3103_s0 }
 0x4a9   : > { %v2682_v24 = vpop.permute.xlu0 %2681  ;;  %v2631_v37 = vpop.permute.xlu1 %2630 }
 0x4aa   : > { %v2691_v20 = vmul.f32 %v2682_v24, %v4769_v45  ;;  %v2692_v44 = vmul.f32 %v2682_v24, %v4771_v9  ;;  %v2637_v36 = vmul.f32 %v2631_v37, %v4787_v22  ;;  %v2638_v59 = vmul.f32 %v2631_v37, %v4793_v28  ;;  %v5115_v37 = vld [vmem:[#allocation19_spill] sm:$0xff] }
 0x4ac   : > { %2546 = vrot.lane.b32.xlu1 %v2529_v18, %s3600_s17  ;;  %2592 = vrot.lane.b32.xlu0 %v2580_v32, %s3601_s26  ;;  %v5116_v18 = vld [vmem:[#allocation18_spill] sm:$0xff] }
 0x4ad   : > { %v2687_v58 = vpop.permute.xlu0 %2686  ;;  %v2733_v60 = vpop.permute.xlu1 %2732 }
 0x4ae   : > { %v2693_v12 = vmul.f32 %v2687_v58, %v4787_v22  ;;  %v2694_v29 = vmul.f32 %v2687_v58, %v4793_v28  ;;  %v2745_v61 = vmul.f32 %v2733_v60, %v4761_v43  ;;  %v2746_v56 = vmul.f32 %v2733_v60, %v4763_v3 }
 0x4b0   : > { %2594 = vrot.lane.b32.xlu1 %v2581_v7, %s3601_s26  ;;  %2596 = vrot.lane.b32.xlu0 %v2582_v23, %s3601_s26 }
 0x4b1   : > { %v2738_v10 = vpop.permute.xlu0 %2737  ;;  %v2786_v47 = vpop.permute.xlu1 %2785 }
 0x4b2   : > { %v2747_v63 = vmul.f32 %v2738_v10, %v4769_v45  ;;  %v2748_v14 = vmul.f32 %v2738_v10, %v4771_v9  ;;  %v2798_v62 = vmul.f32 %v2786_v47, %v4761_v43  ;;  %v2799_v42 = vmul.f32 %v2786_v47, %v4763_v3  ;;  %v5117_v10 = vld [vmem:[#allocation21_spill] sm:$0xff]  ;;  %v5118_v47 = vld [vmem:[#allocation20_spill] sm:$0xff] }
 0x4b4   : > { %2598 = vrot.lane.b32.xlu1 %v2583_v48, %s3601_s26  ;;  %2645 = vrot.lane.b32.xlu0 %v2633_v46, %s3602_s18 }
 0x4b5   : > { %v2791_v15 = vpop.permute.xlu0 %2790  ;;  %v2743_v38 = vpop.permute.xlu1 %2742 }
 0x4b6   : > { %v2800_v50 = vmul.f32 %v2791_v15, %v4769_v45  ;;  %v2801_v40 = vmul.f32 %v2791_v15, %v4771_v9  ;;  %v2749_v4 = vmul.f32 %v2743_v38, %v4787_v22  ;;  %v5108_v9 = vld [vmem:[#allocation17_spill] sm:$0xff] }
 0x4b8   : > { %2647 = vrot.lane.b32.xlu1 %v2634_v19, %s3602_s18  ;;  %2649 = vrot.lane.b32.xlu0 %v2635_v55, %s3602_s18 }
 0x4b9   : > { %v2796_v17 = vpop.permute.xlu0 %2795  ;;  %v2365_v51 = vpop.permute.xlu1 %2364 }
 0x4ba   : > { %v4830_v54 = vmul.f32 %v4761_v43, %v2365_v51  ;;  %v2750_v43 = vmul.f32 %v2743_v38, %v4793_v28  ;;  %v2802_v3 = vmul.f32 %v2796_v17, %v4787_v22 }
 0x4bc   : > { %2651 = vrot.lane.b32.xlu1 %v2636_v57, %s3602_s18  ;;  %2600 = vrot.lane.b32.xlu0 %v2584_v5, %s3601_s26  ;;  %v2382_v16 = vsel %vm4891_vm12, 0.0, %v4830_v54 }
 0x4bd   : > { %v2370_v1 = vpop.permute.xlu0 %2369  ;;  %v2375_v33 = vpop.permute.xlu1 %2374 }
 0x4be   : > { %v4837_v27 = vmul.f32 %v4769_v45, %v2370_v1  ;;  %v4840_v11 = vmul.f32 %v4787_v22, %v2375_v33  ;;  %v2803_v45 = vmul.f32 %v2796_v17, %v4793_v28  ;;  %v2869_v22 = vld [vmem:[%s5053_s6] sm:$0xf] }
 0x4c0   : > { %2602 = vrot.lane.b32.xlu1 %v2585_v8, %s3601_s26  ;;  %2701 = vrot.lane.b32.xlu0 %v2689_v41, %s3603_s25  ;;  %v2383_v60 = vsel %vm4891_vm12, 0.0, %v4837_v27  ;;  %v2384_v41 = vsel %vm4891_vm12, 0.0, %v4840_v11  ;;  %s2942_s26 = sshll.u32 %s326_s22, 4  ;;  %s4996_s26 = int_to_ptr.vmem [resolvable:$true] %s2942_s26 }
 0x4c1   : > { %s3482_s9 = scalar_lea.vmem %s4996_s26, 64 }
 0x4c2   : > { %p3483_p9 = scmp.ne.s32.totalorder %s4996_s26, %s3482_s9 }
 0x4c4   : > { %2703 = vrot.lane.b32.xlu1 %v2690_v21, %s3603_s25  ;;  %2705 = vrot.lane.b32.xlu0 %v2691_v20, %s3603_s25  ;;  %p3484_p8 = pnand %p3483_p9, %p3705_p3 }
 0x4c6   : > { %p3485_p10 = pneg %p3484_p8 }
 0x4c8   : > { %2707 = vrot.lane.b32.xlu1 %v2692_v44, %s3603_s25  ;;  %2653 = vrot.lane.b32.xlu0 %v2637_v36, %s3602_s18 }
 0x4cc   : > { %2655 = vrot.lane.b32.xlu1 %v2638_v59, %s3602_s18  ;;  %2840 = vperm.xlu0 %3465, %v2835_v53  }
 0x4d0   : > { %2845 = vperm.xlu1 %3466, %v2836_v39   ;;  %2709 = vrot.lane.b32.xlu0 %v2693_v12, %s3603_s25 }
 0x4d4   : > { %2711 = vrot.lane.b32.xlu1 %v2694_v29, %s3603_s25  ;;  %2757 = vrot.lane.b32.xlu0 %v2745_v61, %s3604_s14 }
 0x4d8   : > { %2759 = vrot.lane.b32.xlu1 %v2746_v56, %s3604_s14  ;;  %2761 = vrot.lane.b32.xlu0 %v2747_v63, %s3604_s14 }
 0x4dc   : > { %2763 = vrot.lane.b32.xlu1 %v2748_v14, %s3604_s14  ;;  %2810 = vrot.lane.b32.xlu0 %v2798_v62, %s3605_s21 }
 0x4e0   : > { %2812 = vrot.lane.b32.xlu1 %v2799_v42, %s3605_s21  ;;  %2814 = vrot.lane.b32.xlu0 %v2800_v50, %s3605_s21 }
 0x4e4   : > { %2816 = vrot.lane.b32.xlu1 %v2801_v40, %s3605_s21  ;;  %2850 = vperm.xlu0 %3465, %v2837_v30  }
 0x4e8   : > { %2767 = vrot.lane.b32.xlu0 %v2750_v43, %s3604_s14  ;;  %2765 = vrot.lane.b32.xlu1 %v2749_v4, %s3604_s14  ;;  %s2938_s14 = sadd.s32 %s3564_s30, %s3323_s7  ;;  %s2927_s30 = scalar_lea.sflag [#allocation5], %s324_s23 }
 0x4ec   : > { %2820 = vrot.lane.b32.xlu0 %v2803_v45, %s3605_s21  ;;  %2818 = vrot.lane.b32.xlu1 %v2802_v3, %s3605_s21  ;;  %s3324_s21 = sshll.u32 %s2938_s14, 6 }
 0x4f0   : > { %1786 = vrot.lane.b32.xlu0 %v5107_v31, %s3603_s25  ;;  %1690 = vrot.lane.b32.xlu1 %v5108_v9, %s3595_s13  ;;  %s3108_s13 = sld [smem:[#allocation4 + $0x1]] }
 0x4f4   : > { %1859 = vrot.lane.b32.xlu0 %v5109_v2, %s3603_s25  ;;  %1823 = vrot.lane.b32.xlu1 %v5110_v49, %s3603_s25 }
 0x4f8   : > { %2872 = vperm.xlu0 %3465, %v2869_v22   ;;  %1895 = vrot.lane.b32.xlu1 %v5113_v0, %s3603_s25 }
 0x4fa   : > { %v2426_v26 = vpop.permute.xlu0 %2425  ;;  %v2428_v13 = vpop.permute.xlu1 %2427 }
 0x4fb   : > { %v2438_v52 = vsel %vm2437_vm13, %v2426_v26, %v2428_v13 }
 0x4fc   : > { %v2444_v24 = vadd.f32 %v2438_v52, %v2382_v16  ;;  %2032 = vrot.lane.b32.xlu0 %v5115_v37, %s3600_s17  ;;  %1995 = vrot.lane.b32.xlu1 %v5116_v18, %s3600_s17 }
 0x4fe   : > { %v2430_v32 = vpop.permute.xlu0 %2429  ;;  %v2432_v58 = vpop.permute.xlu1 %2431 }
 0x4ff   : > { %v2439_v7 = vsel %vm2437_vm13, %v2430_v32, %v2432_v58 }
 0x500   : > { %v2445_v23 = vadd.f32 %v2439_v7, %v2383_v60  ;;  %2104 = vrot.lane.b32.xlu0 %v5117_v10, %s3600_s17  ;;  %2068 = vrot.lane.b32.xlu1 %v5118_v47, %s3600_s17  ;;  %s3607_s17 = smov [#allocation7]  }
 0x501   : > { %s3486_s25 = sshll.u32 %s3607_s17, 4  ;;  %s3487_s25 = int_to_ptr.vmem [resolvable:$false] %s3486_s25 }
 0x502   : > { %v2481_v46 = vpop.permute.xlu0 %2480  ;;  %v2483_v15 = vpop.permute.xlu1 %2482  ;;  %s3488_s0 = scalar_lea.vmem %s3487_s25, 128  ;;  %p3489_p11 = scmp.lt.s32.totalorder %s4996_s26, %s3487_s25 }
 0x503   : > { %v2493_v38 = vsel %vm2492_vm4, %v2481_v46, %v2483_v15  ;;  %p3490_p12 = scmp.lt.s32.totalorder %s3488_s0, %s3482_s9 }
 0x504   : > { %v2499_v19 = vsel %vm4914_vm5, 0.0, %v2493_v38 }
 0x505   : > { %v2502_v55 = vadd.f32 %v2499_v19, %v2444_v24  ;;  %p3491_p13 = por %p3490_p12, %p3489_p11 }
 0x506   : > { %v2485_v17 = vpop.permute.xlu0 %2484  ;;  %v2487_v51 = vpop.permute.xlu1 %2486 }
 0x507   : > { %v2494_v57 = vsel %vm2492_vm4, %v2485_v17, %v2487_v51  ;;  %p3492_p0 = pnand %p3491_p13, %p3485_p10 }
 0x508   : > { %v2500_v5 = vsel %vm4914_vm5, 0.0, %v2494_v57 }
 0x509   : > { %v2503_v54 = vadd.f32 %v2500_v5, %v2445_v23 }
 0x50a   : > { %v2434_v1 = vpop.permute.xlu0 %2433 }
 0x50e   : > { %v2537_v33 = vpop.permute.xlu0 %2536  ;;  %v2436_v8 = vpop.permute.xlu1 %2435 }
 0x50f   : > { %v2440_v27 = vsel %vm2437_vm13, %v2434_v1, %v2436_v8  ;;  %vm1998_vm13 = vcmask 1041280  }
 0x510   : > { %v4928_v21 = vadd.f32 %v2440_v27, %v2384_v41 }
 0x512   : > { %v2541_v20 = vpop.permute.xlu0 %2540  ;;  %v2539_v44 = vpop.permute.xlu1 %2538 }
 0x513   : > { %v2549_v6 = vsel %vm2548_vm6, %v2537_v33, %v2539_v44 }
 0x514   : > { %v2555_v22 = vsel %vm4891_vm12, 0.0, %v2549_v6 }
 0x515   : > { %v2558_v24 = vadd.f32 %v2555_v22, %v2502_v55 }
 0x516   : > { %v2489_v36 = vpop.permute.xlu0 %2488  ;;  %v2543_v53 = vpop.permute.xlu1 %2542 }
 0x517   : > { %v2550_v0 = vsel %vm2548_vm6, %v2541_v20, %v2543_v53 }
 0x518   : > { %v2556_v18 = vsel %vm4891_vm12, 0.0, %v2550_v0 }
 0x519   : > { %v2559_v15 = vadd.f32 %v2556_v18, %v2503_v54 }
 0x51a   : > { %v2545_v59 = vpop.permute.xlu0 %2544  ;;  %v2491_v39 = vpop.permute.xlu1 %2490 }
 0x51b   : > { %v2495_v7 = vsel %vm2492_vm4, %v2489_v36, %v2491_v39 }
 0x51c   : > { %v2501_v57 = vsel %vm4914_vm5, 0.0, %v2495_v7 }
 0x51d   : > { %v2504_v36 = vadd.f32 %v2501_v57, %v4928_v21 }
 0x51e   : > { %v2593_v12 = vpop.permute.xlu0 %2592  ;;  %v2547_v29 = vpop.permute.xlu1 %2546 }
 0x51f   : > { %v2551_v55 = vsel %vm2548_vm6, %v2545_v59, %v2547_v29 }
 0x520   : > { %v2557_v41 = vsel %vm4891_vm12, 0.0, %v2551_v55 }
 0x522   : > { %v2595_v61 = vpop.permute.xlu1 %2594  ;;  %v2597_v56 = vpop.permute.xlu0 %2596 }
 0x523   : > { %v2605_v13 = vsel %vm2604_vm8, %v2593_v12, %v2595_v61  ;;  %v2560_v61 = vadd.f32 %v2557_v41, %v2504_v36 }
 0x524   : > { %v2611_v58 = vadd.f32 %v2605_v13, %v2558_v24 }
 0x526   : > { %v2599_v63 = vpop.permute.xlu1 %2598  ;;  %v2646_v14 = vpop.permute.xlu0 %2645 }
 0x527   : > { %v2606_v23 = vsel %vm2604_vm8, %v2597_v56, %v2599_v63 }
 0x528   : > { %v2612_v5 = vadd.f32 %v2606_v23, %v2559_v15 }
 0x52a   : > { %v2648_v62 = vpop.permute.xlu1 %2647  ;;  %v2650_v42 = vpop.permute.xlu0 %2649 }
 0x52b   : > { %v2658_v26 = vsel %vm2657_vm7, %v2646_v14, %v2648_v62 }
 0x52c   : > { %v2664_v32 = vsel %vm4914_vm5, 0.0, %v2658_v26 }
 0x52d   : > { %v2667_v38 = vadd.f32 %v2664_v32, %v2611_v58 }
 0x52e   : > { %v2652_v50 = vpop.permute.xlu1 %2651  ;;  %v2601_v11 = vpop.permute.xlu0 %2600 }
 0x52f   : > { %v2659_v60 = vsel %vm2657_vm7, %v2650_v42, %v2652_v50 }
 0x530   : > { %v2665_v17 = vsel %vm4914_vm5, 0.0, %v2659_v60 }
 0x531   : > { %v2668_v27 = vadd.f32 %v2665_v17, %v2612_v5 }
 0x532   : > { %v2603_v30 = vpop.permute.xlu1 %2602  ;;  %v2702_v40 = vpop.permute.xlu0 %2701 }
 0x533   : > { %v2607_v56 = vsel %vm2604_vm8, %v2601_v11, %v2603_v30 }
 0x536   : > { %v2704_v4 = vpop.permute.xlu1 %2703  ;;  %v2706_v43 = vpop.permute.xlu0 %2705 }
 0x537   : > { %v2714_v37 = vsel %vm2713_vm9, %v2702_v40, %v2704_v4 }
 0x538   : > { %v2720_v10 = vsel %vm4891_vm12, 0.0, %v2714_v37 }
 0x539   : > { %v2723_v1 = vadd.f32 %v2720_v10, %v2667_v38 }
 0x53a   : > { %v2708_v3 = vpop.permute.xlu1 %2707  ;;  %v2654_v45 = vpop.permute.xlu0 %2653 }
 0x53b   : > { %v2715_v19 = vsel %vm2713_vm9, %v2706_v43, %v2708_v3  ;;  %v2859_v43 = vstv %s3108_s13  ;;  %v2613_v3 = vadd.f32 %v2607_v56, %v2560_v61  ;;  %s4994_s13 = scalar_lea.hbm %s5055_s8, %s3324_s21 }
 0x53c   : > { %v2721_v54 = vsel %vm4891_vm12, 0.0, %v2715_v19 }
 0x53d   : > { %v2724_v39 = vadd.f32 %v2721_v54, %v2668_v27 }
 0x53e   : > { %v2656_v34 = vpop.permute.xlu1 %2655 }
 0x53f   : > { %v2660_v12 = vsel %vm2657_vm7, %v2654_v45, %v2656_v34 }
 0x540   : > { %v2666_v40 = vsel %vm4914_vm5, 0.0, %v2660_v12 }
 0x541   : > { %v2669_v6 = vadd.f32 %v2666_v40, %v2613_v3 }
 0x54b   : > { %v2841_v35 = vpop.permute.xlu0 %2840 }
 0x54f   : > { %v2710_v31 = vpop.permute.xlu0 %2709  ;;  %v4930_v9 = vpop.permute.xlu1 %2845 }
 0x553   : > { %v2758_v2 = vpop.permute.xlu0 %2757  ;;  %v2712_v49 = vpop.permute.xlu1 %2711 }
 0x554   : > { %v2716_v62 = vsel %vm2713_vm9, %v2710_v31, %v2712_v49 }
 0x555   : > { %v2722_v11 = vsel %vm4891_vm12, 0.0, %v2716_v62  ;;  %vm2879_vm12 = vcmask 1043456  }
 0x556   : > { %v2725_v49 = vadd.f32 %v2722_v11, %v2669_v6 }
 0x557   : > { %v2762_v16 = vpop.permute.xlu0 %2761  ;;  %v2760_v52 = vpop.permute.xlu1 %2759 }
 0x558   : > { %v2770_v51 = vsel %vm2769_vm10, %v2758_v2, %v2760_v52 }
 0x559   : > { %v2776_v20 = vadd.f32 %v2770_v51, %v2723_v1 }
 0x55b   : > { %v2811_v47 = vpop.permute.xlu0 %2810  ;;  %v2764_v46 = vpop.permute.xlu1 %2763 }
 0x55c   : > { %v2771_v53 = vsel %vm2769_vm10, %v2762_v16, %v2764_v46 }
 0x55d   : > { %v2777_v42 = vadd.f32 %v2771_v53, %v2724_v39 }
 0x55f   : > { %v2815_v33 = vpop.permute.xlu0 %2814  ;;  %v2813_v8 = vpop.permute.xlu1 %2812 }
 0x560   : > { %v2823_v44 = vsel %vm2822_vm11, %v2811_v47, %v2813_v8 }
 0x561   : > { %v2829_v59 = vsel %vm4914_vm5, 0.0, %v2823_v44 }
 0x562   : > { %v2832_v29 = vadd.f32 %v2829_v59, %v2776_v20 }
 0x563   : > { %v2851_v63 = vpop.permute.xlu0 %2850  ;;  %v2817_v14 = vpop.permute.xlu1 %2816 }
 0x564   : > { %v2853_v50 = vadd.f32 %v2841_v35, %v2832_v29  ;;  %v2824_v21 = vsel %vm2822_vm11, %v2815_v33, %v2817_v14 }
 0x565   : > { %v2830_v4 = vsel %vm4914_vm5, 0.0, %v2824_v21 }
 0x566   : > { %v2833_v45 = vadd.f32 %v2830_v4, %v2777_v42  ;;  %v2860_v35 = vmul.f32 %v2859_v43, %v2853_v50  ;;  %vm2856_vm14 = vcmp.ge.f32.partialorder %v2853_v50, 0.0 }
 0x567   : > { %v2768_v30 = vpop.permute.xlu0 %2767  ;;  %v2766_v34 = vpop.permute.xlu1 %2765 }
 0x568   : > { %v2854_v31 = vadd.f32 %v4930_v9, %v2833_v45  ;;  %v2772_v2 = vsel %vm2769_vm10, %v2766_v34, %v2768_v30  ;;  %v2863_v52 = vsel %vm2856_vm14, %v2853_v50, %v2860_v35 }
 0x569   : > { %v2778_v13 = vadd.f32 %v2772_v2, %v2725_v49 }
 0x56a   : > { %vm2857_vm0 = vcmp.ge.f32.partialorder %v2854_v31, 0.0  ;;  %v2861_v22 = vmul.f32 %v2859_v43, %v2854_v31 }
 0x56b   : > { %v2821_v0 = vpop.permute.xlu0 %2820  ;;  %v2819_v26 = vpop.permute.xlu1 %2818 }
 0x56c   : > { %v2825_v16 = vsel %vm2822_vm11, %v2819_v26, %v2821_v0  ;;  %v2864_v28 = vsel %vm2857_vm0, %v2854_v31, %v2861_v22 }
 0x56d   : > { %v2831_v24 = vsel %vm4914_vm5, 0.0, %v2825_v16  ;;  %v2867_v37 = vpack.c.bf16 %v2864_v28, %v2863_v52 }
 0x56e   : > { %v2834_v9 = vadd.f32 %v2831_v24, %v2778_v13 }
 0x56f   : > { %v1787_v18 = vpop.permute.xlu0 %1786  ;;  %3352 = vmatpush3.bf16.msra.mxu0 %v2867_v37  ;;  %v1691_v32 = vpop.permute.xlu1 %1690 }
 0x570   : > { %v2855_v58 = vadd.f32 %v2851_v63, %v2834_v9  ;;  %1790 = vst.msk [vmem:[#allocation3] sm:$0x1] %vm1789_vm1, %v1787_v18  ;;  %3353 = vmatprep.subr.bf16.mxu0 %v5114_v25  ;;  %v2866_v25 = vld [vmem:[%s5052_s5] sm:$0x3] }
 0x571   : > { %1693 = vst.msk [vmem:[#allocation3 + $0x3] sm:$0x1] %vm1584_vm15, %v1691_v32  ;;  %vm2875_vm15 = vcmask 195584  }
 0x572   : > { %vm2858_vm2 = vcmp.ge.f32.partialorder %v2855_v58, 0.0  ;;  %v2862_v60 = vmul.f32 %v2859_v43, %v2855_v58 }
 0x573   : > { %v1860_v7 = vpop.permute.xlu0 %1859  ;;  %v1824_v23 = vpop.permute.xlu1 %1823 }
 0x574   : > { %1862 = vst.msk [vmem:[#allocation3 + $0x2] sm:$0x1] %vm1789_vm1, %v1860_v7  ;;  %v2865_v48 = vsel %vm2858_vm2, %v2855_v58, %v2862_v60  ;;  %1826 = vst.msk [vmem:[#allocation3 + $0x1] sm:$0x1] %vm1789_vm1, %v1824_v23 }
 0x575   : > { %v2868_v10 = vpack.c.bf16 %v2865_v48, %v2865_v48 }
 0x577   : > { %v2873_v47 = vpop.permute.xlu0 %2872  ;;  %v2881_v46 = vsel %vm2879_vm12, %v2868_v10, 0  ;;  %v1896_v15 = vpop.permute.xlu1 %1895 }
 0x578   : > { %3354 = vmatpush3.bf16.msra.mxu0 %v2881_v46  ;;  %1898 = vst.msk [vmem:[#allocation3 + $0x3] sm:$0x1] %vm1789_vm1, %v1896_v15 }
 0x57b   : > { %3356 = vmatmul.mubr.msk.bf16.vlgmr.msra.gmra.mrb[0].mxu0 %vm2875_vm15, %v2866_v25  ;;  %v2033_v38 = vpop.permute.xlu0 %2032  ;;  %v1996_v19 = vpop.permute.xlu1 %1995 }
 0x57c   : > { %2035 = vst.msk [vmem:[#allocation3 + $0x1] sm:$0x1] %vm1998_vm13, %v2033_v38  ;;  %1999 = vst.msk [vmem:[#allocation3] sm:$0x1] %vm1998_vm13, %v1996_v19 }
 0x57f   : > { %v2105_v55 = vpop.permute.xlu0 %2104  ;;  %v2069_v17 = vpop.permute.xlu1 %2068 }
 0x580   : > { %2107 = vst.msk [vmem:[#allocation3 + $0x3] sm:$0x1] %vm1998_vm13, %v2105_v55  ;;  %2071 = vst.msk [vmem:[#allocation3 + $0x2] sm:$0x1] %vm1998_vm13, %v2069_v17 }
 0x587   : > { %v2923_v1 = vld [vmem:[#allocation3] sm:$0xf] }
 0x64e   : > { %v2917_v51 = vpop.f32.mrb[0].mxu0 }
 0x64f   : > { %v2918_v57 = vadd.f32 %v2917_v51, %v2873_v47  ;;  %v3357_v5 = vpop.f32.mrb[1].mxu0 }
 0x650   : > { %v2920_v54 = vpop.f32.mrb[2].mxu0 }
 0x651   : > { %v2924_v33 = vadd.f32 %v2923_v1, %v2918_v57  ;;  %v3358_v8 = vpop.f32.mrb[3].mxu0 }
 0x653   : > { %2925 = vst [vmem:[%s326_s22] sm:$0xf] %v2924_v33 }
 0x654   : > { %3495 = shalt.err (!%p3492_p0)
}
 0x655   : > { %s3496_s23 = scalar_lea.hbm %s4994_s13, 64  ;;  %s3500_s21 = scalar_lea.hbm %s5055_s8, 256 }
 0x656   : > { %p3497_p1 = scmp.ne.s32.totalorder %s4994_s13, %s3496_s23  ;;  %p3501_p5 = scmp.lt.u32.totalorder %s4994_s13, %s5055_s8 }
 0x657   : > { %p3502_p6 = scmp.lt.u32.totalorder %s3500_s21, %s3496_s23  ;;  %p3504_p9 = scmp.lt.u32.totalorder %s3496_s23, %s4994_s13 }
 0x658   : > { %p3498_p2 = pnand %p3497_p1, %p3705_p3 }
 0x659   : > { %p3503_p7 = por %p3502_p6, %p3501_p5 }
 0x65a   : > { %p3499_p4 = pneg %p3498_p2 }
 0x65b   : > { %p3505_p8 = por %p3504_p9, %p3503_p7 }
 0x65d   : > { %p3506_p10 = pnand %p3505_p8, %p3499_p4 }
 0x65f   : > { %3509 = shalt.err (!%p3506_p10)
}
 0x660   : > { %3363 = dma.vmem_to_hbm [thread:$0]  (%p3705_p3), %s4996_s26, 64, %s4994_s13, %s2927_s30  }
 0x661 PF: > { %p3375_p11 = scmp.ge.s32.totalorder %s3580_s12, 2  ;;  %s2954_s24 = sand.u32 1, %s3552_s27  }
 0x662   : > { %p5121_p12 = scmp.ne.s32.totalorder %s5077_s20, 0  ;;  %s2955_s9 = scalar_lea.sflag [#allocation5], %s2954_s24 }
 0x664   : > { %p3370_p13 = pnand %p3375_p11, %p5121_p12 }
 0x666   : > { %3547 = dma.done.wait (!%p3370_p13), %s2955_s9, 64  }
 0x667   : > { %3549 = vsyncadd (!%p3370_p13), %s2955_s9, 4294967232  ;;  %s22_s12 = sadd.s32 1, %s3580_s12   ;;  %s5122_s19 = sld [smem:[#allocation10_spill]] }
 0x668   : > { %p19_p0 = scmp.ge.s32.totalorder %s22_s12, 6   ;;  %s5123_s27 = smov %s3556_s28 }
 0x669   : > { %s5124_s28 = smov %s3560_s29  ;;  %s5125_s29 = smov %s3735_s15 }
 0x66a   : > { %s5126_s30 = smov %s3572_s10  ;;  %s5127_s9 = smov %s3576_s11 }
 0x66b   : > { %s5129_s11 = smov %s5135_s16  ;;  %21 = sbr.rel (!%p19_p0) target bundleno = 9 (0x9), region = 143 }
 0x66d   : > { %s5128_s10 = smov %s5122_s19 }
 0x672   :  { %2960 = vsyncpa [#allocation5], 1 }
 0x673   :  { %2962 = vsyncpa [#allocation5 + $0x1], 1 }
 0x674   :  { %2963 = vsyncpa [#allocation6], 1 }
 0x675   :  { %2965 = vsyncpa [#allocation6 + $0x1], 1 }

</bundles_post_ra>
